<compile_context>
chip_gen: v7x
topology: tpu7x:2x2x1
jax: 0.10.0
libtpu: 0.0.40
codegen_flags: <defaults>
</compile_context>

<pallas_src>
import jax
import jax.numpy as jnp
from jax.experimental import pallas as pl
from jax.experimental.pallas import tpu as pltpu


# ------------------------------- helpers -------------------------------------

_LANE = 128
_SUBLANE = 8
_MAX_TILE_M = 512   # 512-row tiles: measured sweet spot, fits v7x's 64 MiB VMEM


def _round_up(x, m):
    return (x + m - 1) // m * m


def _pad2d(a, rows, cols):
    r, c = a.shape
    if r == rows and c == cols:
        return a
    return jnp.pad(a, ((0, rows - r), (0, cols - c)))


def _tile_m(m):
    """Row-tile size: multiple of 8, capped at _MAX_TILE_M."""
    return min(_MAX_TILE_M, _round_up(m, _SUBLANE))


# ----------------------------- Pallas kernels --------------------------------

def _conv_bn_relu_kernel(p_ref, w_ref, b_ref, o_ref):
    """Conv-as-matmul (BN scale pre-folded into weight) + bias + ReLU.

    p_ref: (TILE_M, K_pad)  bf16 im2col patch tile
    w_ref: (K_pad, C_pad)   bf16 weight (BN scale folded, zero-padded)
    b_ref: (1, C_pad)       f32  folded BN bias
    o_ref: (TILE_M, C_pad)  bf16 output tile (lane-dense)
    """
    acc = jnp.dot(p_ref[...], w_ref[...], preferred_element_type=jnp.float32)
    o_ref[...] = jnp.maximum(acc + b_ref[...], 0.0).astype(o_ref.dtype)


def _maxpool9_kernel(*refs):
    """Elementwise max over 9 window-tap tiles.  refs = (t0..t8, o_ref)."""
    o_ref = refs[-1]
    acc = refs[0][...]
    for r in refs[1:9]:
        acc = jnp.maximum(acc, r[...])
    o_ref[...] = acc


# ------------------------------- wrappers -------------------------------------

def conv_bn_relu(x, w2d, bias2d, *, ksize, cout, stride, padding):
    """x: (N,H,W,Cin) NHWC bf16.  Returns (N,OH,OW,Cout) bf16."""
    n, h, wdt, cin = x.shape
    if padding:
        x = jnp.pad(x, ((0, 0), (padding, padding), (padding, padding), (0, 0)))
        h += 2 * padding
        wdt += 2 * padding
    oh = (h - ksize) // stride + 1
    ow = (wdt - ksize) // stride + 1
    m = n * oh * ow
    k_total = ksize * ksize * cin
    k_pad, c_pad = w2d.shape

    # im2col (XLA glue); tap ordering (kh, kw, cin) matches the weight reshape.
    cols = []
    for kh in range(ksize):
        for kw in range(ksize):
            cols.append(jax.lax.slice(
                x,
                (0, kh, kw, 0),
                (n, kh + stride * (oh - 1) + 1, kw + stride * (ow - 1) + 1, cin),
                (1, stride, stride, 1)))
    patches = jnp.concatenate(cols, axis=-1).reshape(m, k_total)

    tile_m = _tile_m(m)
    m_pad = _round_up(m, tile_m)
    patches = _pad2d(patches, m_pad, k_pad).astype(jnp.bfloat16)

    out = pl.pallas_call(
        _conv_bn_relu_kernel,
        out_shape=jax.ShapeDtypeStruct((m_pad, c_pad), jnp.bfloat16),
        grid_spec=pltpu.PrefetchScalarGridSpec(
            num_scalar_prefetch=0,
            grid=(m_pad // tile_m,),
            in_specs=[
                pl.BlockSpec((tile_m, k_pad), lambda i: (i, 0)),   # patch tile
                pl.BlockSpec((k_pad, c_pad), lambda i: (0, 0)),    # weight (resident)
                pl.BlockSpec((1, c_pad), lambda i: (0, 0)),        # bias (resident)
            ],
            out_specs=pl.BlockSpec((tile_m, c_pad), lambda i: (i, 0)),
        ),
        compiler_params=pltpu.CompilerParams(
            dimension_semantics=("parallel",)),
    )(patches, w2d, bias2d)
    return out[:m, :cout].reshape(n, oh, ow, cout)


def maxpool3x3_s2(x):
    """3x3 max-pool, stride 2, no padding.  x: (N,H,W,C) NHWC bf16."""
    n, h, w, c = x.shape
    oh = (h - 3) // 2 + 1
    ow = (w - 3) // 2 + 1
    m = n * oh * ow
    c_pad = _round_up(c, _LANE)
    tile_m = _tile_m(m)
    m_pad = _round_up(m, tile_m)

    # 9 strided window taps passed as 9 separate tiled inputs (no (9,M,C) stack).
    taps = []
    for kh in range(3):
        for kw in range(3):
            t = jax.lax.slice(
                x,
                (0, kh, kw, 0),
                (n, kh + 2 * (oh - 1) + 1, kw + 2 * (ow - 1) + 1, c),
                (1, 2, 2, 1)).reshape(m, c)
            taps.append(_pad2d(t, m_pad, c_pad))

    spec = pl.BlockSpec((tile_m, c_pad), lambda i: (i, 0))
    out = pl.pallas_call(
        _maxpool9_kernel,
        out_shape=jax.ShapeDtypeStruct((m_pad, c_pad), x.dtype),
        grid_spec=pltpu.PrefetchScalarGridSpec(
            num_scalar_prefetch=0,
            grid=(m_pad // tile_m,),
            in_specs=[spec] * 9,
            out_specs=spec,
        ),
        compiler_params=pltpu.CompilerParams(
            dimension_semantics=("parallel",)),
    )(*taps)
    return out[:m, :c].reshape(n, oh, ow, c)


# --------------------------- parameter creation -------------------------------

def init_conv_block(key, cin, cout, k, bn_eps):
    """Synthetic Conv+BN params with BN folded (eval mode) into the weight/bias,
    padded to lane-friendly shapes and cast to bf16 for the MXU."""
    kw_, kg, kb, km, kv = jax.random.split(key, 5)
    w = jax.random.normal(kw_, (cout, cin, k, k), jnp.float32) * 0.05
    gamma = jax.random.uniform(kg, (cout,), jnp.float32, 0.5, 1.5)
    beta = jax.random.normal(kb, (cout,), jnp.float32) * 0.1
    run_mean = jax.random.normal(km, (cout,), jnp.float32) * 0.1
    run_var = jax.random.uniform(kv, (cout,), jnp.float32, 0.5, 1.5)
    scale = gamma / jnp.sqrt(run_var + bn_eps)
    bias = beta - run_mean * scale

    k_total = k * k * cin
    k_pad = _round_up(k_total, _LANE) if k_total >= 64 else _round_up(k_total, 32)
    c_pad = _round_up(cout, _LANE)
    # (Cout,Cin,KH,KW) -> (KH,KW,Cin,Cout) -> (K, Cout), fold BN scale, pad.
    w2d = jnp.transpose(w, (2, 3, 1, 0)).reshape(k_total, cout) * scale[None, :]
    w2d = _pad2d(w2d, k_pad, c_pad).astype(jnp.bfloat16)
    b2d = _pad2d(bias.reshape(1, cout), 1, c_pad).astype(jnp.float32)
    return w2d, b2d


def init_incept_init_block(key, in_channels, bn_eps):
    keys = jax.random.split(key, 5)
    return {
        "conv1": init_conv_block(keys[0], in_channels, 32, 3, bn_eps),
        "conv2": init_conv_block(keys[1], 32, 32, 3, bn_eps),
        "conv3": init_conv_block(keys[2], 32, 64, 3, bn_eps),
        "conv4": init_conv_block(keys[3], 64, 80, 1, bn_eps),
        "conv5": init_conv_block(keys[4], 80, 192, 3, bn_eps),
    }


# ------------------------------ forward pass ----------------------------------

@jax.jit
def incept_init_block(x_nchw, params):
    """Matches InceptInitBlock.forward (BatchNorm in inference mode)."""
    x = jnp.transpose(x_nchw, (0, 2, 3, 1)).astype(jnp.bfloat16)   # NCHW -> NHWC
    x = conv_bn_relu(x, *params["conv1"], ksize=3, cout=32, stride=2, padding=0)
    x = conv_bn_relu(x, *params["conv2"], ksize=3, cout=32, stride=1, padding=0)
    x = conv_bn_relu(x, *params["conv3"], ksize=3, cout=64, stride=1, padding=1)
    x = maxpool3x3_s2(x)                                           # pool1
    x = conv_bn_relu(x, *params["conv4"], ksize=1, cout=80, stride=1, padding=0)
    x = conv_bn_relu(x, *params["conv5"], ksize=3, cout=192, stride=1, padding=0)
    x = maxpool3x3_s2(x)                                           # pool2
    return jnp.transpose(x, (0, 3, 1, 2)).astype(jnp.float32)      # NHWC -> NCHW


if __name__ == "__main__":
    key = jax.random.PRNGKey(0)
    k_param, k_x = jax.random.split(key)

    in_channels = 3
    bn_eps = 1e-5
    params = init_incept_init_block(k_param, in_channels, bn_eps)

    # Small input consistent with the module: NCHW, spatial 35 -> output 2x2.
    x = jax.random.normal(k_x, (2, in_channels, 35, 35), jnp.float32)

    y = incept_init_block(x, params)
    jax.block_until_ready(y)

    assert y.shape == (2, 192, 2, 2), y.shape
    assert y.dtype == jnp.float32
    print("KERNEL_OK")
</pallas_src>

<mosaic_0001>
module attributes {stable_mosaic.version = 11 : i64} {
  func.func @_conv_bn_relu_kernel(%arg0: i32, %arg1: memref<512x32xbf16, #tpu.memory_space<vmem>>, %arg2: memref<32x128xbf16, #tpu.memory_space<vmem>>, %arg3: memref<1x128xf32, #tpu.memory_space<vmem>>, %arg4: memref<512x128xbf16, #tpu.memory_space<vmem>>) attributes {dimension_semantics = [#tpu.dimension_semantics<parallel>], iteration_bounds = array<i64: 2>, scalar_prefetch = 0 : i64, scratch_operands = 0 : i64, tpu.core_type = #tpu.core_type<tc>, window_params = [{transform_indices = @transform_0, window_bounds = array<i64: 512, 32>}, {pipeline_mode = #tpu.pipeline_mode<synchronous>, transform_indices = @transform_1, window_bounds = array<i64: 32, 128>}, {pipeline_mode = #tpu.pipeline_mode<synchronous>, transform_indices = @transform_2, window_bounds = array<i64: 1, 128>}, {transform_indices = @transform_3, window_bounds = array<i64: 512, 128>}]} {
    %c0 = arith.constant 0 : index
    %c0_0 = arith.constant 0 : index
    %0 = vector.load %arg1[%c0, %c0_0] : memref<512x32xbf16, #tpu.memory_space<vmem>>, vector<512x32xbf16>
    %c0_1 = arith.constant 0 : index
    %c0_2 = arith.constant 0 : index
    %1 = vector.load %arg2[%c0_1, %c0_2] : memref<32x128xbf16, #tpu.memory_space<vmem>>, vector<32x128xbf16>
    %cst = arith.constant dense<0.000000e+00> : vector<512x128xf32>
    %2 = tpu.matmul %0, %1, %cst {dimension_numbers = #tpu.dot_dimension_numbers<[1], [0], [0], [1], [0, 0, 1, 1], [], []>} : vector<512x32xbf16>, vector<32x128xbf16>, vector<512x128xf32> -> vector<512x128xf32>
    %c0_3 = arith.constant 0 : index
    %c0_4 = arith.constant 0 : index
    %3 = vector.load %arg3[%c0_3, %c0_4] : memref<1x128xf32, #tpu.memory_space<vmem>>, vector<1x128xf32>
    %4 = vector.broadcast %3 : vector<1x128xf32> to vector<512x128xf32>
    %5 = arith.addf %2, %4 : vector<512x128xf32>
    %cst_5 = arith.constant 0.000000e+00 : f32
    %6 = vector.broadcast %cst_5 : f32 to vector<512x128xf32>
    %7 = arith.maximumf %5, %6 : vector<512x128xf32>
    %8 = arith.truncf %7 : vector<512x128xf32> to vector<512x128xbf16>
    %c0_6 = arith.constant 0 : index
    %c0_7 = arith.constant 0 : index
    %9 = vector.load %arg4[%c0_6, %c0_7] : memref<512x128xbf16, #tpu.memory_space<vmem>>, vector<512x128xbf16>
    tpu.vector_store %arg4[%c0_6, %c0_7], %8 {strides = array<i32>} : memref<512x128xbf16, #tpu.memory_space<vmem>>, vector<512x128xbf16>,
    return
  }
  func.func @transform_0(%arg0: i32) -> (i32, i32) {
    %c0_i32 = arith.constant 0 : i32
    %c0_i32_0 = arith.constant 0 : i32
    return %arg0, %c0_i32 : i32, i32
  }
  func.func @transform_1(%arg0: i32) -> (i32, i32) {
    %c0_i32 = arith.constant 0 : i32
    %c0_i32_0 = arith.constant 0 : i32
    %c0_i32_1 = arith.constant 0 : i32
    return %c0_i32, %c0_i32_0 : i32, i32
  }
  func.func @transform_2(%arg0: i32) -> (i32, i32) {
    %c0_i32 = arith.constant 0 : i32
    %c0_i32_0 = arith.constant 0 : i32
    %c0_i32_1 = arith.constant 0 : i32
    return %c0_i32, %c0_i32_0 : i32, i32
  }
  func.func @transform_3(%arg0: i32) -> (i32, i32) {
    %c0_i32 = arith.constant 0 : i32
    %c0_i32_0 = arith.constant 0 : i32
    return %arg0, %c0_i32 : i32, i32
  }
}

module attributes {stable_mosaic.version = 11 : i64} {
  func.func @_conv_bn_relu_kernel(%arg0: i32, %arg1: memref<456x384xbf16, #tpu.memory_space<vmem>>, %arg2: memref<384x128xbf16, #tpu.memory_space<vmem>>, %arg3: memref<1x128xf32, #tpu.memory_space<vmem>>, %arg4: memref<456x128xbf16, #tpu.memory_space<vmem>>) attributes {dimension_semantics = [#tpu.dimension_semantics<parallel>], iteration_bounds = array<i64: 1>, scalar_prefetch = 0 : i64, scratch_operands = 0 : i64, tpu.core_type = #tpu.core_type<tc>, window_params = [{transform_indices = @transform_0, window_bounds = array<i64: 456, 384>}, {pipeline_mode = #tpu.pipeline_mode<synchronous>, transform_indices = @transform_1, window_bounds = array<i64: 384, 128>}, {pipeline_mode = #tpu.pipeline_mode<synchronous>, transform_indices = @transform_2, window_bounds = array<i64: 1, 128>}, {transform_indices = @transform_3, window_bounds = array<i64: 456, 128>}]} {
    %c0 = arith.constant 0 : index
    %c0_0 = arith.constant 0 : index
    %0 = vector.load %arg1[%c0, %c0_0] : memref<456x384xbf16, #tpu.memory_space<vmem>>, vector<456x384xbf16>
    %c0_1 = arith.constant 0 : index
    %c0_2 = arith.constant 0 : index
    %1 = vector.load %arg2[%c0_1, %c0_2] : memref<384x128xbf16, #tpu.memory_space<vmem>>, vector<384x128xbf16>
    %cst = arith.constant dense<0.000000e+00> : vector<456x128xf32>
    %2 = tpu.matmul %0, %1, %cst {dimension_numbers = #tpu.dot_dimension_numbers<[1], [0], [0], [1], [0, 0, 1, 1], [], []>} : vector<456x384xbf16>, vector<384x128xbf16>, vector<456x128xf32> -> vector<456x128xf32>
    %c0_3 = arith.constant 0 : index
    %c0_4 = arith.constant 0 : index
    %3 = vector.load %arg3[%c0_3, %c0_4] : memref<1x128xf32, #tpu.memory_space<vmem>>, vector<1x128xf32>
    %4 = vector.broadcast %3 : vector<1x128xf32> to vector<456x128xf32>
    %5 = arith.addf %2, %4 : vector<456x128xf32>
    %cst_5 = arith.constant 0.000000e+00 : f32
    %6 = vector.broadcast %cst_5 : f32 to vector<456x128xf32>
    %7 = arith.maximumf %5, %6 : vector<456x128xf32>
    %8 = arith.truncf %7 : vector<456x128xf32> to vector<456x128xbf16>
    %c0_6 = arith.constant 0 : index
    %c0_7 = arith.constant 0 : index
    %9 = vector.load %arg4[%c0_6, %c0_7] : memref<456x128xbf16, #tpu.memory_space<vmem>>, vector<456x128xbf16>
    tpu.vector_store %arg4[%c0_6, %c0_7], %8 {strides = array<i32>} : memref<456x128xbf16, #tpu.memory_space<vmem>>, vector<456x128xbf16>,
    return
  }
  func.func @transform_0(%arg0: i32) -> (i32, i32) {
    %c0_i32 = arith.constant 0 : i32
    %c0_i32_0 = arith.constant 0 : i32
    return %arg0, %c0_i32 : i32, i32
  }
  func.func @transform_1(%arg0: i32) -> (i32, i32) {
    %c0_i32 = arith.constant 0 : i32
    %c0_i32_0 = arith.constant 0 : i32
    %c0_i32_1 = arith.constant 0 : i32
    return %c0_i32, %c0_i32_0 : i32, i32
  }
  func.func @transform_2(%arg0: i32) -> (i32, i32) {
    %c0_i32 = arith.constant 0 : i32
    %c0_i32_0 = arith.constant 0 : i32
    %c0_i32_1 = arith.constant 0 : i32
    return %c0_i32, %c0_i32_0 : i32, i32
  }
  func.func @transform_3(%arg0: i32) -> (i32, i32) {
    %c0_i32 = arith.constant 0 : i32
    %c0_i32_0 = arith.constant 0 : i32
    return %arg0, %c0_i32 : i32, i32
  }
}

module attributes {stable_mosaic.version = 11 : i64} {
  func.func @_maxpool9_kernel(%arg0: i32, %arg1: memref<104x128xbf16, #tpu.memory_space<vmem>>, %arg2: memref<104x128xbf16, #tpu.memory_space<vmem>>, %arg3: memref<104x128xbf16, #tpu.memory_space<vmem>>, %arg4: memref<104x128xbf16, #tpu.memory_space<vmem>>, %arg5: memref<104x128xbf16, #tpu.memory_space<vmem>>, %arg6: memref<104x128xbf16, #tpu.memory_space<vmem>>, %arg7: memref<104x128xbf16, #tpu.memory_space<vmem>>, %arg8: memref<104x128xbf16, #tpu.memory_space<vmem>>, %arg9: memref<104x128xbf16, #tpu.memory_space<vmem>>, %arg10: memref<104x128xbf16, #tpu.memory_space<vmem>>) attributes {dimension_semantics = [#tpu.dimension_semantics<parallel>], iteration_bounds = array<i64: 1>, scalar_prefetch = 0 : i64, scratch_operands = 0 : i64, tpu.core_type = #tpu.core_type<tc>, window_params = [{transform_indices = @transform_0, window_bounds = array<i64: 104, 128>}, {transform_indices = @transform_1, window_bounds = array<i64: 104, 128>}, {transform_indices = @transform_2, window_bounds = array<i64: 104, 128>}, {transform_indices = @transform_3, window_bounds = array<i64: 104, 128>}, {transform_indices = @transform_4, window_bounds = array<i64: 104, 128>}, {transform_indices = @transform_5, window_bounds = array<i64: 104, 128>}, {transform_indices = @transform_6, window_bounds = array<i64: 104, 128>}, {transform_indices = @transform_7, window_bounds = array<i64: 104, 128>}, {transform_indices = @transform_8, window_bounds = array<i64: 104, 128>}, {transform_indices = @transform_9, window_bounds = array<i64: 104, 128>}]} {
    %c0 = arith.constant 0 : index
    %c0_0 = arith.constant 0 : index
    %0 = vector.load %arg1[%c0, %c0_0] : memref<104x128xbf16, #tpu.memory_space<vmem>>, vector<104x128xbf16>
    %c0_1 = arith.constant 0 : index
    %c0_2 = arith.constant 0 : index
    %1 = vector.load %arg2[%c0_1, %c0_2] : memref<104x128xbf16, #tpu.memory_space<vmem>>, vector<104x128xbf16>
    %2 = arith.maximumf %0, %1 : vector<104x128xbf16>
    %c0_3 = arith.constant 0 : index
    %c0_4 = arith.constant 0 : index
    %3 = vector.load %arg3[%c0_3, %c0_4] : memref<104x128xbf16, #tpu.memory_space<vmem>>, vector<104x128xbf16>
    %4 = arith.maximumf %2, %3 : vector<104x128xbf16>
    %c0_5 = arith.constant 0 : index
    %c0_6 = arith.constant 0 : index
    %5 = vector.load %arg4[%c0_5, %c0_6] : memref<104x128xbf16, #tpu.memory_space<vmem>>, vector<104x128xbf16>
    %6 = arith.maximumf %4, %5 : vector<104x128xbf16>
    %c0_7 = arith.constant 0 : index
    %c0_8 = arith.constant 0 : index
    %7 = vector.load %arg5[%c0_7, %c0_8] : memref<104x128xbf16, #tpu.memory_space<vmem>>, vector<104x128xbf16>
    %8 = arith.maximumf %6, %7 : vector<104x128xbf16>
    %c0_9 = arith.constant 0 : index
    %c0_10 = arith.constant 0 : index
    %9 = vector.load %arg6[%c0_9, %c0_10] : memref<104x128xbf16, #tpu.memory_space<vmem>>, vector<104x128xbf16>
    %10 = arith.maximumf %8, %9 : vector<104x128xbf16>
    %c0_11 = arith.constant 0 : index
    %c0_12 = arith.constant 0 : index
    %11 = vector.load %arg7[%c0_11, %c0_12] : memref<104x128xbf16, #tpu.memory_space<vmem>>, vector<104x128xbf16>
    %12 = arith.maximumf %10, %11 : vector<104x128xbf16>
    %c0_13 = arith.constant 0 : index
    %c0_14 = arith.constant 0 : index
    %13 = vector.load %arg8[%c0_13, %c0_14] : memref<104x128xbf16, #tpu.memory_space<vmem>>, vector<104x128xbf16>
    %14 = arith.maximumf %12, %13 : vector<104x128xbf16>
    %c0_15 = arith.constant 0 : index
    %c0_16 = arith.constant 0 : index
    %15 = vector.load %arg9[%c0_15, %c0_16] : memref<104x128xbf16, #tpu.memory_space<vmem>>, vector<104x128xbf16>
    %16 = arith.maximumf %14, %15 : vector<104x128xbf16>
    %c0_17 = arith.constant 0 : index
    %c0_18 = arith.constant 0 : index
    %17 = vector.load %arg10[%c0_17, %c0_18] : memref<104x128xbf16, #tpu.memory_space<vmem>>, vector<104x128xbf16>
    tpu.vector_store %arg10[%c0_17, %c0_18], %16 {strides = array<i32>} : memref<104x128xbf16, #tpu.memory_space<vmem>>, vector<104x128xbf16>,
    return
  }
  func.func @transform_0(%arg0: i32) -> (i32, i32) {
    %c0_i32 = arith.constant 0 : i32
    %c0_i32_0 = arith.constant 0 : i32
    return %arg0, %c0_i32 : i32, i32
  }
  func.func @transform_1(%arg0: i32) -> (i32, i32) {
    %c0_i32 = arith.constant 0 : i32
    %c0_i32_0 = arith.constant 0 : i32
    return %arg0, %c0_i32 : i32, i32
  }
  func.func @transform_2(%arg0: i32) -> (i32, i32) {
    %c0_i32 = arith.constant 0 : i32
    %c0_i32_0 = arith.constant 0 : i32
    return %arg0, %c0_i32 : i32, i32
  }
  func.func @transform_3(%arg0: i32) -> (i32, i32) {
    %c0_i32 = arith.constant 0 : i32
    %c0_i32_0 = arith.constant 0 : i32
    return %arg0, %c0_i32 : i32, i32
  }
  func.func @transform_4(%arg0: i32) -> (i32, i32) {
    %c0_i32 = arith.constant 0 : i32
    %c0_i32_0 = arith.constant 0 : i32
    return %arg0, %c0_i32 : i32, i32
  }
  func.func @transform_5(%arg0: i32) -> (i32, i32) {
    %c0_i32 = arith.constant 0 : i32
    %c0_i32_0 = arith.constant 0 : i32
    return %arg0, %c0_i32 : i32, i32
  }
  func.func @transform_6(%arg0: i32) -> (i32, i32) {
    %c0_i32 = arith.constant 0 : i32
    %c0_i32_0 = arith.constant 0 : i32
    return %arg0, %c0_i32 : i32, i32
  }
  func.func @transform_7(%arg0: i32) -> (i32, i32) {
    %c0_i32 = arith.constant 0 : i32
    %c0_i32_0 = arith.constant 0 : i32
    return %arg0, %c0_i32 : i32, i32
  }
  func.func @transform_8(%arg0: i32) -> (i32, i32) {
    %c0_i32 = arith.constant 0 : i32
    %c0_i32_0 = arith.constant 0 : i32
    return %arg0, %c0_i32 : i32, i32
  }
  func.func @transform_9(%arg0: i32) -> (i32, i32) {
    %c0_i32 = arith.constant 0 : i32
    %c0_i32_0 = arith.constant 0 : i32
    return %arg0, %c0_i32 : i32, i32
  }
}

module attributes {stable_mosaic.version = 11 : i64} {
  func.func @_conv_bn_relu_kernel(%arg0: i32, %arg1: memref<104x128xbf16, #tpu.memory_space<vmem>>, %arg2: memref<128x128xbf16, #tpu.memory_space<vmem>>, %arg3: memref<1x128xf32, #tpu.memory_space<vmem>>, %arg4: memref<104x128xbf16, #tpu.memory_space<vmem>>) attributes {dimension_semantics = [#tpu.dimension_semantics<parallel>], iteration_bounds = array<i64: 1>, scalar_prefetch = 0 : i64, scratch_operands = 0 : i64, tpu.core_type = #tpu.core_type<tc>, window_params = [{transform_indices = @transform_0, window_bounds = array<i64: 104, 128>}, {pipeline_mode = #tpu.pipeline_mode<synchronous>, transform_indices = @transform_1, window_bounds = array<i64: 128, 128>}, {pipeline_mode = #tpu.pipeline_mode<synchronous>, transform_indices = @transform_2, window_bounds = array<i64: 1, 128>}, {transform_indices = @transform_3, window_bounds = array<i64: 104, 128>}]} {
    %c0 = arith.constant 0 : index
    %c0_0 = arith.constant 0 : index
    %0 = vector.load %arg1[%c0, %c0_0] : memref<104x128xbf16, #tpu.memory_space<vmem>>, vector<104x128xbf16>
    %c0_1 = arith.constant 0 : index
    %c0_2 = arith.constant 0 : index
    %1 = vector.load %arg2[%c0_1, %c0_2] : memref<128x128xbf16, #tpu.memory_space<vmem>>, vector<128x128xbf16>
    %cst = arith.constant dense<0.000000e+00> : vector<104x128xf32>
    %2 = tpu.matmul %0, %1, %cst {dimension_numbers = #tpu.dot_dimension_numbers<[1], [0], [0], [1], [0, 0, 1, 1], [], []>} : vector<104x128xbf16>, vector<128x128xbf16>, vector<104x128xf32> -> vector<104x128xf32>
    %c0_3 = arith.constant 0 : index
    %c0_4 = arith.constant 0 : index
    %3 = vector.load %arg3[%c0_3, %c0_4] : memref<1x128xf32, #tpu.memory_space<vmem>>, vector<1x128xf32>
    %4 = vector.broadcast %3 : vector<1x128xf32> to vector<104x128xf32>
    %5 = arith.addf %2, %4 : vector<104x128xf32>
    %cst_5 = arith.constant 0.000000e+00 : f32
    %6 = vector.broadcast %cst_5 : f32 to vector<104x128xf32>
    %7 = arith.maximumf %5, %6 : vector<104x128xf32>
    %8 = arith.truncf %7 : vector<104x128xf32> to vector<104x128xbf16>
    %c0_6 = arith.constant 0 : index
    %c0_7 = arith.constant 0 : index
    %9 = vector.load %arg4[%c0_6, %c0_7] : memref<104x128xbf16, #tpu.memory_space<vmem>>, vector<104x128xbf16>
    tpu.vector_store %arg4[%c0_6, %c0_7], %8 {strides = array<i32>} : memref<104x128xbf16, #tpu.memory_space<vmem>>, vector<104x128xbf16>,
    return
  }
  func.func @transform_0(%arg0: i32) -> (i32, i32) {
    %c0_i32 = arith.constant 0 : i32
    %c0_i32_0 = arith.constant 0 : i32
    return %arg0, %c0_i32 : i32, i32
  }
  func.func @transform_1(%arg0: i32) -> (i32, i32) {
    %c0_i32 = arith.constant 0 : i32
    %c0_i32_0 = arith.constant 0 : i32
    %c0_i32_1 = arith.constant 0 : i32
    return %c0_i32, %c0_i32_0 : i32, i32
  }
  func.func @transform_2(%arg0: i32) -> (i32, i32) {
    %c0_i32 = arith.constant 0 : i32
    %c0_i32_0 = arith.constant 0 : i32
    %c0_i32_1 = arith.constant 0 : i32
    return %c0_i32, %c0_i32_0 : i32, i32
  }
  func.func @transform_3(%arg0: i32) -> (i32, i32) {
    %c0_i32 = arith.constant 0 : i32
    %c0_i32_0 = arith.constant 0 : i32
    return %arg0, %c0_i32 : i32, i32
  }
}

module attributes {stable_mosaic.version = 11 : i64} {
  func.func @_conv_bn_relu_kernel(%arg0: i32, %arg1: memref<56x768xbf16, #tpu.memory_space<vmem>>, %arg2: memref<768x256xbf16, #tpu.memory_space<vmem>>, %arg3: memref<1x256xf32, #tpu.memory_space<vmem>>, %arg4: memref<56x256xbf16, #tpu.memory_space<vmem>>) attributes {dimension_semantics = [#tpu.dimension_semantics<parallel>], iteration_bounds = array<i64: 1>, scalar_prefetch = 0 : i64, scratch_operands = 0 : i64, tpu.core_type = #tpu.core_type<tc>, window_params = [{transform_indices = @transform_0, window_bounds = array<i64: 56, 768>}, {pipeline_mode = #tpu.pipeline_mode<synchronous>, transform_indices = @transform_1, window_bounds = array<i64: 768, 256>}, {pipeline_mode = #tpu.pipeline_mode<synchronous>, transform_indices = @transform_2, window_bounds = array<i64: 1, 256>}, {transform_indices = @transform_3, window_bounds = array<i64: 56, 256>}]} {
    %c0 = arith.constant 0 : index
    %c0_0 = arith.constant 0 : index
    %0 = vector.load %arg1[%c0, %c0_0] : memref<56x768xbf16, #tpu.memory_space<vmem>>, vector<56x768xbf16>
    %c0_1 = arith.constant 0 : index
    %c0_2 = arith.constant 0 : index
    %1 = vector.load %arg2[%c0_1, %c0_2] : memref<768x256xbf16, #tpu.memory_space<vmem>>, vector<768x256xbf16>
    %cst = arith.constant dense<0.000000e+00> : vector<56x256xf32>
    %2 = tpu.matmul %0, %1, %cst {dimension_numbers = #tpu.dot_dimension_numbers<[1], [0], [0], [1], [0, 0, 1, 1], [], []>} : vector<56x768xbf16>, vector<768x256xbf16>, vector<56x256xf32> -> vector<56x256xf32>
    %c0_3 = arith.constant 0 : index
    %c0_4 = arith.constant 0 : index
    %3 = vector.load %arg3[%c0_3, %c0_4] : memref<1x256xf32, #tpu.memory_space<vmem>>, vector<1x256xf32>
    %4 = vector.broadcast %3 : vector<1x256xf32> to vector<56x256xf32>
    %5 = arith.addf %2, %4 : vector<56x256xf32>
    %cst_5 = arith.constant 0.000000e+00 : f32
    %6 = vector.broadcast %cst_5 : f32 to vector<56x256xf32>
    %7 = arith.maximumf %5, %6 : vector<56x256xf32>
    %8 = arith.truncf %7 : vector<56x256xf32> to vector<56x256xbf16>
    %c0_6 = arith.constant 0 : index
    %c0_7 = arith.constant 0 : index
    %9 = vector.load %arg4[%c0_6, %c0_7] : memref<56x256xbf16, #tpu.memory_space<vmem>>, vector<56x256xbf16>
    tpu.vector_store %arg4[%c0_6, %c0_7], %8 {strides = array<i32>} : memref<56x256xbf16, #tpu.memory_space<vmem>>, vector<56x256xbf16>,
    return
  }
  func.func @transform_0(%arg0: i32) -> (i32, i32) {
    %c0_i32 = arith.constant 0 : i32
    %c0_i32_0 = arith.constant 0 : i32
    return %arg0, %c0_i32 : i32, i32
  }
  func.func @transform_1(%arg0: i32) -> (i32, i32) {
    %c0_i32 = arith.constant 0 : i32
    %c0_i32_0 = arith.constant 0 : i32
    %c0_i32_1 = arith.constant 0 : i32
    return %c0_i32, %c0_i32_0 : i32, i32
  }
  func.func @transform_2(%arg0: i32) -> (i32, i32) {
    %c0_i32 = arith.constant 0 : i32
    %c0_i32_0 = arith.constant 0 : i32
    %c0_i32_1 = arith.constant 0 : i32
    return %c0_i32, %c0_i32_0 : i32, i32
  }
  func.func @transform_3(%arg0: i32) -> (i32, i32) {
    %c0_i32 = arith.constant 0 : i32
    %c0_i32_0 = arith.constant 0 : i32
    return %arg0, %c0_i32 : i32, i32
  }
}

module attributes {stable_mosaic.version = 11 : i64} {
  func.func @_maxpool9_kernel(%arg0: i32, %arg1: memref<8x256xbf16, #tpu.memory_space<vmem>>, %arg2: memref<8x256xbf16, #tpu.memory_space<vmem>>, %arg3: memref<8x256xbf16, #tpu.memory_space<vmem>>, %arg4: memref<8x256xbf16, #tpu.memory_space<vmem>>, %arg5: memref<8x256xbf16, #tpu.memory_space<vmem>>, %arg6: memref<8x256xbf16, #tpu.memory_space<vmem>>, %arg7: memref<8x256xbf16, #tpu.memory_space<vmem>>, %arg8: memref<8x256xbf16, #tpu.memory_space<vmem>>, %arg9: memref<8x256xbf16, #tpu.memory_space<vmem>>, %arg10: memref<8x256xbf16, #tpu.memory_space<vmem>>) attributes {dimension_semantics = [#tpu.dimension_semantics<parallel>], iteration_bounds = array<i64: 1>, scalar_prefetch = 0 : i64, scratch_operands = 0 : i64, tpu.core_type = #tpu.core_type<tc>, window_params = [{transform_indices = @transform_0, window_bounds = array<i64: 8, 256>}, {transform_indices = @transform_1, window_bounds = array<i64: 8, 256>}, {transform_indices = @transform_2, window_bounds = array<i64: 8, 256>}, {transform_indices = @transform_3, window_bounds = array<i64: 8, 256>}, {transform_indices = @transform_4, window_bounds = array<i64: 8, 256>}, {transform_indices = @transform_5, window_bounds = array<i64: 8, 256>}, {transform_indices = @transform_6, window_bounds = array<i64: 8, 256>}, {transform_indices = @transform_7, window_bounds = array<i64: 8, 256>}, {transform_indices = @transform_8, window_bounds = array<i64: 8, 256>}, {transform_indices = @transform_9, window_bounds = array<i64: 8, 256>}]} {
    %c0 = arith.constant 0 : index
    %c0_0 = arith.constant 0 : index
    %0 = vector.load %arg1[%c0, %c0_0] : memref<8x256xbf16, #tpu.memory_space<vmem>>, vector<8x256xbf16>
    %c0_1 = arith.constant 0 : index
    %c0_2 = arith.constant 0 : index
    %1 = vector.load %arg2[%c0_1, %c0_2] : memref<8x256xbf16, #tpu.memory_space<vmem>>, vector<8x256xbf16>
    %2 = arith.maximumf %0, %1 : vector<8x256xbf16>
    %c0_3 = arith.constant 0 : index
    %c0_4 = arith.constant 0 : index
    %3 = vector.load %arg3[%c0_3, %c0_4] : memref<8x256xbf16, #tpu.memory_space<vmem>>, vector<8x256xbf16>
    %4 = arith.maximumf %2, %3 : vector<8x256xbf16>
    %c0_5 = arith.constant 0 : index
    %c0_6 = arith.constant 0 : index
    %5 = vector.load %arg4[%c0_5, %c0_6] : memref<8x256xbf16, #tpu.memory_space<vmem>>, vector<8x256xbf16>
    %6 = arith.maximumf %4, %5 : vector<8x256xbf16>
    %c0_7 = arith.constant 0 : index
    %c0_8 = arith.constant 0 : index
    %7 = vector.load %arg5[%c0_7, %c0_8] : memref<8x256xbf16, #tpu.memory_space<vmem>>, vector<8x256xbf16>
    %8 = arith.maximumf %6, %7 : vector<8x256xbf16>
    %c0_9 = arith.constant 0 : index
    %c0_10 = arith.constant 0 : index
    %9 = vector.load %arg6[%c0_9, %c0_10] : memref<8x256xbf16, #tpu.memory_space<vmem>>, vector<8x256xbf16>
    %10 = arith.maximumf %8, %9 : vector<8x256xbf16>
    %c0_11 = arith.constant 0 : index
    %c0_12 = arith.constant 0 : index
    %11 = vector.load %arg7[%c0_11, %c0_12] : memref<8x256xbf16, #tpu.memory_space<vmem>>, vector<8x256xbf16>
    %12 = arith.maximumf %10, %11 : vector<8x256xbf16>
    %c0_13 = arith.constant 0 : index
    %c0_14 = arith.constant 0 : index
    %13 = vector.load %arg8[%c0_13, %c0_14] : memref<8x256xbf16, #tpu.memory_space<vmem>>, vector<8x256xbf16>
    %14 = arith.maximumf %12, %13 : vector<8x256xbf16>
    %c0_15 = arith.constant 0 : index
    %c0_16 = arith.constant 0 : index
    %15 = vector.load %arg9[%c0_15, %c0_16] : memref<8x256xbf16, #tpu.memory_space<vmem>>, vector<8x256xbf16>
    %16 = arith.maximumf %14, %15 : vector<8x256xbf16>
    %c0_17 = arith.constant 0 : index
    %c0_18 = arith.constant 0 : index
    %17 = vector.load %arg10[%c0_17, %c0_18] : memref<8x256xbf16, #tpu.memory_space<vmem>>, vector<8x256xbf16>
    tpu.vector_store %arg10[%c0_17, %c0_18], %16 {strides = array<i32>} : memref<8x256xbf16, #tpu.memory_space<vmem>>, vector<8x256xbf16>,
    return
  }
  func.func @transform_0(%arg0: i32) -> (i32, i32) {
    %c0_i32 = arith.constant 0 : i32
    %c0_i32_0 = arith.constant 0 : i32
    return %arg0, %c0_i32 : i32, i32
  }
  func.func @transform_1(%arg0: i32) -> (i32, i32) {
    %c0_i32 = arith.constant 0 : i32
    %c0_i32_0 = arith.constant 0 : i32
    return %arg0, %c0_i32 : i32, i32
  }
  func.func @transform_2(%arg0: i32) -> (i32, i32) {
    %c0_i32 = arith.constant 0 : i32
    %c0_i32_0 = arith.constant 0 : i32
    return %arg0, %c0_i32 : i32, i32
  }
  func.func @transform_3(%arg0: i32) -> (i32, i32) {
    %c0_i32 = arith.constant 0 : i32
    %c0_i32_0 = arith.constant 0 : i32
    return %arg0, %c0_i32 : i32, i32
  }
  func.func @transform_4(%arg0: i32) -> (i32, i32) {
    %c0_i32 = arith.constant 0 : i32
    %c0_i32_0 = arith.constant 0 : i32
    return %arg0, %c0_i32 : i32, i32
  }
  func.func @transform_5(%arg0: i32) -> (i32, i32) {
    %c0_i32 = arith.constant 0 : i32
    %c0_i32_0 = arith.constant 0 : i32
    return %arg0, %c0_i32 : i32, i32
  }
  func.func @transform_6(%arg0: i32) -> (i32, i32) {
    %c0_i32 = arith.constant 0 : i32
    %c0_i32_0 = arith.constant 0 : i32
    return %arg0, %c0_i32 : i32, i32
  }
  func.func @transform_7(%arg0: i32) -> (i32, i32) {
    %c0_i32 = arith.constant 0 : i32
    %c0_i32_0 = arith.constant 0 : i32
    return %arg0, %c0_i32 : i32, i32
  }
  func.func @transform_8(%arg0: i32) -> (i32, i32) {
    %c0_i32 = arith.constant 0 : i32
    %c0_i32_0 = arith.constant 0 : i32
    return %arg0, %c0_i32 : i32, i32
  }
  func.func @transform_9(%arg0: i32) -> (i32, i32) {
    %c0_i32 = arith.constant 0 : i32
    %c0_i32_0 = arith.constant 0 : i32
    return %arg0, %c0_i32 : i32, i32
  }
}

</mosaic_0001>

<bundles_post_ra>
// kernel: incept_init_block.7
= control target key start
LH: loop header
LB: loop body
LE: loop exit
PB: predicated region body
PF: predicated region fallthrough
CT: control target
= control target key end

     0   :  { %s1821_s12 = smov 0   ;;  %s2020_s0 = inlined_call_operand.vmem [shape: bf16[1024,32], index: 0, kind: input, shape index: {}]   ;;  %s2021_s1 = inlined_call_operand.vmem [shape: bf16[32,128], index: 1, kind: input, shape index: {}]   ;;  %s2022_s2 = inlined_call_operand.vmem [shape: f32[1,128], index: 2, kind: input, shape index: {}]   ;;  %s2023_s3 = inlined_call_operand.vmem [shape: bf16[1024,128], index: 3, kind: output, shape index: {}]  }
   0x1 LB: > { %s1248_s13 = sadd.s32 4294967295, %s1799_s12   ;;  %p1252_p0 = scmp.ge.s32.totalorder %s1799_s12, 1  ;;  %s1799_s12 = sphi %s1821_s12, %s13_s12  }
   0x2   : > { %p138_p1 = scmp.lt.s32.totalorder %s1799_s12, 3 }
   0x4   : > { %p139_p2 = pnand %p1252_p0, %p138_p1 }
   0x5   : > { %v1759_v0 = vld [vmem:[%s2021_s1] sm:$0xff] (!%p139_p2)   ;;  %s1253_s16 = sshll.u32 (!%p139_p2), %s1248_s13, 6  ;;  %v1760_v1 = vld [vmem:[%s2021_s1 + $0x8] sm:$0xff] (!%p139_p2)   ;;  %vm422_vm0 = vcmask (!%p139_p2), 261120  }
   0x6   : > { %142 = sbr.rel (%p139_p2) target bundleno = 297 (0x129), region = 32  ;;  %p163_p3 = scmp.lt.s32.totalorder (!%p139_p2), %s1253_s16, 127  ;;  %1679 = vmatprep.subr.bf16.mxu0 (!%p139_p2), %v1759_v0  ;;  %1747 = vmatprep.subr.bf16.mxu1 (!%p139_p2), %v1759_v0  ;;  %v1912_v34 = vld [vmem:[%s2022_s2] ss:$0 sm:$0xff] (!%p139_p2) }
   0x7   : > { %1680 = vmatpush3.bf16.msra.mxu0 (!%p139_p2), %v1759_v0  ;;  %1749 = vmatpush3.bf16.msra.mxu1 (!%p139_p2), %v1759_v0 }
   0x8   : > { %1681 = vmatprep.subr.bf16.mxu0 (!%p139_p2), %v1760_v1  ;;  %1748 = vmatprep.subr.bf16.mxu1 (!%p139_p2), %v1760_v1 }
   0xb   : > { %1682 = vmatpush3.bf16.msra.mxu0 (!%p139_p2), %v1760_v1  ;;  %1750 = vmatpush3.bf16.msra.mxu1 (!%p139_p2), %v1760_v1 }
   0xd   : > { %s2025_s16 = smov (!%p163_p3, %s1253_s16), 127 }
   0xe   : > { %s1254_s19 = sshll.u32 %s2025_s16, 2 }
   0xf   : > { %s1843_s22 = scalar_lea.vmem %s2020_s0, %s1254_s19  ;;  %s1927_s27 = scalar_lea.vmem %s2023_s3, %s1254_s19 }
  0x10   : > { %v1761_v2 = vld [vmem:[%s1843_s22] sm:$0xff]   ;;  %v1763_v4 = vld [vmem:[%s1843_s22 + $0x8] sm:$0xff]   ;;  %v1765_v6 = vld [vmem:[%s1843_s22 + $0x10] sm:$0xff]  }
  0x11   : > { %v1762_v3 = vld [vmem:[%s1843_s22 + $0x80] sm:$0xff]   ;;  %1683 = vmatprep.mubr.msk.bf16.mxu0 %vm422_vm0, %v1761_v2  ;;  %v1764_v5 = vld [vmem:[%s1843_s22 + $0x88] sm:$0xff]   ;;  %v1766_v7 = vld [vmem:[%s1843_s22 + $0x90] sm:$0xff]  }
  0x12   : > { %1715 = vmatprep.mubr.msk.bf16.mxu1 %vm422_vm0, %v1762_v3  ;;  %1684 = vmatmul.mubr.msk.bf16.vlgmr.msra.gmra.mrb[0].mxu0 %vm422_vm0, %v1763_v4  ;;  %v1767_v8 = vld [vmem:[%s1843_s22 + $0x18] sm:$0xff]   ;;  %v1769_v10 = vld [vmem:[%s1843_s22 + $0x20] sm:$0xff]   ;;  %v1771_v12 = vld [vmem:[%s1843_s22 + $0x28] sm:$0xff]  }
  0x13   : > { %1716 = vmatmul.mubr.msk.bf16.vlgmr.msra.gmra.mrb[0].mxu1 %vm422_vm0, %v1764_v5  ;;  %1687 = vmatprep.mubr.msk.bf16.mxu0 %vm422_vm0, %v1765_v6  ;;  %v1768_v9 = vld [vmem:[%s1843_s22 + $0x98] sm:$0xff]   ;;  %v1770_v11 = vld [vmem:[%s1843_s22 + $0xa0] sm:$0xff]   ;;  %v1772_v13 = vld [vmem:[%s1843_s22 + $0xa8] sm:$0xff]  }
  0x14   : > { %1719 = vmatprep.mubr.msk.bf16.mxu1 %vm422_vm0, %v1766_v7  ;;  %v1773_v14 = vld [vmem:[%s1843_s22 + $0x30] sm:$0xff]   ;;  %v1775_v16 = vld [vmem:[%s1843_s22 + $0x38] sm:$0xff]   ;;  %v1777_v18 = vld [vmem:[%s1843_s22 + $0x40] sm:$0xff]  }
  0x15   : > { %v1774_v15 = vld [vmem:[%s1843_s22 + $0xb0] sm:$0xff]   ;;  %v1776_v17 = vld [vmem:[%s1843_s22 + $0xb8] sm:$0xff]   ;;  %v1778_v19 = vld [vmem:[%s1843_s22 + $0xc0] sm:$0xff]  }
  0x16   : > { %v1779_v20 = vld [vmem:[%s1843_s22 + $0x48] sm:$0xff]   ;;  %v1781_v22 = vld [vmem:[%s1843_s22 + $0x50] sm:$0xff]   ;;  %v1783_v24 = vld [vmem:[%s1843_s22 + $0x58] sm:$0xff]  }
  0x17   : > { %v1780_v21 = vld [vmem:[%s1843_s22 + $0xc8] sm:$0xff]   ;;  %v1782_v23 = vld [vmem:[%s1843_s22 + $0xd0] sm:$0xff]   ;;  %v1784_v25 = vld [vmem:[%s1843_s22 + $0xd8] sm:$0xff]  }
  0x18   : > { %v1785_v26 = vld [vmem:[%s1843_s22 + $0x60] sm:$0xff]   ;;  %v1787_v28 = vld [vmem:[%s1843_s22 + $0x68] sm:$0xff]   ;;  %v1789_v30 = vld [vmem:[%s1843_s22 + $0x70] sm:$0xff]  }
  0x19   : > { %v1786_v27 = vld [vmem:[%s1843_s22 + $0xe0] sm:$0xff]   ;;  %v1788_v29 = vld [vmem:[%s1843_s22 + $0xe8] sm:$0xff]   ;;  %v1790_v31 = vld [vmem:[%s1843_s22 + $0xf0] sm:$0xff]  }
  0x1a   : > { %1688 = vmatmul.mubr.msk.bf16.gmra.mrb[4].mxu0 %vm422_vm0, %v1767_v8  ;;  %v1791_v32 = vld [vmem:[%s1843_s22 + $0x78] sm:$0xff]  }
  0x1b   : > { %1720 = vmatmul.mubr.msk.bf16.gmra.mrb[4].mxu1 %vm422_vm0, %v1768_v9  ;;  %1691 = vmatprep.mubr.msk.bf16.mxu0 %vm422_vm0, %v1769_v10  ;;  %v1792_v33 = vld [vmem:[%s1843_s22 + $0xf8] sm:$0xff]  }
  0x1c   : > { %1723 = vmatprep.mubr.msk.bf16.mxu1 %vm422_vm0, %v1770_v11 }
  0x22   : > { %1692 = vmatmul.mubr.msk.bf16.gmra.mrb[8].mxu0 %vm422_vm0, %v1771_v12 }
  0x23   : > { %1724 = vmatmul.mubr.msk.bf16.gmra.mrb[8].mxu1 %vm422_vm0, %v1772_v13  ;;  %1695 = vmatprep.mubr.msk.bf16.mxu0 %vm422_vm0, %v1773_v14 }
  0x24   : > { %1727 = vmatprep.mubr.msk.bf16.mxu1 %vm422_vm0, %v1774_v15 }
  0x2a   : > { %1696 = vmatmul.mubr.msk.bf16.gmra.mrb[12].mxu0 %vm422_vm0, %v1775_v16 }
  0x2b   : > { %1728 = vmatmul.mubr.msk.bf16.gmra.mrb[12].mxu1 %vm422_vm0, %v1776_v17  ;;  %1699 = vmatprep.mubr.msk.bf16.mxu0 %vm422_vm0, %v1777_v18 }
  0x2c   : > { %1731 = vmatprep.mubr.msk.bf16.mxu1 %vm422_vm0, %v1778_v19 }
  0x32   : > { %1700 = vmatmul.mubr.msk.bf16.gmra.mrb[16].mxu0 %vm422_vm0, %v1779_v20 }
  0x33   : > { %1732 = vmatmul.mubr.msk.bf16.gmra.mrb[16].mxu1 %vm422_vm0, %v1780_v21  ;;  %1703 = vmatprep.mubr.msk.bf16.mxu0 %vm422_vm0, %v1781_v22 }
  0x34   : > { %1735 = vmatprep.mubr.msk.bf16.mxu1 %vm422_vm0, %v1782_v23 }
  0x3a   : > { %1704 = vmatmul.mubr.msk.bf16.gmra.mrb[20].mxu0 %vm422_vm0, %v1783_v24 }
  0x3b   : > { %1736 = vmatmul.mubr.msk.bf16.gmra.mrb[20].mxu1 %vm422_vm0, %v1784_v25  ;;  %1707 = vmatprep.mubr.msk.bf16.mxu0 %vm422_vm0, %v1785_v26 }
  0x3c   : > { %1739 = vmatprep.mubr.msk.bf16.mxu1 %vm422_vm0, %v1786_v27 }
  0x42   : > { %1708 = vmatmul.mubr.msk.bf16.gmra.mrb[24].mxu0 %vm422_vm0, %v1787_v28 }
  0x43   : > { %1740 = vmatmul.mubr.msk.bf16.gmra.mrb[24].mxu1 %vm422_vm0, %v1788_v29  ;;  %1711 = vmatprep.mubr.msk.bf16.mxu0 %vm422_vm0, %v1789_v30 }
  0x44   : > { %1743 = vmatprep.mubr.msk.bf16.mxu1 %vm422_vm0, %v1790_v31 }
  0x4a   : > { %1712 = vmatmul.mubr.msk.bf16.gmra.mrb[28].mxu0 %vm422_vm0, %v1791_v32 }
  0x4b   : > { %1744 = vmatmul.mubr.msk.bf16.gmra.mrb[28].mxu1 %vm422_vm0, %v1792_v33 }
  0xe5   : > { %v1685_v35 = vpop.f32.mrb[0].mxu0 }
  0xe6   : > { %v562_v36 = vadd.f32 %v1685_v35, %v1912_v34  ;;  %v1717_v37 = vpop.f32.mrb[0].mxu1  ;;  %v553_v38 = vpop.f32.mrb[1].mxu0 }
  0xe7   : > { %v690_v39 = vadd.f32 %v1717_v37, %v1912_v34  ;;  %v554_v40 = vadd.f32 %v1912_v34, %v553_v38  ;;  %v681_v41 = vpop.f32.mrb[1].mxu1  ;;  %v1686_v42 = vpop.f32.mrb[2].mxu0 }
  0xe8   : > { %v682_v43 = vadd.f32 %v1912_v34, %v681_v41  ;;  %v565_v44 = vadd.f32 %v1686_v42, %v1912_v34  ;;  %v1718_v45 = vpop.f32.mrb[2].mxu1  ;;  %v556_v46 = vpop.f32.mrb[3].mxu0  ;;  %v810_v50 = vmax.f32 %v562_v36, 0.0 }
  0xe9   : > { %v693_v47 = vadd.f32 %v1718_v45, %v1912_v34  ;;  %v557_v48 = vadd.f32 %v1912_v34, %v556_v46  ;;  %v684_v49 = vpop.f32.mrb[3].mxu1  ;;  %v842_v53 = vmax.f32 %v690_v39, 0.0  ;;  %v808_v54 = vmax.f32 %v554_v40, 0.0 }
  0xea   : > { %v811_v51 = vmax.f32 %v565_v44, 0.0  ;;  %v685_v52 = vadd.f32 %v1912_v34, %v684_v49  ;;  %v840_v57 = vmax.f32 %v682_v43, 0.0 }
  0xeb   : > { %v843_v55 = vmax.f32 %v693_v47, 0.0  ;;  %v809_v56 = vmax.f32 %v557_v48, 0.0 }
  0xec   : > { %v1462_v58 = vpack.c.bf16 %v811_v51, %v810_v50  ;;  %v841_v59 = vmax.f32 %v685_v52, 0.0 }
  0xed   : > { %v1542_v60 = vpack.c.bf16 %v843_v55, %v842_v53  ;;  %v1457_v61 = vpack.c.bf16 %v809_v56, %v808_v54  ;;  %v1689_v62 = vpop.f32.mrb[4].mxu0 }
  0xee   : > { %1614 = vst [vmem:[%s1927_s27 + $0x8] sm:$0xff] %v1462_v58   ;;  %v1537_v63 = vpack.c.bf16 %v841_v59, %v840_v57  ;;  %v578_v0 = vadd.f32 %v1689_v62, %v1912_v34  ;;  %v1721_v1 = vpop.f32.mrb[4].mxu1  ;;  %v569_v2 = vpop.f32.mrb[5].mxu0 }
  0xef   : > { %1630 = vst [vmem:[%s1927_s27 + $0x88] sm:$0xff] %v1542_v60   ;;  %1458 = vst [vmem:[%s1927_s27] sm:$0xff] %v1457_v61   ;;  %v706_v3 = vadd.f32 %v1721_v1, %v1912_v34  ;;  %v570_v4 = vadd.f32 %v1912_v34, %v569_v2  ;;  %v697_v5 = vpop.f32.mrb[5].mxu1  ;;  %v1690_v6 = vpop.f32.mrb[6].mxu0 }
  0xf0   : > { %1629 = vst [vmem:[%s1927_s27 + $0x80] sm:$0xff] %v1537_v63   ;;  %v698_v7 = vadd.f32 %v1912_v34, %v697_v5  ;;  %v581_v8 = vadd.f32 %v1690_v6, %v1912_v34  ;;  %v1722_v9 = vpop.f32.mrb[6].mxu1  ;;  %v572_v10 = vpop.f32.mrb[7].mxu0  ;;  %v814_v14 = vmax.f32 %v578_v0, 0.0 }
  0xf1   : > { %v709_v11 = vadd.f32 %v1722_v9, %v1912_v34  ;;  %v573_v12 = vadd.f32 %v1912_v34, %v572_v10  ;;  %v700_v13 = vpop.f32.mrb[7].mxu1  ;;  %v846_v17 = vmax.f32 %v706_v3, 0.0  ;;  %v812_v18 = vmax.f32 %v570_v4, 0.0 }
  0xf2   : > { %v815_v15 = vmax.f32 %v581_v8, 0.0  ;;  %v701_v16 = vadd.f32 %v1912_v34, %v700_v13  ;;  %v844_v21 = vmax.f32 %v698_v7, 0.0 }
  0xf3   : > { %v847_v19 = vmax.f32 %v709_v11, 0.0  ;;  %v813_v20 = vmax.f32 %v573_v12, 0.0 }
  0xf4   : > { %v1472_v22 = vpack.c.bf16 %v815_v15, %v814_v14  ;;  %v845_v23 = vmax.f32 %v701_v16, 0.0 }
  0xf5   : > { %v1552_v24 = vpack.c.bf16 %v847_v19, %v846_v17  ;;  %v1467_v25 = vpack.c.bf16 %v813_v20, %v812_v18  ;;  %v1693_v26 = vpop.f32.mrb[8].mxu0 }
  0xf6   : > { %1616 = vst [vmem:[%s1927_s27 + $0x18] sm:$0xff] %v1472_v22   ;;  %v1547_v27 = vpack.c.bf16 %v845_v23, %v844_v21  ;;  %v594_v28 = vadd.f32 %v1693_v26, %v1912_v34  ;;  %v1725_v29 = vpop.f32.mrb[8].mxu1  ;;  %v585_v30 = vpop.f32.mrb[9].mxu0 }
  0xf7   : > { %1632 = vst [vmem:[%s1927_s27 + $0x98] sm:$0xff] %v1552_v24   ;;  %1615 = vst [vmem:[%s1927_s27 + $0x10] sm:$0xff] %v1467_v25   ;;  %v722_v31 = vadd.f32 %v1725_v29, %v1912_v34  ;;  %v586_v32 = vadd.f32 %v1912_v34, %v585_v30  ;;  %v713_v33 = vpop.f32.mrb[9].mxu1  ;;  %v1694_v35 = vpop.f32.mrb[10].mxu0 }
  0xf8   : > { %1631 = vst [vmem:[%s1927_s27 + $0x90] sm:$0xff] %v1547_v27   ;;  %v714_v36 = vadd.f32 %v1912_v34, %v713_v33  ;;  %v597_v37 = vadd.f32 %v1694_v35, %v1912_v34  ;;  %v1726_v38 = vpop.f32.mrb[10].mxu1  ;;  %v588_v39 = vpop.f32.mrb[11].mxu0  ;;  %v818_v43 = vmax.f32 %v594_v28, 0.0 }
  0xf9   : > { %v725_v40 = vadd.f32 %v1726_v38, %v1912_v34  ;;  %v589_v41 = vadd.f32 %v1912_v34, %v588_v39  ;;  %v716_v42 = vpop.f32.mrb[11].mxu1  ;;  %v850_v46 = vmax.f32 %v722_v31, 0.0  ;;  %v816_v47 = vmax.f32 %v586_v32, 0.0 }
  0xfa   : > { %v819_v44 = vmax.f32 %v597_v37, 0.0  ;;  %v717_v45 = vadd.f32 %v1912_v34, %v716_v42  ;;  %v848_v50 = vmax.f32 %v714_v36, 0.0 }
  0xfb   : > { %v851_v48 = vmax.f32 %v725_v40, 0.0  ;;  %v817_v49 = vmax.f32 %v589_v41, 0.0 }
  0xfc   : > { %v1482_v51 = vpack.c.bf16 %v819_v44, %v818_v43  ;;  %v849_v52 = vmax.f32 %v717_v45, 0.0 }
  0xfd   : > { %v1562_v53 = vpack.c.bf16 %v851_v48, %v850_v46  ;;  %v1477_v54 = vpack.c.bf16 %v817_v49, %v816_v47  ;;  %v1697_v55 = vpop.f32.mrb[12].mxu0 }
  0xfe   : > { %1618 = vst [vmem:[%s1927_s27 + $0x28] sm:$0xff] %v1482_v51   ;;  %v1557_v56 = vpack.c.bf16 %v849_v52, %v848_v50  ;;  %v610_v57 = vadd.f32 %v1697_v55, %v1912_v34  ;;  %v1729_v58 = vpop.f32.mrb[12].mxu1  ;;  %v601_v59 = vpop.f32.mrb[13].mxu0 }
  0xff   : > { %1634 = vst [vmem:[%s1927_s27 + $0xa8] sm:$0xff] %v1562_v53   ;;  %1617 = vst [vmem:[%s1927_s27 + $0x20] sm:$0xff] %v1477_v54   ;;  %v738_v60 = vadd.f32 %v1729_v58, %v1912_v34  ;;  %v602_v61 = vadd.f32 %v1912_v34, %v601_v59  ;;  %v729_v62 = vpop.f32.mrb[13].mxu1  ;;  %v1698_v63 = vpop.f32.mrb[14].mxu0 }
 0x100   : > { %1633 = vst [vmem:[%s1927_s27 + $0xa0] sm:$0xff] %v1557_v56   ;;  %v730_v0 = vadd.f32 %v1912_v34, %v729_v62  ;;  %v613_v1 = vadd.f32 %v1698_v63, %v1912_v34  ;;  %v1730_v2 = vpop.f32.mrb[14].mxu1  ;;  %v604_v3 = vpop.f32.mrb[15].mxu0  ;;  %v822_v7 = vmax.f32 %v610_v57, 0.0 }
 0x101   : > { %v741_v4 = vadd.f32 %v1730_v2, %v1912_v34  ;;  %v605_v5 = vadd.f32 %v1912_v34, %v604_v3  ;;  %v732_v6 = vpop.f32.mrb[15].mxu1  ;;  %v854_v10 = vmax.f32 %v738_v60, 0.0  ;;  %v820_v11 = vmax.f32 %v602_v61, 0.0 }
 0x102   : > { %v823_v8 = vmax.f32 %v613_v1, 0.0  ;;  %v733_v9 = vadd.f32 %v1912_v34, %v732_v6  ;;  %v852_v14 = vmax.f32 %v730_v0, 0.0 }
 0x103   : > { %v855_v12 = vmax.f32 %v741_v4, 0.0  ;;  %v821_v13 = vmax.f32 %v605_v5, 0.0 }
 0x104   : > { %v1492_v15 = vpack.c.bf16 %v823_v8, %v822_v7  ;;  %v853_v16 = vmax.f32 %v733_v9, 0.0 }
 0x105   : > { %v1572_v17 = vpack.c.bf16 %v855_v12, %v854_v10  ;;  %v1487_v18 = vpack.c.bf16 %v821_v13, %v820_v11  ;;  %v1701_v19 = vpop.f32.mrb[16].mxu0 }
 0x106   : > { %1620 = vst [vmem:[%s1927_s27 + $0x38] sm:$0xff] %v1492_v15   ;;  %v1567_v20 = vpack.c.bf16 %v853_v16, %v852_v14  ;;  %v626_v21 = vadd.f32 %v1701_v19, %v1912_v34  ;;  %v1733_v22 = vpop.f32.mrb[16].mxu1  ;;  %v617_v23 = vpop.f32.mrb[17].mxu0 }
 0x107   : > { %1636 = vst [vmem:[%s1927_s27 + $0xb8] sm:$0xff] %v1572_v17   ;;  %1619 = vst [vmem:[%s1927_s27 + $0x30] sm:$0xff] %v1487_v18   ;;  %v754_v24 = vadd.f32 %v1733_v22, %v1912_v34  ;;  %v618_v25 = vadd.f32 %v1912_v34, %v617_v23  ;;  %v745_v26 = vpop.f32.mrb[17].mxu1  ;;  %v1702_v27 = vpop.f32.mrb[18].mxu0 }
 0x108   : > { %1635 = vst [vmem:[%s1927_s27 + $0xb0] sm:$0xff] %v1567_v20   ;;  %v746_v28 = vadd.f32 %v1912_v34, %v745_v26  ;;  %v629_v29 = vadd.f32 %v1702_v27, %v1912_v34  ;;  %v1734_v30 = vpop.f32.mrb[18].mxu1  ;;  %v620_v31 = vpop.f32.mrb[19].mxu0  ;;  %v826_v36 = vmax.f32 %v626_v21, 0.0 }
 0x109   : > { %v757_v32 = vadd.f32 %v1734_v30, %v1912_v34  ;;  %v621_v33 = vadd.f32 %v1912_v34, %v620_v31  ;;  %v748_v35 = vpop.f32.mrb[19].mxu1  ;;  %v858_v39 = vmax.f32 %v754_v24, 0.0  ;;  %v824_v40 = vmax.f32 %v618_v25, 0.0 }
 0x10a   : > { %v827_v37 = vmax.f32 %v629_v29, 0.0  ;;  %v749_v38 = vadd.f32 %v1912_v34, %v748_v35  ;;  %v856_v43 = vmax.f32 %v746_v28, 0.0 }
 0x10b   : > { %v859_v41 = vmax.f32 %v757_v32, 0.0  ;;  %v825_v42 = vmax.f32 %v621_v33, 0.0 }
 0x10c   : > { %v1502_v44 = vpack.c.bf16 %v827_v37, %v826_v36  ;;  %v857_v45 = vmax.f32 %v749_v38, 0.0 }
 0x10d   : > { %v1582_v46 = vpack.c.bf16 %v859_v41, %v858_v39  ;;  %v1497_v47 = vpack.c.bf16 %v825_v42, %v824_v40  ;;  %v1705_v48 = vpop.f32.mrb[20].mxu0 }
 0x10e   : > { %1622 = vst [vmem:[%s1927_s27 + $0x48] sm:$0xff] %v1502_v44   ;;  %v1577_v49 = vpack.c.bf16 %v857_v45, %v856_v43  ;;  %v642_v50 = vadd.f32 %v1705_v48, %v1912_v34  ;;  %v1737_v51 = vpop.f32.mrb[20].mxu1  ;;  %v633_v52 = vpop.f32.mrb[21].mxu0 }
 0x10f   : > { %1638 = vst [vmem:[%s1927_s27 + $0xc8] sm:$0xff] %v1582_v46   ;;  %1621 = vst [vmem:[%s1927_s27 + $0x40] sm:$0xff] %v1497_v47   ;;  %v770_v53 = vadd.f32 %v1737_v51, %v1912_v34  ;;  %v634_v54 = vadd.f32 %v1912_v34, %v633_v52  ;;  %v761_v55 = vpop.f32.mrb[21].mxu1  ;;  %v1706_v56 = vpop.f32.mrb[22].mxu0 }
 0x110   : > { %1637 = vst [vmem:[%s1927_s27 + $0xc0] sm:$0xff] %v1577_v49   ;;  %v762_v57 = vadd.f32 %v1912_v34, %v761_v55  ;;  %v645_v58 = vadd.f32 %v1706_v56, %v1912_v34  ;;  %v1738_v59 = vpop.f32.mrb[22].mxu1  ;;  %v636_v60 = vpop.f32.mrb[23].mxu0  ;;  %v830_v0 = vmax.f32 %v642_v50, 0.0 }
 0x111   : > { %v773_v61 = vadd.f32 %v1738_v59, %v1912_v34  ;;  %v637_v62 = vadd.f32 %v1912_v34, %v636_v60  ;;  %v764_v63 = vpop.f32.mrb[23].mxu1  ;;  %v862_v3 = vmax.f32 %v770_v53, 0.0  ;;  %v828_v4 = vmax.f32 %v634_v54, 0.0 }
 0x112   : > { %v831_v1 = vmax.f32 %v645_v58, 0.0  ;;  %v765_v2 = vadd.f32 %v1912_v34, %v764_v63  ;;  %v860_v7 = vmax.f32 %v762_v57, 0.0 }
 0x113   : > { %v863_v5 = vmax.f32 %v773_v61, 0.0  ;;  %v829_v6 = vmax.f32 %v637_v62, 0.0 }
 0x114   : > { %v1512_v8 = vpack.c.bf16 %v831_v1, %v830_v0  ;;  %v861_v9 = vmax.f32 %v765_v2, 0.0 }
 0x115   : > { %v1592_v10 = vpack.c.bf16 %v863_v5, %v862_v3  ;;  %v1507_v11 = vpack.c.bf16 %v829_v6, %v828_v4  ;;  %v1709_v12 = vpop.f32.mrb[24].mxu0 }
 0x116   : > { %1624 = vst [vmem:[%s1927_s27 + $0x58] sm:$0xff] %v1512_v8   ;;  %v1587_v13 = vpack.c.bf16 %v861_v9, %v860_v7  ;;  %v658_v14 = vadd.f32 %v1709_v12, %v1912_v34  ;;  %v1741_v15 = vpop.f32.mrb[24].mxu1  ;;  %v649_v16 = vpop.f32.mrb[25].mxu0 }
 0x117   : > { %1640 = vst [vmem:[%s1927_s27 + $0xd8] sm:$0xff] %v1592_v10   ;;  %1623 = vst [vmem:[%s1927_s27 + $0x50] sm:$0xff] %v1507_v11   ;;  %v786_v17 = vadd.f32 %v1741_v15, %v1912_v34  ;;  %v650_v18 = vadd.f32 %v1912_v34, %v649_v16  ;;  %v777_v19 = vpop.f32.mrb[25].mxu1  ;;  %v1710_v20 = vpop.f32.mrb[26].mxu0 }
 0x118   : > { %1639 = vst [vmem:[%s1927_s27 + $0xd0] sm:$0xff] %v1587_v13   ;;  %v778_v21 = vadd.f32 %v1912_v34, %v777_v19  ;;  %v661_v22 = vadd.f32 %v1710_v20, %v1912_v34  ;;  %v1742_v23 = vpop.f32.mrb[26].mxu1  ;;  %v652_v24 = vpop.f32.mrb[27].mxu0  ;;  %v834_v28 = vmax.f32 %v658_v14, 0.0 }
 0x119   : > { %v789_v25 = vadd.f32 %v1742_v23, %v1912_v34  ;;  %v653_v26 = vadd.f32 %v1912_v34, %v652_v24  ;;  %v780_v27 = vpop.f32.mrb[27].mxu1  ;;  %v866_v31 = vmax.f32 %v786_v17, 0.0  ;;  %v832_v32 = vmax.f32 %v650_v18, 0.0 }
 0x11a   : > { %v835_v29 = vmax.f32 %v661_v22, 0.0  ;;  %v781_v30 = vadd.f32 %v1912_v34, %v780_v27  ;;  %v864_v36 = vmax.f32 %v778_v21, 0.0 }
 0x11b   : > { %v867_v33 = vmax.f32 %v789_v25, 0.0  ;;  %v833_v35 = vmax.f32 %v653_v26, 0.0 }
 0x11c   : > { %v1522_v37 = vpack.c.bf16 %v835_v29, %v834_v28  ;;  %v865_v38 = vmax.f32 %v781_v30, 0.0 }
 0x11d   : > { %v1602_v39 = vpack.c.bf16 %v867_v33, %v866_v31  ;;  %v1517_v40 = vpack.c.bf16 %v833_v35, %v832_v32  ;;  %v1713_v41 = vpop.f32.mrb[28].mxu0 }
 0x11e   : > { %1626 = vst [vmem:[%s1927_s27 + $0x68] sm:$0xff] %v1522_v37   ;;  %v1597_v42 = vpack.c.bf16 %v865_v38, %v864_v36  ;;  %v674_v43 = vadd.f32 %v1713_v41, %v1912_v34  ;;  %v1745_v44 = vpop.f32.mrb[28].mxu1  ;;  %v665_v45 = vpop.f32.mrb[29].mxu0 }
 0x11f   : > { %1642 = vst [vmem:[%s1927_s27 + $0xe8] sm:$0xff] %v1602_v39   ;;  %1625 = vst [vmem:[%s1927_s27 + $0x60] sm:$0xff] %v1517_v40   ;;  %v802_v46 = vadd.f32 %v1745_v44, %v1912_v34  ;;  %v666_v47 = vadd.f32 %v1912_v34, %v665_v45  ;;  %v793_v48 = vpop.f32.mrb[29].mxu1  ;;  %v1714_v49 = vpop.f32.mrb[30].mxu0 }
 0x120   : > { %1641 = vst [vmem:[%s1927_s27 + $0xe0] sm:$0xff] %v1597_v42   ;;  %v794_v50 = vadd.f32 %v1912_v34, %v793_v48  ;;  %v677_v51 = vadd.f32 %v1714_v49, %v1912_v34  ;;  %v1746_v52 = vpop.f32.mrb[30].mxu1  ;;  %v668_v53 = vpop.f32.mrb[31].mxu0  ;;  %v838_v57 = vmax.f32 %v674_v43, 0.0 }
 0x121   : > { %v805_v54 = vadd.f32 %v1746_v52, %v1912_v34  ;;  %v669_v55 = vadd.f32 %v1912_v34, %v668_v53  ;;  %v796_v56 = vpop.f32.mrb[31].mxu1  ;;  %v870_v60 = vmax.f32 %v802_v46, 0.0  ;;  %v836_v61 = vmax.f32 %v666_v47, 0.0 }
 0x122   : > { %v839_v58 = vmax.f32 %v677_v51, 0.0  ;;  %v797_v59 = vadd.f32 %v1912_v34, %v796_v56  ;;  %v868_v0 = vmax.f32 %v794_v50, 0.0 }
 0x123   : > { %v871_v62 = vmax.f32 %v805_v54, 0.0  ;;  %v837_v63 = vmax.f32 %v669_v55, 0.0 }
 0x124   : > { %v1532_v1 = vpack.c.bf16 %v839_v58, %v838_v57  ;;  %v869_v2 = vmax.f32 %v797_v59, 0.0 }
 0x125   : > { %v1612_v3 = vpack.c.bf16 %v871_v62, %v870_v60  ;;  %v1527_v4 = vpack.c.bf16 %v837_v63, %v836_v61 }
 0x126   : > { %1628 = vst [vmem:[%s1927_s27 + $0x78] sm:$0xff] %v1532_v1   ;;  %v1607_v5 = vpack.c.bf16 %v869_v2, %v868_v0 }
 0x127   : > { %1644 = vst [vmem:[%s1927_s27 + $0xf8] sm:$0xff] %v1612_v3   ;;  %1627 = vst [vmem:[%s1927_s27 + $0x70] sm:$0xff] %v1527_v4  }
 0x128   : > { %1643 = vst [vmem:[%s1927_s27 + $0xf0] sm:$0xff] %v1607_v5  }
 0x129 PF: > { %s13_s12 = sadd.s32 1, %s1799_s12  }
 0x12a   : > { %p10_p4 = scmp.ge.s32.totalorder %s13_s12, 4  }
 0x12c   :  { %12 = sbr.rel (!%p10_p4) target bundleno = 1 (0x1), region = 62 }

// kernel: incept_init_block.8
= control target key start
LH: loop header
LB: loop body
LE: loop exit
PB: predicated region body
PF: predicated region fallthrough
CT: control target
= control target key end

     0   :  { %v2480_v0 = vmov 0   ;;  %v2481_v2 = vmov 0.0   ;;  %vm2482_vm0 = vmmov 0   ;;  %s3064_s1 = inlined_call_operand.vmem [shape: bf16[384,128], index: 1, kind: input, shape index: {}]   ;;  %s3065_s0 = inlined_call_operand.vmem [shape: bf16[456,384], index: 0, kind: input, shape index: {}]   ;;  %s3066_s2 = inlined_call_operand.vmem [shape: f32[1,128], index: 2, kind: input, shape index: {}]   ;;  %s3067_s3 = inlined_call_operand.vmem [shape: bf16[456,128], index: 3, kind: output, shape index: {}]  }
   0x1   :  { %787 = vmatprep.subr.bf16.mxu1 %v2480_v0  ;;  %v2341_v1 = vld [vmem:[%s3064_s1] sm:$0xff]   ;;  %2092 = vmatprep.subr.bf16.mxu0 %v2481_v2  ;;  %v2342_v3 = vld [vmem:[%s3064_s1 + $0x8] sm:$0xff]   ;;  %v2343_v4 = vld [vmem:[%s3064_s1 + $0x10] sm:$0xff]  }
   0x2   :  { %2108 = vmatprep.mubr.msk.bf16.mxu0 %vm2482_vm0, %v2481_v2  ;;  %788 = vmatpush1.bf16.msra.mxu1 %v2341_v1  ;;  %v2349_v5 = vld [vmem:[%s3064_s1 + $0x80] sm:$0xff]   ;;  %v2344_v6 = vld [vmem:[%s3064_s1 + $0x18] sm:$0xff]   ;;  %v2351_v7 = vld [vmem:[%s3064_s1 + $0x88] sm:$0xff]  }
   0x3   :  { %789 = vmatprep.subr.bf16.mxu1 %v2480_v0  ;;  %2093 = vmatpush3.bf16.msra.mxu0 %v2349_v5  ;;  %v2345_v8 = vld [vmem:[%s3064_s1 + $0x20] sm:$0xff]   ;;  %v2353_v9 = vld [vmem:[%s3064_s1 + $0x90] sm:$0xff]   ;;  %v2346_v10 = vld [vmem:[%s3064_s1 + $0x28] sm:$0xff]  }
   0x4   :  { %2094 = vmatprep.subr.bf16.mxu0 %v2481_v2  ;;  %v2355_v11 = vld [vmem:[%s3064_s1 + $0x98] sm:$0xff]   ;;  %v2347_v12 = vld [vmem:[%s3064_s1 + $0x30] sm:$0xff]   ;;  %v2357_v13 = vld [vmem:[%s3064_s1 + $0xa0] sm:$0xff]  }
   0x5   :  { %v2348_v14 = vld [vmem:[%s3064_s1 + $0x38] sm:$0xff]   ;;  %v2367_v15 = vld [vmem:[%s3065_s0 + $0x4] ss:$12 sps:$4 sm:$0xff]   ;;  %v2359_v16 = vld [vmem:[%s3064_s1 + $0xa8] sm:$0xff]  }
   0x6   :  { %790 = vmatpush1.bf16.msra.mxu1 %v2342_v3  ;;  %819 = vmatprep.mubr.bf16.mxu1 %v2367_v15  ;;  %v2350_v17 = vld [vmem:[%s3064_s1 + $0x40] sm:$0xff]   ;;  %v2361_v18 = vld [vmem:[%s3064_s1 + $0xb0] sm:$0xff]   ;;  %v2352_v19 = vld [vmem:[%s3064_s1 + $0x48] sm:$0xff]  }
   0x7   :  { %791 = vmatprep.subr.bf16.mxu1 %v2480_v0  ;;  %2095 = vmatpush3.bf16.msra.mxu0 %v2351_v7  ;;  %v2363_v20 = vld [vmem:[%s3064_s1 + $0xb8] sm:$0xff]   ;;  %v2368_v21 = vld [vmem:[%s3065_s0 + $0x8] ss:$12 sps:$4 sm:$0xff]   ;;  %v2371_v24 = vld [vmem:[%s3065_s0 + $0x20] ss:$12 sps:$4 sm:$0xff]  }
   0x8   :  { %2096 = vmatprep.subr.bf16.mxu0 %v2481_v2  ;;  %v2354_v22 = vld [vmem:[%s3064_s1 + $0x50] sm:$0xff]   ;;  %v2356_v23 = vld [vmem:[%s3064_s1 + $0x58] sm:$0xff]   ;;  %v2358_v25 = vld [vmem:[%s3064_s1 + $0x60] sm:$0xff]  }
   0x9   :  { %v2360_v26 = vld [vmem:[%s3064_s1 + $0x68] sm:$0xff]   ;;  %v2375_v27 = vld [vmem:[%s3065_s0 + $0x38] ss:$12 sps:$4 sm:$0xff]   ;;  %v2362_v28 = vld [vmem:[%s3064_s1 + $0x70] sm:$0xff]  }
   0xa   :  { %792 = vmatpush1.bf16.msra.mxu1 %v2343_v4  ;;  %v2364_v29 = vld [vmem:[%s3064_s1 + $0x78] sm:$0xff]   ;;  %v2365_v30 = vld [vmem:[%s3065_s0] ss:$12 sps:$4 sm:$0xff]   ;;  %v2383_v34 = vld [vmem:[%s3065_s0 + $0x68] ss:$12 sps:$4 sm:$0xff]  }
   0xb   :  { %793 = vmatprep.subr.bf16.mxu1 %v2480_v0  ;;  %2097 = vmatpush3.bf16.msra.mxu0 %v2353_v9  ;;  %v2379_v31 = vld [vmem:[%s3065_s0 + $0x50] ss:$12 sps:$4 sm:$0xff]   ;;  %v2372_v33 = vld [vmem:[%s3065_s0 + $0x18] ss:$12 sps:$4 sm:$0xff]   ;;  %v2373_v35 = vld [vmem:[%s3065_s0 + $0x34] ss:$12 sps:$4 sm:$0xff]  }
   0xc   :  { %2098 = vmatprep.subr.bf16.mxu0 %v2481_v2  ;;  %v2369_v32 = vld [vmem:[%s3065_s0 + $0x1c] ss:$12 sps:$4 sm:$0xff]   ;;  %v2387_v37 = vld [vmem:[%s3065_s0 + $0x80] ss:$12 sps:$4 sm:$0xff]   ;;  %v2391_v40 = vld [vmem:[%s3065_s0 + $0x98] ss:$12 sps:$4 sm:$0xff]  }
   0xd   :  { %v2376_v36 = vld [vmem:[%s3065_s0 + $0x30] ss:$12 sps:$4 sm:$0xff]   ;;  %v2377_v38 = vld [vmem:[%s3065_s0 + $0x4c] ss:$12 sps:$4 sm:$0xff]   ;;  %v2380_v39 = vld [vmem:[%s3065_s0 + $0x48] ss:$12 sps:$4 sm:$0xff]  }
   0xe   :  { %794 = vmatpush1.bf16.msra.mxu1 %v2344_v6  ;;  %v2381_v41 = vld [vmem:[%s3065_s0 + $0x64] ss:$12 sps:$4 sm:$0xff]   ;;  %v2384_v42 = vld [vmem:[%s3065_s0 + $0x60] ss:$12 sps:$4 sm:$0xff]   ;;  %v2385_v44 = vld [vmem:[%s3065_s0 + $0x7c] ss:$12 sps:$4 sm:$0xff]  }
   0xf   :  { %795 = vmatprep.subr.bf16.mxu1 %v2480_v0  ;;  %2099 = vmatpush3.bf16.msra.mxu0 %v2355_v11  ;;  %v2395_v43 = vld [vmem:[%s3065_s0 + $0xb0] ss:$12 sps:$4 sm:$0xff]   ;;  %v2388_v45 = vld [vmem:[%s3065_s0 + $0x78] ss:$12 sps:$4 sm:$0xff]   ;;  %v2399_v46 = vld [vmem:[%s3065_s0 + $0xc8] ss:$12 sps:$4 sm:$0xff]  }
  0x10   :  { %2100 = vmatprep.subr.bf16.mxu0 %v2481_v2  ;;  %v2389_v47 = vld [vmem:[%s3065_s0 + $0x94] ss:$12 sps:$4 sm:$0xff]   ;;  %v2392_v48 = vld [vmem:[%s3065_s0 + $0x90] ss:$12 sps:$4 sm:$0xff]   ;;  %v2393_v50 = vld [vmem:[%s3065_s0 + $0xac] ss:$12 sps:$4 sm:$0xff]  }
  0x11   :  { %v2403_v49 = vld [vmem:[%s3065_s0 + $0xe0] ss:$12 sps:$4 sm:$0xff]   ;;  %v2396_v51 = vld [vmem:[%s3065_s0 + $0xa8] ss:$12 sps:$4 sm:$0xff]   ;;  %v2407_v52 = vld [vmem:[%s3065_s0 + $0xf8] ss:$12 sps:$4 sm:$0xff]  }
  0x12   :  { %796 = vmatpush1.bf16.msra.mxu1 %v2345_v8  ;;  %v2397_v53 = vld [vmem:[%s3065_s0 + $0xc4] ss:$12 sps:$4 sm:$0xff]   ;;  %v2400_v54 = vld [vmem:[%s3065_s0 + $0xc0] ss:$12 sps:$4 sm:$0xff]   ;;  %v2401_v56 = vld [vmem:[%s3065_s0 + $0xdc] ss:$12 sps:$4 sm:$0xff]  }
  0x13   :  { %797 = vmatprep.subr.bf16.mxu1 %v2480_v0  ;;  %2101 = vmatpush3.bf16.msra.mxu0 %v2357_v13  ;;  %v2411_v55 = vld [vmem:[%s3065_s0 + $0x110] ss:$12 sps:$4 sm:$0xff]   ;;  %v2404_v57 = vld [vmem:[%s3065_s0 + $0xd8] ss:$12 sps:$4 sm:$0xff]   ;;  %v2415_v58 = vld [vmem:[%s3065_s0 + $0x128] ss:$12 sps:$4 sm:$0xff]  }
  0x14   :  { %2102 = vmatprep.subr.bf16.mxu0 %v2481_v2  ;;  %v2405_v59 = vld [vmem:[%s3065_s0 + $0xf4] ss:$12 sps:$4 sm:$0xff]   ;;  %v2408_v60 = vld [vmem:[%s3065_s0 + $0xf0] ss:$12 sps:$4 sm:$0xff]   ;;  %v2409_v62 = vld [vmem:[%s3065_s0 + $0x10c] ss:$12 sps:$4 sm:$0xff]  }
  0x15   :  { %v2419_v61 = vld [vmem:[%s3065_s0 + $0x140] ss:$12 sps:$4 sm:$0xff]   ;;  %v2412_v63 = vld [vmem:[%s3065_s0 + $0x108] ss:$12 sps:$4 sm:$0xff]   ;;  %v2413_v1 = vld [vmem:[%s3065_s0 + $0x124] ss:$12 sps:$4 sm:$0xff]  }
  0x16   :  { %798 = vmatpush1.bf16.msra.mxu1 %v2346_v10  ;;  %v2416_v3 = vld [vmem:[%s3065_s0 + $0x120] ss:$12 sps:$4 sm:$0xff]   ;;  %v2427_v4 = vld [vmem:[%s3065_s0 + $0x170] ss:$12 sps:$4 sm:$0xff]   ;;  %v2420_v6 = vld [vmem:[%s3065_s0 + $0x138] ss:$12 sps:$4 sm:$0xff]  }
  0x17   :  { %799 = vmatprep.subr.bf16.mxu1 %v2480_v0  ;;  %2103 = vmatpush3.bf16.msra.mxu0 %v2359_v16  ;;  %v2417_v5 = vld [vmem:[%s3065_s0 + $0x13c] ss:$12 sps:$4 sm:$0xff]   ;;  %v2421_v8 = vld [vmem:[%s3065_s0 + $0x154] ss:$12 sps:$4 sm:$0xff]   ;;  %v2425_v11 = vld [vmem:[%s3065_s0 + $0x16c] ss:$12 sps:$4 sm:$0xff]  }
  0x18   :  { %2104 = vmatprep.subr.bf16.mxu0 %v2481_v2  ;;  %v2431_v7 = vld [vmem:[%s3065_s0 + $0x188] ss:$12 sps:$4 sm:$0xff]   ;;  %v2424_v9 = vld [vmem:[%s3065_s0 + $0x150] ss:$12 sps:$4 sm:$0xff]   ;;  %v2435_v10 = vld [vmem:[%s3065_s0 + $0x1a0] ss:$12 sps:$4 sm:$0xff]  }
  0x19   :  { %v2439_v13 = vld [vmem:[%s3065_s0 + $0x1b8] ss:$12 sps:$4 sm:$0xff]   ;;  %v2432_v15 = vld [vmem:[%s3065_s0 + $0x180] ss:$12 sps:$4 sm:$0xff]   ;;  %v2443_v16 = vld [vmem:[%s3065_s0 + $0x1d0] ss:$12 sps:$4 sm:$0xff]  }
  0x1a   :  { %800 = vmatpush1.bf16.msra.mxu1 %v2347_v12  ;;  %v2428_v12 = vld [vmem:[%s3065_s0 + $0x168] ss:$12 sps:$4 sm:$0xff]  }
  0x1b   :  { %801 = vmatprep.subr.bf16.mxu1 %v2480_v0  ;;  %2105 = vmatpush3.bf16.msra.mxu0 %v2361_v18  ;;  %v2436_v18 = vld [vmem:[%s3065_s0 + $0x198] ss:$12 sps:$4 sm:$0xff]  }
  0x1c   :  { %2106 = vmatprep.subr.bf16.mxu0 %v2481_v2 }
  0x1e   :  { %802 = vmatpush1.bf16.msra.mxu1 %v2348_v14  ;;  %v2429_v14 = vld [vmem:[%s3065_s0 + $0x184] ss:$12 sps:$4 sm:$0xff]  }
  0x1f   :  { %803 = vmatprep.subr.bf16.mxu1 %v2480_v0  ;;  %2107 = vmatpush3.bf16.msra.mxu0 %v2363_v20  ;;  %v2437_v20 = vld [vmem:[%s3065_s0 + $0x1b4] ss:$12 sps:$4 sm:$0xff]  }
  0x22   :  { %804 = vmatpush1.bf16.msra.mxu1 %v2350_v17  ;;  %2109 = vmatmul.mubr.bf16.vlgmr.msra.gmra.mrb[0].mxu0 %v2368_v21  ;;  %v2433_v17 = vld [vmem:[%s3065_s0 + $0x19c] ss:$12 sps:$4 sm:$0xff]  }
  0x23   :  { %805 = vmatprep.subr.bf16.mxu1 %v2480_v0  ;;  %2112 = vmatprep.mubr.msk.bf16.mxu0 %vm2482_vm0, %v2481_v2  ;;  %v2440_v21 = vld [vmem:[%s3065_s0 + $0x1b0] ss:$12 sps:$4 sm:$0xff]  }
  0x26   :  { %806 = vmatpush1.bf16.msra.mxu1 %v2352_v19  ;;  %v2447_v19 = vld [vmem:[%s3065_s0 + $0x1e8] ss:$12 sps:$4 sm:$0xff]  }
  0x27   :  { %807 = vmatprep.subr.bf16.mxu1 %v2480_v0 }
  0x2a   :  { %808 = vmatpush1.bf16.msra.mxu1 %v2354_v22  ;;  %2113 = vmatmul.mubr.bf16.gmra.mrb[4].mxu0 %v2371_v24  ;;  %v2451_v22 = vld [vmem:[%s3065_s0 + $0x200] ss:$12 sps:$4 sm:$0xff]   ;;  %v2444_v24 = vld [vmem:[%s3065_s0 + $0x1c8] ss:$12 sps:$4 sm:$0xff]  }
  0x2b   :  { %809 = vmatprep.subr.bf16.mxu1 %v2480_v0  ;;  %2116 = vmatprep.mubr.msk.bf16.mxu0 %vm2482_vm0, %v2481_v2 }
  0x2e   :  { %810 = vmatpush1.bf16.msra.mxu1 %v2356_v23  ;;  %v2441_v23 = vld [vmem:[%s3065_s0 + $0x1cc] ss:$12 sps:$4 sm:$0xff]  }
  0x2f   :  { %811 = vmatprep.subr.bf16.mxu1 %v2480_v0 }
  0x32   :  { %812 = vmatpush1.bf16.msra.mxu1 %v2358_v25  ;;  %2117 = vmatmul.mubr.bf16.gmra.mrb[8].mxu0 %v2375_v27  ;;  %v2455_v25 = vld [vmem:[%s3065_s0 + $0x218] ss:$12 sps:$4 sm:$0xff]   ;;  %v2448_v27 = vld [vmem:[%s3065_s0 + $0x1e0] ss:$12 sps:$4 sm:$0xff]  }
  0x33   :  { %813 = vmatprep.subr.bf16.mxu1 %v2480_v0  ;;  %2120 = vmatprep.mubr.msk.bf16.mxu0 %vm2482_vm0, %v2481_v2 }
  0x36   :  { %814 = vmatpush1.bf16.msra.mxu1 %v2360_v26  ;;  %v2445_v26 = vld [vmem:[%s3065_s0 + $0x1e4] ss:$12 sps:$4 sm:$0xff]  }
  0x37   :  { %815 = vmatprep.subr.bf16.mxu1 %v2480_v0 }
  0x3a   :  { %816 = vmatpush1.bf16.msra.mxu1 %v2362_v28  ;;  %2121 = vmatmul.mubr.bf16.gmra.mrb[12].mxu0 %v2379_v31  ;;  %v2459_v28 = vld [vmem:[%s3065_s0 + $0x230] ss:$12 sps:$4 sm:$0xff]   ;;  %v2463_v31 = vld [vmem:[%s3065_s0 + $0x248] ss:$12 sps:$4 sm:$0xff]  }
  0x3b   :  { %817 = vmatprep.subr.bf16.mxu1 %v2480_v0  ;;  %2124 = vmatprep.mubr.msk.bf16.mxu0 %vm2482_vm0, %v2481_v2  ;;  %v2423_v0 = vld [vmem:[%s3065_s0 + $0x158] ss:$12 sps:$4 sm:$0xff]  }
  0x3e   :  { %818 = vmatpush1.bf16.msra.mxu1 %v2364_v29  ;;  %v2449_v29 = vld [vmem:[%s3065_s0 + $0x1fc] ss:$12 sps:$4 sm:$0xff]  }
  0x41   :  { %820 = vmatmul.mubr.bf16.vlgmr.msra.gmra.mrb[0].mxu1 %v2365_v30  ;;  %v2452_v30 = vld [vmem:[%s3065_s0 + $0x1f8] ss:$12 sps:$4 sm:$0xff]  }
  0x42   :  { %827 = vmatprep.mubr.bf16.mxu1 %v2369_v32  ;;  %2125 = vmatmul.mubr.bf16.gmra.mrb[16].mxu0 %v2383_v34  ;;  %v2453_v32 = vld [vmem:[%s3065_s0 + $0x214] ss:$12 sps:$4 sm:$0xff]  }
  0x43   :  { %2128 = vmatprep.mubr.msk.bf16.mxu0 %vm2482_vm0, %v2481_v2  ;;  %v2467_v34 = vld [vmem:[%s3065_s0 + $0x260] ss:$12 sps:$4 sm:$0xff]  }
  0x49   :  { %828 = vmatmul.mubr.bf16.gmra.mrb[4].mxu1 %v2372_v33  ;;  %v2456_v33 = vld [vmem:[%s3065_s0 + $0x210] ss:$12 sps:$4 sm:$0xff]  }
  0x4a   :  { %835 = vmatprep.mubr.bf16.mxu1 %v2373_v35  ;;  %2129 = vmatmul.mubr.bf16.gmra.mrb[20].mxu0 %v2387_v37  ;;  %v2457_v35 = vld [vmem:[%s3065_s0 + $0x22c] ss:$12 sps:$4 sm:$0xff]  }
  0x4b   :  { %2132 = vmatprep.mubr.msk.bf16.mxu0 %vm2482_vm0, %v2481_v2  ;;  %v2471_v37 = vld [vmem:[%s3065_s0 + $0x278] ss:$12 sps:$4 sm:$0xff]  }
  0x51   :  { %836 = vmatmul.mubr.bf16.gmra.mrb[8].mxu1 %v2376_v36  ;;  %v2460_v36 = vld [vmem:[%s3065_s0 + $0x228] ss:$12 sps:$4 sm:$0xff]  }
  0x52   :  { %843 = vmatprep.mubr.bf16.mxu1 %v2377_v38  ;;  %2133 = vmatmul.mubr.bf16.gmra.mrb[24].mxu0 %v2391_v40  ;;  %v2461_v38 = vld [vmem:[%s3065_s0 + $0x244] ss:$12 sps:$4 sm:$0xff]   ;;  %v2464_v40 = vld [vmem:[%s3065_s0 + $0x240] ss:$12 sps:$4 sm:$0xff]  }
  0x53   :  { %2136 = vmatprep.mubr.msk.bf16.mxu0 %vm2482_vm0, %v2481_v2 }
  0x59   :  { %844 = vmatmul.mubr.bf16.gmra.mrb[12].mxu1 %v2380_v39 }
  0x5a   :  { %851 = vmatprep.mubr.bf16.mxu1 %v2381_v41  ;;  %2137 = vmatmul.mubr.bf16.gmra.mrb[28].mxu0 %v2395_v43  ;;  %v2465_v43 = vld [vmem:[%s3065_s0 + $0x25c] ss:$12 sps:$4 sm:$0xff]  }
  0x5b   :  { %2140 = vmatprep.mubr.msk.bf16.mxu0 %vm2482_vm0, %v2481_v2 }
  0x61   :  { %852 = vmatmul.mubr.bf16.gmra.mrb[16].mxu1 %v2384_v42  ;;  %v2475_v42 = vld [vmem:[%s3065_s0 + $0x290] ss:$12 sps:$4 sm:$0xff]  }
  0x62   :  { %859 = vmatprep.mubr.bf16.mxu1 %v2385_v44  ;;  %2141 = vmatmul.mubr.bf16.gmra.mrb[32].mxu0 %v2399_v46 }
  0x63   :  { %2144 = vmatprep.mubr.msk.bf16.mxu0 %vm2482_vm0, %v2481_v2 }
  0x69   :  { %860 = vmatmul.mubr.bf16.gmra.mrb[20].mxu1 %v2388_v45 }
  0x6a   :  { %867 = vmatprep.mubr.bf16.mxu1 %v2389_v47  ;;  %2145 = vmatmul.mubr.bf16.gmra.mrb[36].mxu0 %v2403_v49  ;;  %v2468_v47 = vld [vmem:[%s3065_s0 + $0x258] ss:$12 sps:$4 sm:$0xff]   ;;  %v2478_v49 = vld [vmem:[%s3065_s0 + $0x2a8] ss:$0 sps:$4 sm:$0xff]  }
  0x6b   :  { %2148 = vmatprep.mubr.msk.bf16.mxu0 %vm2482_vm0, %v2481_v2 }
  0x71   :  { %868 = vmatmul.mubr.bf16.gmra.mrb[24].mxu1 %v2392_v48 }
  0x72   :  { %875 = vmatprep.mubr.bf16.mxu1 %v2393_v50  ;;  %2149 = vmatmul.mubr.bf16.gmra.mrb[40].mxu0 %v2407_v52  ;;  %v2469_v50 = vld [vmem:[%s3065_s0 + $0x274] ss:$12 sps:$4 sm:$0xff]  }
  0x73   :  { %2152 = vmatprep.mubr.msk.bf16.mxu0 %vm2482_vm0, %v2481_v2 }
  0x79   :  { %876 = vmatmul.mubr.bf16.gmra.mrb[28].mxu1 %v2396_v51 }
  0x7a   :  { %883 = vmatprep.mubr.bf16.mxu1 %v2397_v53  ;;  %2153 = vmatmul.mubr.bf16.gmra.mrb[44].mxu0 %v2411_v55  ;;  %v2472_v53 = vld [vmem:[%s3065_s0 + $0x270] ss:$12 sps:$4 sm:$0xff]   ;;  %v2473_v55 = vld [vmem:[%s3065_s0 + $0x28c] ss:$12 sps:$4 sm:$0xff]  }
  0x7b   :  { %2156 = vmatprep.mubr.msk.bf16.mxu0 %vm2482_vm0, %v2481_v2 }
  0x81   :  { %884 = vmatmul.mubr.bf16.gmra.mrb[32].mxu1 %v2400_v54 }
  0x82   :  { %891 = vmatprep.mubr.bf16.mxu1 %v2401_v56  ;;  %2157 = vmatmul.mubr.bf16.gmra.mrb[48].mxu0 %v2415_v58  ;;  %v2912_v58 = vld [vmem:[%s3066_s2] ss:$0 sm:$0xff] }
  0x83   :  { %2160 = vmatprep.mubr.msk.bf16.mxu0 %vm2482_vm0, %v2481_v2 }
  0x89   :  { %892 = vmatmul.mubr.bf16.gmra.mrb[36].mxu1 %v2404_v57 }
  0x8a   :  { %899 = vmatprep.mubr.bf16.mxu1 %v2405_v59  ;;  %2161 = vmatmul.mubr.bf16.gmra.mrb[52].mxu0 %v2419_v61  ;;  %v127_v59 = vld [vmem:[%s3065_s0 + $0x2a0] sm:$0xff] }
  0x8b   :  { %2164 = vmatprep.mubr.msk.bf16.mxu0 %vm2482_vm0, %v2481_v2 }
  0x91   :  { %900 = vmatmul.mubr.bf16.gmra.mrb[40].mxu1 %v2408_v60 }
  0x92   :  { %907 = vmatprep.mubr.bf16.mxu1 %v2409_v62  ;;  %2165 = vmatmul.mubr.bf16.gmra.mrb[56].mxu0 %v2423_v0  ;;  %v2476_v0 = vld [vmem:[%s3065_s0 + $0x288] ss:$12 sps:$4 sm:$0xff]  }
  0x93   :  { %2168 = vmatprep.mubr.msk.bf16.mxu0 %vm2482_vm0, %v2481_v2 }
  0x99   :  { %908 = vmatmul.mubr.bf16.gmra.mrb[44].mxu1 %v2412_v63 }
  0x9a   :  { %915 = vmatprep.mubr.bf16.mxu1 %v2413_v1  ;;  %2169 = vmatmul.mubr.bf16.gmra.mrb[60].mxu0 %v2427_v4  ;;  %v1748_v4 = vcombine.high %v127_v59, %v127_v59 }
  0x9b   :  { %2172 = vmatprep.mubr.msk.bf16.mxu0 %vm2482_vm0, %v2481_v2 }
  0xa1   :  { %916 = vmatmul.mubr.bf16.gmra.mrb[48].mxu1 %v2416_v3 }
  0xa2   :  { %923 = vmatprep.mubr.bf16.mxu1 %v2417_v5  ;;  %2173 = vmatmul.mubr.bf16.gmra.mrb[64].mxu0 %v2431_v7 }
  0xa3   :  { %2176 = vmatprep.mubr.msk.bf16.mxu0 %vm2482_vm0, %v2481_v2 }
  0xa9   :  { %924 = vmatmul.mubr.bf16.gmra.mrb[52].mxu1 %v2420_v6 }
  0xaa   :  { %931 = vmatprep.mubr.bf16.mxu1 %v2421_v8  ;;  %2177 = vmatmul.mubr.bf16.gmra.mrb[68].mxu0 %v2435_v10 }
  0xab   :  { %2180 = vmatprep.mubr.msk.bf16.mxu0 %vm2482_vm0, %v2481_v2 }
  0xb1   :  { %932 = vmatmul.mubr.bf16.gmra.mrb[56].mxu1 %v2424_v9 }
  0xb2   :  { %939 = vmatprep.mubr.bf16.mxu1 %v2425_v11  ;;  %2181 = vmatmul.mubr.bf16.gmra.mrb[72].mxu0 %v2439_v13 }
  0xb3   :  { %2184 = vmatprep.mubr.msk.bf16.mxu0 %vm2482_vm0, %v2481_v2 }
  0xb9   :  { %940 = vmatmul.mubr.bf16.gmra.mrb[60].mxu1 %v2428_v12 }
  0xba   :  { %947 = vmatprep.mubr.bf16.mxu1 %v2429_v14  ;;  %2185 = vmatmul.mubr.bf16.gmra.mrb[76].mxu0 %v2443_v16 }
  0xbb   :  { %2188 = vmatprep.mubr.msk.bf16.mxu0 %vm2482_vm0, %v2481_v2 }
  0xc1   :  { %948 = vmatmul.mubr.bf16.gmra.mrb[64].mxu1 %v2432_v15 }
  0xc2   :  { %955 = vmatprep.mubr.bf16.mxu1 %v2433_v17  ;;  %2189 = vmatmul.mubr.bf16.gmra.mrb[80].mxu0 %v2447_v19 }
  0xc3   :  { %2192 = vmatprep.mubr.msk.bf16.mxu0 %vm2482_vm0, %v2481_v2 }
  0xc9   :  { %956 = vmatmul.mubr.bf16.gmra.mrb[68].mxu1 %v2436_v18  ;;  %v1747_v18 = vcombine.low %v127_v59, %v127_v59 }
  0xca   :  { %963 = vmatprep.mubr.bf16.mxu1 %v2437_v20  ;;  %2193 = vmatmul.mubr.bf16.gmra.mrb[84].mxu0 %v2451_v22 }
  0xcb   :  { %2196 = vmatprep.mubr.msk.bf16.mxu0 %vm2482_vm0, %v2481_v2 }
  0xd1   :  { %964 = vmatmul.mubr.bf16.gmra.mrb[72].mxu1 %v2440_v21 }
  0xd2   :  { %971 = vmatprep.mubr.bf16.mxu1 %v2441_v23  ;;  %2197 = vmatmul.mubr.bf16.gmra.mrb[88].mxu0 %v2455_v25 }
  0xd3   :  { %2200 = vmatprep.mubr.msk.bf16.mxu0 %vm2482_vm0, %v2481_v2 }
  0xd9   :  { %972 = vmatmul.mubr.bf16.gmra.mrb[76].mxu1 %v2444_v24 }
  0xda   :  { %979 = vmatprep.mubr.bf16.mxu1 %v2445_v26  ;;  %2201 = vmatmul.mubr.bf16.gmra.mrb[92].mxu0 %v2459_v28 }
  0xdb   :  { %2204 = vmatprep.mubr.msk.bf16.mxu0 %vm2482_vm0, %v2481_v2 }
  0xe1   :  { %980 = vmatmul.mubr.bf16.gmra.mrb[80].mxu1 %v2448_v27 }
  0xe2   :  { %987 = vmatprep.mubr.bf16.mxu1 %v2449_v29  ;;  %2205 = vmatmul.mubr.bf16.gmra.mrb[96].mxu0 %v2463_v31 }
  0xe3   :  { %2208 = vmatprep.mubr.msk.bf16.mxu0 %vm2482_vm0, %v2481_v2 }
  0xe9   :  { %988 = vmatmul.mubr.bf16.gmra.mrb[84].mxu1 %v2452_v30 }
  0xea   :  { %995 = vmatprep.mubr.bf16.mxu1 %v2453_v32  ;;  %2209 = vmatmul.mubr.bf16.gmra.mrb[100].mxu0 %v2467_v34 }
  0xeb   :  { %2212 = vmatprep.mubr.msk.bf16.mxu0 %vm2482_vm0, %v2481_v2 }
  0xf1   :  { %996 = vmatmul.mubr.bf16.gmra.mrb[88].mxu1 %v2456_v33 }
  0xf2   :  { %1003 = vmatprep.mubr.bf16.mxu1 %v2457_v35  ;;  %2213 = vmatmul.mubr.bf16.gmra.mrb[104].mxu0 %v2471_v37 }
  0xf3   :  { %2216 = vmatprep.mubr.msk.bf16.mxu0 %vm2482_vm0, %v2481_v2 }
  0xf5   :  { %v1085_v39 = vpop.f32.mrb[0].mxu0 }
  0xf6   :  { %v2110_v41 = vpop.f32.mrb[1].mxu0 }
  0xf7   :  { %v1088_v44 = vpop.f32.mrb[2].mxu0 }
  0xf8   :  { %v2111_v45 = vpop.f32.mrb[3].mxu0 }
  0xf9   :  { %1004 = vmatmul.mubr.bf16.gmra.mrb[92].mxu1 %v2460_v36 }
  0xfa   :  { %1011 = vmatprep.mubr.bf16.mxu1 %v2461_v38  ;;  %2217 = vmatmul.mubr.bf16.gmra.mrb[108].mxu0 %v2475_v42 }
  0xfb   :  { %2220 = vmatprep.mubr.msk.bf16.mxu0 %vm2482_vm0, %v2481_v2 }
  0xfd   :  { %v1093_v46 = vpop.f32.mrb[4].mxu0 }
  0xfe   :  { %v2114_v48 = vpop.f32.mrb[5].mxu0 }
  0xff   :  { %v1096_v51 = vpop.f32.mrb[6].mxu0 }
 0x100   :  { %v2115_v52 = vpop.f32.mrb[7].mxu0 }
 0x101   :  { %1012 = vmatmul.mubr.bf16.gmra.mrb[96].mxu1 %v2464_v40 }
 0x102   :  { %1019 = vmatprep.mubr.bf16.mxu1 %v2465_v43  ;;  %2221 = vmatmul.mubr.bf16.gmra.mrb[112].mxu0 %v2478_v49 }
 0x105   :  { %v1101_v2 = vpop.f32.mrb[8].mxu0 }
 0x106   :  { %v2118_v54 = vpop.f32.mrb[9].mxu0 }
 0x107   :  { %v1104_v56 = vpop.f32.mrb[10].mxu0 }
 0x108   :  { %v2119_v57 = vpop.f32.mrb[11].mxu0 }
 0x109   :  { %1020 = vmatmul.mubr.bf16.gmra.mrb[100].mxu1 %v2468_v47 }
 0x10a   :  { %1027 = vmatprep.mubr.bf16.mxu1 %v2469_v50 }
 0x10d   :  { %v1109_v61 = vpop.f32.mrb[12].mxu0 }
 0x10e   :  { %v2122_v1 = vpop.f32.mrb[13].mxu0 }
 0x10f   :  { %v1112_v5 = vpop.f32.mrb[14].mxu0 }
 0x110   :  { %v2123_v9 = vpop.f32.mrb[15].mxu0 }
 0x111   :  { %1028 = vmatmul.mubr.bf16.gmra.mrb[104].mxu1 %v2472_v53 }
 0x112   :  { %1035 = vmatprep.mubr.bf16.mxu1 %v2473_v55 }
 0x114   :  { %v821_v60 = vpop.f32.mrb[0].mxu1 }
 0x115   :  { %v822_v62 = vadd.f32 %v2912_v58, %v821_v60  ;;  %v823_v63 = vpop.f32.mrb[1].mxu1  ;;  %v1117_v14 = vpop.f32.mrb[16].mxu0 }
 0x116   :  { %v824_v3 = vpop.f32.mrb[2].mxu1  ;;  %v2126_v19 = vpop.f32.mrb[17].mxu0 }
 0x117   :  { %v1086_v6 = vadd.f32 %v1085_v39, %v822_v62  ;;  %v825_v7 = vadd.f32 %v2912_v58, %v824_v3  ;;  %v826_v8 = vpop.f32.mrb[3].mxu1  ;;  %v1120_v21 = vpop.f32.mrb[18].mxu0 }
 0x118   :  { %v2127_v25 = vpop.f32.mrb[19].mxu0 }
 0x119   :  { %v1089_v10 = vadd.f32 %v1088_v44, %v825_v7  ;;  %1036 = vmatmul.mubr.bf16.gmra.mrb[108].mxu1 %v2476_v0  ;;  %v1315_v11 = vmax.f32 %v1086_v6, 0.0 }
 0x11a   :  { %1043 = vmatprep.mubr.bf16.mxu1 %v1748_v4 }
 0x11b   :  { %v1316_v12 = vmax.f32 %v1089_v10, 0.0 }
 0x11c   :  { %v829_v13 = vpop.f32.mrb[4].mxu1 }
 0x11d   :  { %v1891_v15 = vpack.c.bf16 %v1316_v12, %v1315_v11  ;;  %v830_v16 = vadd.f32 %v2912_v58, %v829_v13  ;;  %v831_v17 = vpop.f32.mrb[5].mxu1  ;;  %v1125_v30 = vpop.f32.mrb[20].mxu0 }
 0x11e   :  { %v832_v20 = vpop.f32.mrb[6].mxu1  ;;  %v2130_v34 = vpop.f32.mrb[21].mxu0 }
 0x11f   :  { %1892 = vst [vmem:[%s3067_s3] sm:$0xff] %v1891_v15   ;;  %v1094_v22 = vadd.f32 %v1093_v46, %v830_v16  ;;  %v833_v23 = vadd.f32 %v2912_v58, %v832_v20  ;;  %v834_v24 = vpop.f32.mrb[7].mxu1  ;;  %v1128_v36 = vpop.f32.mrb[22].mxu0 }
 0x120   :  { %v2131_v40 = vpop.f32.mrb[23].mxu0 }
 0x121   :  { %v1097_v26 = vadd.f32 %v1096_v51, %v833_v23  ;;  %1044 = vmatmul.mubr.bf16.gmra.mrb[112].mxu1 %v1747_v18  ;;  %v1317_v27 = vmax.f32 %v1094_v22, 0.0 }
 0x123   :  { %v1318_v28 = vmax.f32 %v1097_v26, 0.0 }
 0x124   :  { %v837_v29 = vpop.f32.mrb[8].mxu1 }
 0x125   :  { %v1896_v31 = vpack.c.bf16 %v1318_v28, %v1317_v27  ;;  %v838_v32 = vadd.f32 %v2912_v58, %v837_v29  ;;  %v839_v33 = vpop.f32.mrb[9].mxu1  ;;  %v1133_v45 = vpop.f32.mrb[24].mxu0 }
 0x126   :  { %v840_v35 = vpop.f32.mrb[10].mxu1  ;;  %v2134_v49 = vpop.f32.mrb[25].mxu0 }
 0x127   :  { %2028 = vst [vmem:[%s3067_s3 + $0x8] sm:$0xff] %v1896_v31   ;;  %v1102_v37 = vadd.f32 %v1101_v2, %v838_v32  ;;  %v841_v38 = vadd.f32 %v2912_v58, %v840_v35  ;;  %v842_v39 = vpop.f32.mrb[11].mxu1  ;;  %v1136_v51 = vpop.f32.mrb[26].mxu0 }
 0x128   :  { %v2135_v54 = vpop.f32.mrb[27].mxu0 }
 0x129   :  { %v1105_v41 = vadd.f32 %v1104_v56, %v841_v38  ;;  %v1319_v42 = vmax.f32 %v1102_v37, 0.0 }
 0x12b   :  { %v1320_v43 = vmax.f32 %v1105_v41, 0.0 }
 0x12c   :  { %v845_v44 = vpop.f32.mrb[12].mxu1 }
 0x12d   :  { %v1901_v46 = vpack.c.bf16 %v1320_v43, %v1319_v42  ;;  %v846_v47 = vadd.f32 %v2912_v58, %v845_v44  ;;  %v847_v48 = vpop.f32.mrb[13].mxu1  ;;  %v1141_v60 = vpop.f32.mrb[28].mxu0 }
 0x12e   :  { %v848_v50 = vpop.f32.mrb[14].mxu1  ;;  %v2138_v1 = vpop.f32.mrb[29].mxu0 }
 0x12f   :  { %2029 = vst [vmem:[%s3067_s3 + $0x10] sm:$0xff] %v1901_v46   ;;  %v1110_v52 = vadd.f32 %v1109_v61, %v846_v47  ;;  %v849_v2 = vadd.f32 %v2912_v58, %v848_v50  ;;  %v850_v53 = vpop.f32.mrb[15].mxu1  ;;  %v1144_v4 = vpop.f32.mrb[30].mxu0 }
 0x131   :  { %v1113_v55 = vadd.f32 %v1112_v5, %v849_v2  ;;  %v1321_v56 = vmax.f32 %v1110_v52, 0.0  ;;  %v2139_v5 = vpop.f32.mrb[31].mxu0 }
 0x133   :  { %v1322_v57 = vmax.f32 %v1113_v55, 0.0 }
 0x134   :  { %v853_v59 = vpop.f32.mrb[16].mxu1 }
 0x135   :  { %v1906_v62 = vpack.c.bf16 %v1322_v57, %v1321_v56  ;;  %v854_v63 = vadd.f32 %v2912_v58, %v853_v59  ;;  %v855_v0 = vpop.f32.mrb[17].mxu1  ;;  %v1149_v12 = vpop.f32.mrb[32].mxu0 }
 0x136   :  { %v856_v3 = vpop.f32.mrb[18].mxu1  ;;  %v2142_v17 = vpop.f32.mrb[33].mxu0 }
 0x137   :  { %2030 = vst [vmem:[%s3067_s3 + $0x18] sm:$0xff] %v1906_v62   ;;  %v1118_v61 = vadd.f32 %v1117_v14, %v854_v63  ;;  %v857_v6 = vadd.f32 %v2912_v58, %v856_v3  ;;  %v858_v7 = vpop.f32.mrb[19].mxu1  ;;  %v1152_v19 = vpop.f32.mrb[34].mxu0 }
 0x139   :  { %v1121_v8 = vadd.f32 %v1120_v21, %v857_v6  ;;  %v1323_v9 = vmax.f32 %v1118_v61, 0.0  ;;  %v2143_v21 = vpop.f32.mrb[35].mxu0 }
 0x13b   :  { %v1324_v10 = vmax.f32 %v1121_v8, 0.0 }
 0x13c   :  { %v861_v11 = vpop.f32.mrb[20].mxu1 }
 0x13d   :  { %v1911_v13 = vpack.c.bf16 %v1324_v10, %v1323_v9  ;;  %v862_v15 = vadd.f32 %v2912_v58, %v861_v11  ;;  %v863_v16 = vpop.f32.mrb[21].mxu1  ;;  %v1157_v27 = vpop.f32.mrb[36].mxu0 }
 0x13e   :  { %v864_v18 = vpop.f32.mrb[22].mxu1  ;;  %v2146_v32 = vpop.f32.mrb[37].mxu0 }
 0x13f   :  { %2031 = vst [vmem:[%s3067_s3 + $0x20] sm:$0xff] %v1911_v13   ;;  %v1126_v14 = vadd.f32 %v1125_v30, %v862_v15  ;;  %v865_v20 = vadd.f32 %v2912_v58, %v864_v18  ;;  %v866_v22 = vpop.f32.mrb[23].mxu1  ;;  %v1160_v34 = vpop.f32.mrb[38].mxu0 }
 0x141   :  { %v1129_v23 = vadd.f32 %v1128_v36, %v865_v20  ;;  %v1325_v24 = vmax.f32 %v1126_v14, 0.0  ;;  %v2147_v36 = vpop.f32.mrb[39].mxu0 }
 0x143   :  { %v1326_v25 = vmax.f32 %v1129_v23, 0.0 }
 0x144   :  { %v869_v26 = vpop.f32.mrb[24].mxu1 }
 0x145   :  { %v1916_v28 = vpack.c.bf16 %v1326_v25, %v1325_v24  ;;  %v870_v29 = vadd.f32 %v2912_v58, %v869_v26  ;;  %v871_v31 = vpop.f32.mrb[25].mxu1  ;;  %v1165_v42 = vpop.f32.mrb[40].mxu0 }
 0x146   :  { %v872_v33 = vpop.f32.mrb[26].mxu1  ;;  %v2150_v47 = vpop.f32.mrb[41].mxu0 }
 0x147   :  { %2032 = vst [vmem:[%s3067_s3 + $0x28] sm:$0xff] %v1916_v28   ;;  %v1134_v30 = vadd.f32 %v1133_v45, %v870_v29  ;;  %v873_v35 = vadd.f32 %v2912_v58, %v872_v33  ;;  %v874_v37 = vpop.f32.mrb[27].mxu1  ;;  %v1168_v49 = vpop.f32.mrb[42].mxu0 }
 0x149   :  { %v1137_v38 = vadd.f32 %v1136_v51, %v873_v35  ;;  %v1327_v39 = vmax.f32 %v1134_v30, 0.0  ;;  %v2151_v51 = vpop.f32.mrb[43].mxu0 }
 0x14b   :  { %v1328_v40 = vmax.f32 %v1137_v38, 0.0 }
 0x14c   :  { %v877_v41 = vpop.f32.mrb[28].mxu1 }
 0x14d   :  { %v1921_v43 = vpack.c.bf16 %v1328_v40, %v1327_v39  ;;  %v878_v44 = vadd.f32 %v2912_v58, %v877_v41  ;;  %v879_v46 = vpop.f32.mrb[29].mxu1  ;;  %v1173_v56 = vpop.f32.mrb[44].mxu0 }
 0x14e   :  { %v880_v48 = vpop.f32.mrb[30].mxu1  ;;  %v2154_v63 = vpop.f32.mrb[45].mxu0 }
 0x14f   :  { %2033 = vst [vmem:[%s3067_s3 + $0x30] sm:$0xff] %v1921_v43   ;;  %v1142_v45 = vadd.f32 %v1141_v60, %v878_v44  ;;  %v881_v50 = vadd.f32 %v2912_v58, %v880_v48  ;;  %v882_v52 = vpop.f32.mrb[31].mxu1  ;;  %v1176_v1 = vpop.f32.mrb[46].mxu0 }
 0x151   :  { %v1145_v2 = vadd.f32 %v1144_v4, %v881_v50  ;;  %v1329_v53 = vmax.f32 %v1142_v45, 0.0  ;;  %v2155_v4 = vpop.f32.mrb[47].mxu0 }
 0x153   :  { %v1330_v54 = vmax.f32 %v1145_v2, 0.0 }
 0x154   :  { %v885_v55 = vpop.f32.mrb[32].mxu1 }
 0x155   :  { %v1926_v57 = vpack.c.bf16 %v1330_v54, %v1329_v53  ;;  %v886_v59 = vadd.f32 %v2912_v58, %v885_v55  ;;  %v887_v62 = vpop.f32.mrb[33].mxu1  ;;  %v1181_v9 = vpop.f32.mrb[48].mxu0 }
 0x156   :  { %v888_v0 = vpop.f32.mrb[34].mxu1  ;;  %v2158_v15 = vpop.f32.mrb[49].mxu0 }
 0x157   :  { %2034 = vst [vmem:[%s3067_s3 + $0x38] sm:$0xff] %v1926_v57   ;;  %v1150_v60 = vadd.f32 %v1149_v12, %v886_v59  ;;  %v889_v3 = vadd.f32 %v2912_v58, %v888_v0  ;;  %v890_v61 = vpop.f32.mrb[35].mxu1  ;;  %v1184_v17 = vpop.f32.mrb[50].mxu0 }
 0x159   :  { %v1153_v6 = vadd.f32 %v1152_v19, %v889_v3  ;;  %v1331_v7 = vmax.f32 %v1150_v60, 0.0  ;;  %v2159_v19 = vpop.f32.mrb[51].mxu0 }
 0x15b   :  { %v1332_v5 = vmax.f32 %v1153_v6, 0.0 }
 0x15c   :  { %v893_v8 = vpop.f32.mrb[36].mxu1 }
 0x15d   :  { %v1931_v10 = vpack.c.bf16 %v1332_v5, %v1331_v7  ;;  %v894_v11 = vadd.f32 %v2912_v58, %v893_v8  ;;  %v895_v13 = vpop.f32.mrb[37].mxu1  ;;  %v1189_v24 = vpop.f32.mrb[52].mxu0 }
 0x15e   :  { %v896_v16 = vpop.f32.mrb[38].mxu1  ;;  %v2162_v29 = vpop.f32.mrb[53].mxu0 }
 0x15f   :  { %2035 = vst [vmem:[%s3067_s3 + $0x40] sm:$0xff] %v1931_v10   ;;  %v1158_v12 = vadd.f32 %v1157_v27, %v894_v11  ;;  %v897_v18 = vadd.f32 %v2912_v58, %v896_v16  ;;  %v898_v14 = vpop.f32.mrb[39].mxu1  ;;  %v1192_v32 = vpop.f32.mrb[54].mxu0 }
 0x161   :  { %v1161_v20 = vadd.f32 %v1160_v34, %v897_v18  ;;  %v1333_v22 = vmax.f32 %v1158_v12, 0.0  ;;  %v2163_v34 = vpop.f32.mrb[55].mxu0 }
 0x163   :  { %v1334_v21 = vmax.f32 %v1161_v20, 0.0 }
 0x164   :  { %v901_v23 = vpop.f32.mrb[40].mxu1 }
 0x165   :  { %v1936_v25 = vpack.c.bf16 %v1334_v21, %v1333_v22  ;;  %v902_v26 = vadd.f32 %v2912_v58, %v901_v23  ;;  %v903_v28 = vpop.f32.mrb[41].mxu1  ;;  %v1197_v39 = vpop.f32.mrb[56].mxu0 }
 0x166   :  { %v904_v31 = vpop.f32.mrb[42].mxu1  ;;  %v2166_v44 = vpop.f32.mrb[57].mxu0 }
 0x167   :  { %2036 = vst [vmem:[%s3067_s3 + $0x48] sm:$0xff] %v1936_v25   ;;  %v1166_v27 = vadd.f32 %v1165_v42, %v902_v26  ;;  %v905_v33 = vadd.f32 %v2912_v58, %v904_v31  ;;  %v906_v30 = vpop.f32.mrb[43].mxu1  ;;  %v1200_v47 = vpop.f32.mrb[58].mxu0 }
 0x169   :  { %v1169_v35 = vadd.f32 %v1168_v49, %v905_v33  ;;  %v1335_v37 = vmax.f32 %v1166_v27, 0.0  ;;  %v2167_v49 = vpop.f32.mrb[59].mxu0 }
 0x16b   :  { %v1336_v36 = vmax.f32 %v1169_v35, 0.0 }
 0x16c   :  { %v909_v38 = vpop.f32.mrb[44].mxu1 }
 0x16d   :  { %v1941_v40 = vpack.c.bf16 %v1336_v36, %v1335_v37  ;;  %v910_v41 = vadd.f32 %v2912_v58, %v909_v38  ;;  %v911_v43 = vpop.f32.mrb[45].mxu1  ;;  %v1205_v53 = vpop.f32.mrb[60].mxu0 }
 0x16e   :  { %v912_v46 = vpop.f32.mrb[46].mxu1  ;;  %v2170_v59 = vpop.f32.mrb[61].mxu0 }
 0x16f   :  { %2037 = vst [vmem:[%s3067_s3 + $0x50] sm:$0xff] %v1941_v40   ;;  %v1174_v42 = vadd.f32 %v1173_v56, %v910_v41  ;;  %v913_v48 = vadd.f32 %v2912_v58, %v912_v46  ;;  %v914_v45 = vpop.f32.mrb[47].mxu1  ;;  %v1208_v63 = vpop.f32.mrb[62].mxu0 }
 0x171   :  { %v1177_v50 = vadd.f32 %v1176_v1, %v913_v48  ;;  %v1337_v52 = vmax.f32 %v1174_v42, 0.0  ;;  %v2171_v1 = vpop.f32.mrb[63].mxu0 }
 0x173   :  { %v1338_v51 = vmax.f32 %v1177_v50, 0.0 }
 0x174   :  { %v917_v2 = vpop.f32.mrb[48].mxu1 }
 0x175   :  { %v1946_v54 = vpack.c.bf16 %v1338_v51, %v1337_v52  ;;  %v918_v55 = vadd.f32 %v2912_v58, %v917_v2  ;;  %v919_v57 = vpop.f32.mrb[49].mxu1  ;;  %v1213_v7 = vpop.f32.mrb[64].mxu0 }
 0x176   :  { %v920_v62 = vpop.f32.mrb[50].mxu1  ;;  %v2174_v11 = vpop.f32.mrb[65].mxu0 }
 0x177   :  { %2038 = vst [vmem:[%s3067_s3 + $0x58] sm:$0xff] %v1946_v54   ;;  %v1182_v56 = vadd.f32 %v1181_v9, %v918_v55  ;;  %v921_v0 = vadd.f32 %v2912_v58, %v920_v62  ;;  %v922_v60 = vpop.f32.mrb[51].mxu1  ;;  %v1216_v15 = vpop.f32.mrb[66].mxu0 }
 0x179   :  { %v1185_v3 = vadd.f32 %v1184_v17, %v921_v0  ;;  %v1339_v61 = vmax.f32 %v1182_v56, 0.0  ;;  %v2175_v17 = vpop.f32.mrb[67].mxu0 }
 0x17b   :  { %v1340_v4 = vmax.f32 %v1185_v3, 0.0 }
 0x17c   :  { %v925_v6 = vpop.f32.mrb[52].mxu1 }
 0x17d   :  { %v1951_v5 = vpack.c.bf16 %v1340_v4, %v1339_v61  ;;  %v926_v8 = vadd.f32 %v2912_v58, %v925_v6  ;;  %v927_v10 = vpop.f32.mrb[53].mxu1  ;;  %v1221_v22 = vpop.f32.mrb[68].mxu0 }
 0x17e   :  { %v928_v13 = vpop.f32.mrb[54].mxu1  ;;  %v2178_v26 = vpop.f32.mrb[69].mxu0 }
 0x17f   :  { %2039 = vst [vmem:[%s3067_s3 + $0x60] sm:$0xff] %v1951_v5   ;;  %v1190_v9 = vadd.f32 %v1189_v24, %v926_v8  ;;  %v929_v16 = vadd.f32 %v2912_v58, %v928_v13  ;;  %v930_v12 = vpop.f32.mrb[55].mxu1  ;;  %v1224_v29 = vpop.f32.mrb[70].mxu0 }
 0x181   :  { %v1193_v18 = vadd.f32 %v1192_v32, %v929_v16  ;;  %v1341_v14 = vmax.f32 %v1190_v9, 0.0  ;;  %v2179_v32 = vpop.f32.mrb[71].mxu0 }
 0x183   :  { %v1342_v19 = vmax.f32 %v1193_v18, 0.0 }
 0x184   :  { %v933_v20 = vpop.f32.mrb[56].mxu1 }
 0x185   :  { %v1956_v21 = vpack.c.bf16 %v1342_v19, %v1341_v14  ;;  %v934_v23 = vadd.f32 %v2912_v58, %v933_v20  ;;  %v935_v25 = vpop.f32.mrb[57].mxu1  ;;  %v1229_v37 = vpop.f32.mrb[72].mxu0 }
 0x186   :  { %v936_v28 = vpop.f32.mrb[58].mxu1  ;;  %v2182_v41 = vpop.f32.mrb[73].mxu0 }
 0x187   :  { %2040 = vst [vmem:[%s3067_s3 + $0x68] sm:$0xff] %v1956_v21   ;;  %v1198_v24 = vadd.f32 %v1197_v39, %v934_v23  ;;  %v937_v31 = vadd.f32 %v2912_v58, %v936_v28  ;;  %v938_v27 = vpop.f32.mrb[59].mxu1  ;;  %v1232_v44 = vpop.f32.mrb[74].mxu0 }
 0x189   :  { %v1201_v33 = vadd.f32 %v1200_v47, %v937_v31  ;;  %v1343_v30 = vmax.f32 %v1198_v24, 0.0  ;;  %v2183_v47 = vpop.f32.mrb[75].mxu0 }
 0x18b   :  { %v1344_v34 = vmax.f32 %v1201_v33, 0.0 }
 0x18c   :  { %v941_v35 = vpop.f32.mrb[60].mxu1 }
 0x18d   :  { %v1961_v36 = vpack.c.bf16 %v1344_v34, %v1343_v30  ;;  %v942_v38 = vadd.f32 %v2912_v58, %v941_v35  ;;  %v943_v40 = vpop.f32.mrb[61].mxu1  ;;  %v1237_v52 = vpop.f32.mrb[76].mxu0 }
 0x18e   :  { %v944_v43 = vpop.f32.mrb[62].mxu1  ;;  %v2186_v55 = vpop.f32.mrb[77].mxu0 }
 0x18f   :  { %2041 = vst [vmem:[%s3067_s3 + $0x70] sm:$0xff] %v1961_v36   ;;  %v1206_v39 = vadd.f32 %v1205_v53, %v942_v38  ;;  %v945_v46 = vadd.f32 %v2912_v58, %v944_v43  ;;  %v946_v42 = vpop.f32.mrb[63].mxu1  ;;  %v1240_v59 = vpop.f32.mrb[78].mxu0 }
 0x191   :  { %v1209_v48 = vadd.f32 %v1208_v63, %v945_v46  ;;  %v1345_v45 = vmax.f32 %v1206_v39, 0.0  ;;  %v2187_v63 = vpop.f32.mrb[79].mxu0 }
 0x193   :  { %v1346_v49 = vmax.f32 %v1209_v48, 0.0 }
 0x194   :  { %v949_v50 = vpop.f32.mrb[64].mxu1 }
 0x195   :  { %v1966_v51 = vpack.c.bf16 %v1346_v49, %v1345_v45  ;;  %v950_v2 = vadd.f32 %v2912_v58, %v949_v50  ;;  %v951_v54 = vpop.f32.mrb[65].mxu1  ;;  %v1245_v61 = vpop.f32.mrb[80].mxu0 }
 0x196   :  { %v952_v57 = vpop.f32.mrb[66].mxu1  ;;  %v2190_v8 = vpop.f32.mrb[81].mxu0 }
 0x197   :  { %2042 = vst [vmem:[%s3067_s3 + $0x78] sm:$0xff] %v1966_v51   ;;  %v1214_v53 = vadd.f32 %v1213_v7, %v950_v2  ;;  %v953_v62 = vadd.f32 %v2912_v58, %v952_v57  ;;  %v954_v56 = vpop.f32.mrb[67].mxu1  ;;  %v1248_v11 = vpop.f32.mrb[82].mxu0 }
 0x199   :  { %v1217_v0 = vadd.f32 %v1216_v15, %v953_v62  ;;  %v1347_v60 = vmax.f32 %v1214_v53, 0.0  ;;  %v2191_v15 = vpop.f32.mrb[83].mxu0 }
 0x19b   :  { %v1348_v1 = vmax.f32 %v1217_v0, 0.0 }
 0x19c   :  { %v957_v3 = vpop.f32.mrb[68].mxu1 }
 0x19d   :  { %v1971_v4 = vpack.c.bf16 %v1348_v1, %v1347_v60  ;;  %v958_v6 = vadd.f32 %v2912_v58, %v957_v3  ;;  %v959_v5 = vpop.f32.mrb[69].mxu1  ;;  %v1253_v14 = vpop.f32.mrb[84].mxu0 }
 0x19e   :  { %v960_v10 = vpop.f32.mrb[70].mxu1  ;;  %v2194_v23 = vpop.f32.mrb[85].mxu0 }
 0x19f   :  { %2043 = vst [vmem:[%s3067_s3 + $0x80] sm:$0xff] %v1971_v4   ;;  %v1222_v7 = vadd.f32 %v1221_v22, %v958_v6  ;;  %v961_v13 = vadd.f32 %v2912_v58, %v960_v10  ;;  %v962_v9 = vpop.f32.mrb[71].mxu1  ;;  %v1256_v26 = vpop.f32.mrb[86].mxu0 }
 0x1a1   :  { %v1225_v16 = vadd.f32 %v1224_v29, %v961_v13  ;;  %v1349_v12 = vmax.f32 %v1222_v7, 0.0  ;;  %v2195_v29 = vpop.f32.mrb[87].mxu0 }
 0x1a3   :  { %v1350_v17 = vmax.f32 %v1225_v16, 0.0 }
 0x1a4   :  { %v965_v18 = vpop.f32.mrb[72].mxu1 }
 0x1a5   :  { %v1976_v19 = vpack.c.bf16 %v1350_v17, %v1349_v12  ;;  %v966_v20 = vadd.f32 %v2912_v58, %v965_v18  ;;  %v967_v21 = vpop.f32.mrb[73].mxu1  ;;  %v1261_v30 = vpop.f32.mrb[88].mxu0 }
 0x1a6   :  { %v968_v25 = vpop.f32.mrb[74].mxu1  ;;  %v2198_v38 = vpop.f32.mrb[89].mxu0 }
 0x1a7   :  { %2044 = vst [vmem:[%s3067_s3 + $0x88] sm:$0xff] %v1976_v19   ;;  %v1230_v22 = vadd.f32 %v1229_v37, %v966_v20  ;;  %v969_v28 = vadd.f32 %v2912_v58, %v968_v25  ;;  %v970_v24 = vpop.f32.mrb[75].mxu1  ;;  %v1264_v41 = vpop.f32.mrb[90].mxu0 }
 0x1a9   :  { %v1233_v31 = vadd.f32 %v1232_v44, %v969_v28  ;;  %v1351_v27 = vmax.f32 %v1230_v22, 0.0  ;;  %v2199_v44 = vpop.f32.mrb[91].mxu0 }
 0x1ab   :  { %v1352_v32 = vmax.f32 %v1233_v31, 0.0 }
 0x1ac   :  { %v973_v33 = vpop.f32.mrb[76].mxu1 }
 0x1ad   :  { %v1981_v34 = vpack.c.bf16 %v1352_v32, %v1351_v27  ;;  %v974_v35 = vadd.f32 %v2912_v58, %v973_v33  ;;  %v975_v36 = vpop.f32.mrb[77].mxu1  ;;  %v1269_v45 = vpop.f32.mrb[92].mxu0 }
 0x1ae   :  { %v976_v40 = vpop.f32.mrb[78].mxu1  ;;  %v2202_v2 = vpop.f32.mrb[93].mxu0 }
 0x1af   :  { %2045 = vst [vmem:[%s3067_s3 + $0x90] sm:$0xff] %v1981_v34   ;;  %v1238_v37 = vadd.f32 %v1237_v52, %v974_v35  ;;  %v977_v43 = vadd.f32 %v2912_v58, %v976_v40  ;;  %v978_v39 = vpop.f32.mrb[79].mxu1  ;;  %v1272_v55 = vpop.f32.mrb[94].mxu0 }
 0x1b1   :  { %v1241_v46 = vadd.f32 %v1240_v59, %v977_v43  ;;  %v1353_v42 = vmax.f32 %v1238_v37, 0.0  ;;  %v2203_v59 = vpop.f32.mrb[95].mxu0 }
 0x1b3   :  { %v1354_v47 = vmax.f32 %v1241_v46, 0.0 }
 0x1b4   :  { %v981_v48 = vpop.f32.mrb[80].mxu1 }
 0x1b5   :  { %v1986_v49 = vpack.c.bf16 %v1354_v47, %v1353_v42  ;;  %v982_v50 = vadd.f32 %v2912_v58, %v981_v48  ;;  %v983_v51 = vpop.f32.mrb[81].mxu1  ;;  %v1277_v60 = vpop.f32.mrb[96].mxu0 }
 0x1b6   :  { %v984_v54 = vpop.f32.mrb[82].mxu1  ;;  %v2206_v6 = vpop.f32.mrb[97].mxu0 }
 0x1b7   :  { %2046 = vst [vmem:[%s3067_s3 + $0x98] sm:$0xff] %v1986_v49   ;;  %v1246_v52 = vadd.f32 %v1245_v61, %v982_v50  ;;  %v985_v57 = vadd.f32 %v2912_v58, %v984_v54  ;;  %v986_v53 = vpop.f32.mrb[83].mxu1  ;;  %v1280_v8 = vpop.f32.mrb[98].mxu0 }
 0x1b9   :  { %v1249_v62 = vadd.f32 %v1248_v11, %v985_v57  ;;  %v1355_v56 = vmax.f32 %v1246_v52, 0.0  ;;  %v2207_v11 = vpop.f32.mrb[99].mxu0 }
 0x1bb   :  { %v1356_v63 = vmax.f32 %v1249_v62, 0.0 }
 0x1bc   :  { %v989_v0 = vpop.f32.mrb[84].mxu1 }
 0x1bd   :  { %v1991_v1 = vpack.c.bf16 %v1356_v63, %v1355_v56  ;;  %v990_v3 = vadd.f32 %v2912_v58, %v989_v0  ;;  %v991_v4 = vpop.f32.mrb[85].mxu1  ;;  %v1285_v12 = vpop.f32.mrb[100].mxu0 }
 0x1be   :  { %v992_v5 = vpop.f32.mrb[86].mxu1  ;;  %v2210_v20 = vpop.f32.mrb[101].mxu0 }
 0x1bf   :  { %2047 = vst [vmem:[%s3067_s3 + $0xa0] sm:$0xff] %v1991_v1   ;;  %v1254_v61 = vadd.f32 %v1253_v14, %v990_v3  ;;  %v993_v10 = vadd.f32 %v2912_v58, %v992_v5  ;;  %v994_v7 = vpop.f32.mrb[87].mxu1  ;;  %v1288_v23 = vpop.f32.mrb[102].mxu0 }
 0x1c1   :  { %v1257_v13 = vadd.f32 %v1256_v26, %v993_v10  ;;  %v1357_v9 = vmax.f32 %v1254_v61, 0.0  ;;  %v2211_v26 = vpop.f32.mrb[103].mxu0 }
 0x1c3   :  { %v1358_v15 = vmax.f32 %v1257_v13, 0.0 }
 0x1c4   :  { %v997_v16 = vpop.f32.mrb[88].mxu1 }
 0x1c5   :  { %v1996_v17 = vpack.c.bf16 %v1358_v15, %v1357_v9  ;;  %v998_v18 = vadd.f32 %v2912_v58, %v997_v16  ;;  %v999_v19 = vpop.f32.mrb[89].mxu1  ;;  %v1293_v27 = vpop.f32.mrb[104].mxu0 }
 0x1c6   :  { %v1000_v21 = vpop.f32.mrb[90].mxu1  ;;  %v2214_v35 = vpop.f32.mrb[105].mxu0 }
 0x1c7   :  { %2048 = vst [vmem:[%s3067_s3 + $0xa8] sm:$0xff] %v1996_v17   ;;  %v1262_v14 = vadd.f32 %v1261_v30, %v998_v18  ;;  %v1001_v25 = vadd.f32 %v2912_v58, %v1000_v21  ;;  %v1002_v22 = vpop.f32.mrb[91].mxu1  ;;  %v1296_v38 = vpop.f32.mrb[106].mxu0 }
 0x1c9   :  { %v1265_v28 = vadd.f32 %v1264_v41, %v1001_v25  ;;  %v1359_v24 = vmax.f32 %v1262_v14, 0.0  ;;  %v2215_v41 = vpop.f32.mrb[107].mxu0 }
 0x1cb   :  { %v1360_v29 = vmax.f32 %v1265_v28, 0.0 }
 0x1cc   :  { %v1005_v31 = vpop.f32.mrb[92].mxu1 }
 0x1cd   :  { %v2001_v32 = vpack.c.bf16 %v1360_v29, %v1359_v24  ;;  %v1006_v33 = vadd.f32 %v2912_v58, %v1005_v31  ;;  %v1007_v34 = vpop.f32.mrb[93].mxu1  ;;  %v1301_v42 = vpop.f32.mrb[108].mxu0 }
 0x1ce   :  { %v1008_v36 = vpop.f32.mrb[94].mxu1  ;;  %v2218_v50 = vpop.f32.mrb[109].mxu0 }
 0x1cf   :  { %2049 = vst [vmem:[%s3067_s3 + $0xb0] sm:$0xff] %v2001_v32   ;;  %v1270_v30 = vadd.f32 %v1269_v45, %v1006_v33  ;;  %v1009_v40 = vadd.f32 %v2912_v58, %v1008_v36  ;;  %v1010_v37 = vpop.f32.mrb[95].mxu1  ;;  %v1304_v2 = vpop.f32.mrb[110].mxu0 }
 0x1d1   :  { %v1273_v43 = vadd.f32 %v1272_v55, %v1009_v40  ;;  %v1361_v39 = vmax.f32 %v1270_v30, 0.0  ;;  %v2219_v55 = vpop.f32.mrb[111].mxu0 }
 0x1d3   :  { %v1362_v44 = vmax.f32 %v1273_v43, 0.0 }
 0x1d4   :  { %v1013_v46 = vpop.f32.mrb[96].mxu1 }
 0x1d5   :  { %v2006_v47 = vpack.c.bf16 %v1362_v44, %v1361_v39  ;;  %v1014_v48 = vadd.f32 %v2912_v58, %v1013_v46  ;;  %v1015_v49 = vpop.f32.mrb[97].mxu1  ;;  %v1309_v56 = vpop.f32.mrb[112].mxu0 }
 0x1d6   :  { %v1016_v51 = vpop.f32.mrb[98].mxu1  ;;  %v2222_v3 = vpop.f32.mrb[113].mxu0 }
 0x1d7   :  { %2050 = vst [vmem:[%s3067_s3 + $0xb8] sm:$0xff] %v2006_v47   ;;  %v1278_v45 = vadd.f32 %v1277_v60, %v1014_v48  ;;  %v1017_v54 = vadd.f32 %v2912_v58, %v1016_v51  ;;  %v1018_v52 = vpop.f32.mrb[99].mxu1  ;;  %v1312_v6 = vpop.f32.mrb[114].mxu0 }
 0x1d9   :  { %v1281_v57 = vadd.f32 %v1280_v8, %v1017_v54  ;;  %v1363_v53 = vmax.f32 %v1278_v45, 0.0  ;;  %v2223_v8 = vpop.f32.mrb[115].mxu0 }
 0x1db   :  { %v1364_v59 = vmax.f32 %v1281_v57, 0.0 }
 0x1dc   :  { %v1021_v62 = vpop.f32.mrb[100].mxu1 }
 0x1dd   :  { %v2011_v63 = vpack.c.bf16 %v1364_v59, %v1363_v53  ;;  %v1022_v0 = vadd.f32 %v2912_v58, %v1021_v62  ;;  %v1023_v1 = vpop.f32.mrb[101].mxu1 }
 0x1de   :  { %v1024_v4 = vpop.f32.mrb[102].mxu1 }
 0x1df   :  { %2051 = vst [vmem:[%s3067_s3 + $0xc0] sm:$0xff] %v2011_v63   ;;  %v1286_v60 = vadd.f32 %v1285_v12, %v1022_v0  ;;  %v1025_v5 = vadd.f32 %v2912_v58, %v1024_v4  ;;  %v1026_v61 = vpop.f32.mrb[103].mxu1 }
 0x1e1   :  { %v1289_v10 = vadd.f32 %v1288_v23, %v1025_v5  ;;  %v1365_v7 = vmax.f32 %v1286_v60, 0.0 }
 0x1e3   :  { %v1366_v11 = vmax.f32 %v1289_v10, 0.0 }
 0x1e4   :  { %v1029_v13 = vpop.f32.mrb[104].mxu1 }
 0x1e5   :  { %v2016_v9 = vpack.c.bf16 %v1366_v11, %v1365_v7  ;;  %v1030_v15 = vadd.f32 %v2912_v58, %v1029_v13  ;;  %v1031_v16 = vpop.f32.mrb[105].mxu1 }
 0x1e6   :  { %v1032_v17 = vpop.f32.mrb[106].mxu1 }
 0x1e7   :  { %2052 = vst [vmem:[%s3067_s3 + $0xc8] sm:$0xff] %v2016_v9   ;;  %v1294_v18 = vadd.f32 %v1293_v27, %v1030_v15  ;;  %v1033_v12 = vadd.f32 %v2912_v58, %v1032_v17  ;;  %v1034_v19 = vpop.f32.mrb[107].mxu1 }
 0x1e9   :  { %v1297_v20 = vadd.f32 %v1296_v38, %v1033_v12  ;;  %v1367_v21 = vmax.f32 %v1294_v18, 0.0 }
 0x1eb   :  { %v1368_v14 = vmax.f32 %v1297_v20, 0.0 }
 0x1ec   :  { %v1037_v23 = vpop.f32.mrb[108].mxu1 }
 0x1ed   :  { %v2021_v25 = vpack.c.bf16 %v1368_v14, %v1367_v21  ;;  %v1038_v22 = vadd.f32 %v2912_v58, %v1037_v23  ;;  %v1039_v26 = vpop.f32.mrb[109].mxu1 }
 0x1ee   :  { %v1040_v28 = vpop.f32.mrb[110].mxu1 }
 0x1ef   :  { %2053 = vst [vmem:[%s3067_s3 + $0xd0] sm:$0xff] %v2021_v25   ;;  %v1302_v24 = vadd.f32 %v1301_v42, %v1038_v22  ;;  %v1041_v29 = vadd.f32 %v2912_v58, %v1040_v28  ;;  %v1042_v31 = vpop.f32.mrb[111].mxu1 }
 0x1f1   :  { %v1305_v27 = vadd.f32 %v1304_v2, %v1041_v29  ;;  %v1369_v32 = vmax.f32 %v1302_v24, 0.0 }
 0x1f3   :  { %v1370_v33 = vmax.f32 %v1305_v27, 0.0 }
 0x1f4   :  { %v1045_v34 = vpop.f32.mrb[112].mxu1 }
 0x1f5   :  { %v2026_v35 = vpack.c.bf16 %v1370_v33, %v1369_v32  ;;  %v1046_v36 = vadd.f32 %v2912_v58, %v1045_v34  ;;  %v1047_v38 = vpop.f32.mrb[113].mxu1 }
 0x1f6   :  { %v1048_v30 = vpop.f32.mrb[114].mxu1 }
 0x1f7   :  { %2054 = vst [vmem:[%s3067_s3 + $0xd8] sm:$0xff] %v2026_v35   ;;  %v1310_v40 = vadd.f32 %v1309_v56, %v1046_v36  ;;  %v1049_v37 = vpop.f32.mrb[115].mxu1 }
 0x1f9   :  { %v1371_v41 = vmax.f32 %v1310_v40, 0.0 }
 0x1fb   :  { %v1887_v43 = vpack.c.bf16 %v1371_v41, %v1371_v41 }
 0x1fd   :  { %1657 = vst [vmem:[%s3067_s3 + $0xe0] sm:$0xf] %v1887_v43 }

// kernel: incept_init_block.10
= control target key start
LH: loop header
LB: loop body
LE: loop exit
PB: predicated region body
PF: predicated region fallthrough
CT: control target
= control target key end

     0   :  { %s733_s0 = inlined_call_operand.vmem [shape: bf16[104,128], index: 0, kind: input, shape index: {}]   ;;  %s734_s1 = inlined_call_operand.vmem [shape: bf16[104,128], index: 1, kind: input, shape index: {}]   ;;  %s735_s2 = inlined_call_operand.vmem [shape: bf16[104,128], index: 2, kind: input, shape index: {}]   ;;  %s736_s3 = inlined_call_operand.vmem [shape: bf16[104,128], index: 3, kind: input, shape index: {}]   ;;  %s737_s4 = inlined_call_operand.vmem [shape: bf16[104,128], index: 4, kind: input, shape index: {}]   ;;  %s738_s5 = inlined_call_operand.vmem [shape: bf16[104,128], index: 5, kind: input, shape index: {}]   ;;  %s739_s6 = inlined_call_operand.vmem [shape: bf16[104,128], index: 6, kind: input, shape index: {}]   ;;  %s740_s7 = inlined_call_operand.vmem [shape: bf16[104,128], index: 7, kind: input, shape index: {}]   ;;  %s741_s8 = inlined_call_operand.vmem [shape: bf16[104,128], index: 8, kind: input, shape index: {}]   ;;  %s742_s9 = inlined_call_operand.vmem [shape: bf16[104,128], index: 9, kind: output, shape index: {}]  }
   0x1   :  { %v32_v0 = vld [vmem:[%s733_s0] sm:$0xf]  ;;  %v33_v1 = vld [vmem:[%s733_s0 + $0x4] sm:$0xf]  ;;  %v34_v18 = vld [vmem:[%s733_s0 + $0x8] sm:$0xf] }
   0x2   :  { %v45_v2 = vld [vmem:[%s734_s1] sm:$0xf]  ;;  %v46_v3 = vld [vmem:[%s734_s1 + $0x4] sm:$0xf]  ;;  %v35_v19 = vld [vmem:[%s733_s0 + $0xc] sm:$0xf] }
   0x3   :  { %v58_v4 = vmax.bf16 %v45_v2, %v32_v0  ;;  %v71_v5 = vld [vmem:[%s735_s2] sm:$0xf]  ;;  %v72_v6 = vld [vmem:[%s735_s2 + $0x4] sm:$0xf]  ;;  %v59_v7 = vmax.bf16 %v46_v3, %v33_v1  ;;  %v47_v20 = vld [vmem:[%s734_s1 + $0x8] sm:$0xf] }
   0x4   :  { %v97_v8 = vld [vmem:[%s736_s3] sm:$0xf]  ;;  %v98_v10 = vld [vmem:[%s736_s3 + $0x4] sm:$0xf]  ;;  %v48_v22 = vld [vmem:[%s734_s1 + $0xc] sm:$0xf]  ;;  %v60_v23 = vmax.bf16 %v47_v20, %v34_v18 }
   0x5   :  { %v84_v9 = vmax.bf16 %v71_v5, %v58_v4  ;;  %v85_v11 = vmax.bf16 %v72_v6, %v59_v7  ;;  %v123_v12 = vld [vmem:[%s737_s4] sm:$0xf]  ;;  %v124_v14 = vld [vmem:[%s737_s4 + $0x4] sm:$0xf]  ;;  %v73_v24 = vld [vmem:[%s735_s2 + $0x8] sm:$0xf]  ;;  %v61_v28 = vmax.bf16 %v48_v22, %v35_v19 }
   0x6   :  { %v149_v15 = vld [vmem:[%s738_s5] sm:$0xf]  ;;  %v150_v16 = vld [vmem:[%s738_s5 + $0x4] sm:$0xf]  ;;  %v74_v25 = vld [vmem:[%s735_s2 + $0xc] sm:$0xf]  ;;  %v86_v33 = vmax.bf16 %v73_v24, %v60_v23 }
   0x7   :  { %v110_v13 = vmax.bf16 %v97_v8, %v84_v9  ;;  %v111_v17 = vmax.bf16 %v98_v10, %v85_v11  ;;  %v175_v27 = vld [vmem:[%s739_s6] sm:$0xf]  ;;  %v99_v29 = vld [vmem:[%s736_s3 + $0x8] sm:$0xf]  ;;  %v176_v31 = vld [vmem:[%s739_s6 + $0x4] sm:$0xf]  ;;  %v87_v38 = vmax.bf16 %v74_v25, %v61_v28 }
   0x8   :  { %v201_v32 = vld [vmem:[%s740_s7] sm:$0xf]  ;;  %v100_v34 = vld [vmem:[%s736_s3 + $0xc] sm:$0xf]  ;;  %v202_v36 = vld [vmem:[%s740_s7 + $0x4] sm:$0xf]  ;;  %v112_v42 = vmax.bf16 %v99_v29, %v86_v33 }
   0x9   :  { %v136_v21 = vmax.bf16 %v123_v12, %v110_v13  ;;  %v137_v26 = vmax.bf16 %v124_v14, %v111_v17  ;;  %v227_v37 = vld [vmem:[%s741_s8] sm:$0xf]  ;;  %v125_v39 = vld [vmem:[%s737_s4 + $0x8] sm:$0xf]  ;;  %v228_v41 = vld [vmem:[%s741_s8 + $0x4] sm:$0xf]  ;;  %v113_v47 = vmax.bf16 %v100_v34, %v87_v38 }
   0xa   :  { %v126_v43 = vld [vmem:[%s737_s4 + $0xc] sm:$0xf]  ;;  %v151_v44 = vld [vmem:[%s738_s5 + $0x8] sm:$0xf]  ;;  %v36_v48 = vld [vmem:[%s733_s0 + $0x10] sm:$0xf]  ;;  %v138_v52 = vmax.bf16 %v125_v39, %v112_v42 }
   0xb   :  { %v162_v30 = vmax.bf16 %v149_v15, %v136_v21  ;;  %v163_v35 = vmax.bf16 %v150_v16, %v137_v26  ;;  %v152_v45 = vld [vmem:[%s738_s5 + $0xc] sm:$0xf]  ;;  %v37_v49 = vld [vmem:[%s733_s0 + $0x14] sm:$0xf]  ;;  %v49_v50 = vld [vmem:[%s734_s1 + $0x10] sm:$0xf]  ;;  %v139_v58 = vmax.bf16 %v126_v43, %v113_v47 }
   0xc   :  { %v50_v53 = vld [vmem:[%s734_s1 + $0x14] sm:$0xf]  ;;  %v62_v54 = vmax.bf16 %v49_v50, %v36_v48  ;;  %v75_v55 = vld [vmem:[%s735_s2 + $0x10] sm:$0xf]  ;;  %v177_v59 = vld [vmem:[%s739_s6 + $0x8] sm:$0xf]  ;;  %v164_v63 = vmax.bf16 %v151_v44, %v138_v52 }
   0xd   :  { %v188_v40 = vmax.bf16 %v175_v27, %v162_v30  ;;  %v189_v46 = vmax.bf16 %v176_v31, %v163_v35  ;;  %v76_v56 = vld [vmem:[%s735_s2 + $0x14] sm:$0xf]  ;;  %v63_v60 = vmax.bf16 %v50_v53, %v37_v49  ;;  %v101_v61 = vld [vmem:[%s736_s3 + $0x10] sm:$0xf]  ;;  %v178_v0 = vld [vmem:[%s739_s6 + $0xc] sm:$0xf]  ;;  %v165_v5 = vmax.bf16 %v152_v45, %v139_v58 }
   0xe   :  { %v203_v1 = vld [vmem:[%s740_s7 + $0x8] sm:$0xf]  ;;  %v88_v2 = vmax.bf16 %v75_v55, %v62_v54  ;;  %v102_v3 = vld [vmem:[%s736_s3 + $0x14] sm:$0xf]  ;;  %v204_v6 = vld [vmem:[%s740_s7 + $0xc] sm:$0xf]  ;;  %v190_v10 = vmax.bf16 %v177_v59, %v164_v63 }
   0xf   :  { %v214_v51 = vmax.bf16 %v201_v32, %v188_v40  ;;  %v215_v57 = vmax.bf16 %v202_v36, %v189_v46  ;;  %v229_v7 = vld [vmem:[%s741_s8 + $0x8] sm:$0xf]  ;;  %v89_v8 = vmax.bf16 %v76_v56, %v63_v60  ;;  %v127_v9 = vld [vmem:[%s737_s4 + $0x10] sm:$0xf]  ;;  %v230_v11 = vld [vmem:[%s741_s8 + $0xc] sm:$0xf]  ;;  %v191_v17 = vmax.bf16 %v178_v0, %v165_v5 }
  0x10   :  { %v114_v12 = vmax.bf16 %v101_v61, %v88_v2  ;;  %v128_v13 = vld [vmem:[%s737_s4 + $0x14] sm:$0xf]  ;;  %v153_v14 = vld [vmem:[%s738_s5 + $0x10] sm:$0xf]  ;;  %v38_v19 = vld [vmem:[%s733_s0 + $0x18] sm:$0xf]  ;;  %v216_v22 = vmax.bf16 %v203_v1, %v190_v10 }
  0x11   :  { %v240_v62 = vmax.bf16 %v227_v37, %v214_v51  ;;  %v241_v4 = vmax.bf16 %v228_v41, %v215_v57  ;;  %v154_v15 = vld [vmem:[%s738_s5 + $0x14] sm:$0xf]  ;;  %v115_v18 = vmax.bf16 %v102_v3, %v89_v8  ;;  %v39_v20 = vld [vmem:[%s733_s0 + $0x1c] sm:$0xf]  ;;  %v51_v21 = vld [vmem:[%s734_s1 + $0x18] sm:$0xf]  ;;  %v217_v28 = vmax.bf16 %v204_v6, %v191_v17 }
  0x12   :  { %v140_v23 = vmax.bf16 %v127_v9, %v114_v12  ;;  %v52_v24 = vld [vmem:[%s734_s1 + $0x1c] sm:$0xf]  ;;  %v64_v25 = vmax.bf16 %v51_v21, %v38_v19  ;;  %v77_v26 = vld [vmem:[%s735_s2 + $0x18] sm:$0xf]  ;;  %v179_v30 = vld [vmem:[%s739_s6 + $0x10] sm:$0xf]  ;;  %v242_v33 = vmax.bf16 %v229_v7, %v216_v22 }
  0x13   :  { %v300_v16 = vcombine.low %v240_v62, %v241_v4  ;;  %v78_v27 = vld [vmem:[%s735_s2 + $0x1c] sm:$0xf]  ;;  %v141_v29 = vmax.bf16 %v128_v13, %v115_v18  ;;  %v65_v31 = vmax.bf16 %v52_v24, %v39_v20  ;;  %v103_v32 = vld [vmem:[%s736_s3 + $0x18] sm:$0xf]  ;;  %v180_v35 = vld [vmem:[%s739_s6 + $0x14] sm:$0xf]  ;;  %v243_v39 = vmax.bf16 %v230_v11, %v217_v28 }
  0x14   :  { %v166_v34 = vmax.bf16 %v153_v14, %v140_v23  ;;  %v205_v36 = vld [vmem:[%s740_s7 + $0x10] sm:$0xf]  ;;  %v90_v37 = vmax.bf16 %v77_v26, %v64_v25  ;;  %v104_v38 = vld [vmem:[%s736_s3 + $0x1c] sm:$0xf]  ;;  %v206_v41 = vld [vmem:[%s740_s7 + $0x14] sm:$0xf] }
  0x15   :  { %274 = vst [vmem:[%s742_s9] sm:$0xff] %v300_v16   ;;  %v167_v40 = vmax.bf16 %v154_v15, %v141_v29  ;;  %v231_v42 = vld [vmem:[%s741_s8 + $0x10] sm:$0xf]  ;;  %v91_v43 = vmax.bf16 %v78_v27, %v65_v31  ;;  %v129_v44 = vld [vmem:[%s737_s4 + $0x18] sm:$0xf]  ;;  %v232_v46 = vld [vmem:[%s741_s8 + $0x14] sm:$0xf]  ;;  %v301_v51 = vcombine.low %v242_v33, %v243_v39 }
  0x16   :  { %v192_v45 = vmax.bf16 %v179_v30, %v166_v34  ;;  %v116_v47 = vmax.bf16 %v103_v32, %v90_v37  ;;  %v130_v48 = vld [vmem:[%s737_s4 + $0x1c] sm:$0xf]  ;;  %v155_v49 = vld [vmem:[%s738_s5 + $0x18] sm:$0xf]  ;;  %v40_v54 = vld [vmem:[%s733_s0 + $0x20] sm:$0xf] }
  0x17   :  { %v156_v50 = vld [vmem:[%s738_s5 + $0x1c] sm:$0xf]  ;;  %v193_v52 = vmax.bf16 %v180_v35, %v167_v40  ;;  %v117_v53 = vmax.bf16 %v104_v38, %v91_v43  ;;  %v41_v55 = vld [vmem:[%s733_s0 + $0x24] sm:$0xf]  ;;  %v53_v56 = vld [vmem:[%s734_s1 + $0x20] sm:$0xf] }
  0x18   :  { %v218_v57 = vmax.bf16 %v205_v36, %v192_v45  ;;  %v142_v58 = vmax.bf16 %v129_v44, %v116_v47  ;;  %v54_v59 = vld [vmem:[%s734_s1 + $0x24] sm:$0xf]  ;;  %v66_v60 = vmax.bf16 %v53_v56, %v40_v54  ;;  %v79_v61 = vld [vmem:[%s735_s2 + $0x20] sm:$0xf]  ;;  %302 = vst [vmem:[%s742_s9 + $0x8] sm:$0xff] %v301_v51  }
  0x19   :  { %v80_v62 = vld [vmem:[%s735_s2 + $0x24] sm:$0xf]  ;;  %v219_v63 = vmax.bf16 %v206_v41, %v193_v52  ;;  %v143_v0 = vmax.bf16 %v130_v48, %v117_v53  ;;  %v181_v1 = vld [vmem:[%s739_s6 + $0x18] sm:$0xf]  ;;  %v67_v2 = vmax.bf16 %v54_v59, %v41_v55  ;;  %v105_v3 = vld [vmem:[%s736_s3 + $0x20] sm:$0xf] }
  0x1a   :  { %v244_v4 = vmax.bf16 %v231_v42, %v218_v57  ;;  %v168_v5 = vmax.bf16 %v155_v49, %v142_v58  ;;  %v182_v6 = vld [vmem:[%s739_s6 + $0x1c] sm:$0xf]  ;;  %v207_v7 = vld [vmem:[%s740_s7 + $0x18] sm:$0xf]  ;;  %v92_v8 = vmax.bf16 %v79_v61, %v66_v60  ;;  %v106_v9 = vld [vmem:[%s736_s3 + $0x24] sm:$0xf] }
  0x1b   :  { %v245_v10 = vmax.bf16 %v232_v46, %v219_v63  ;;  %v169_v11 = vmax.bf16 %v156_v50, %v143_v0  ;;  %v208_v12 = vld [vmem:[%s740_s7 + $0x1c] sm:$0xf]  ;;  %v233_v13 = vld [vmem:[%s741_s8 + $0x18] sm:$0xf]  ;;  %v93_v14 = vmax.bf16 %v80_v62, %v67_v2  ;;  %v131_v15 = vld [vmem:[%s737_s4 + $0x20] sm:$0xf] }
  0x1c   :  { %v194_v16 = vmax.bf16 %v181_v1, %v168_v5  ;;  %v234_v17 = vld [vmem:[%s741_s8 + $0x1c] sm:$0xf]  ;;  %v118_v18 = vmax.bf16 %v105_v3, %v92_v8  ;;  %v132_v19 = vld [vmem:[%s737_s4 + $0x24] sm:$0xf]  ;;  %v157_v20 = vld [vmem:[%s738_s5 + $0x20] sm:$0xf] }
  0x1d   :  { %v158_v21 = vld [vmem:[%s738_s5 + $0x24] sm:$0xf]  ;;  %v303_v22 = vcombine.low %v244_v4, %v245_v10  ;;  %v195_v23 = vmax.bf16 %v182_v6, %v169_v11  ;;  %v119_v24 = vmax.bf16 %v106_v9, %v93_v14  ;;  %v42_v25 = vld [vmem:[%s733_s0 + $0x28] sm:$0xf]  ;;  %v43_v26 = vld [vmem:[%s733_s0 + $0x2c] sm:$0xf] }
  0x1e   :  { %v55_v27 = vld [vmem:[%s734_s1 + $0x28] sm:$0xf]  ;;  %v220_v28 = vmax.bf16 %v207_v7, %v194_v16  ;;  %v144_v29 = vmax.bf16 %v131_v15, %v118_v18  ;;  %v56_v30 = vld [vmem:[%s734_s1 + $0x2c] sm:$0xf]  ;;  %v183_v36 = vld [vmem:[%s739_s6 + $0x20] sm:$0xf] }
  0x1f   :  { %v68_v31 = vmax.bf16 %v55_v27, %v42_v25  ;;  %v81_v32 = vld [vmem:[%s735_s2 + $0x28] sm:$0xf]  ;;  %v82_v33 = vld [vmem:[%s735_s2 + $0x2c] sm:$0xf]  ;;  %304 = vst [vmem:[%s742_s9 + $0x10] sm:$0xff] %v303_v22   ;;  %v221_v34 = vmax.bf16 %v208_v12, %v195_v23  ;;  %v145_v35 = vmax.bf16 %v132_v19, %v119_v24  ;;  %v69_v37 = vmax.bf16 %v56_v30, %v43_v26 }
  0x20   :  { %v107_v38 = vld [vmem:[%s736_s3 + $0x28] sm:$0xf]  ;;  %v246_v39 = vmax.bf16 %v233_v13, %v220_v28  ;;  %v170_v40 = vmax.bf16 %v157_v20, %v144_v29  ;;  %v184_v41 = vld [vmem:[%s739_s6 + $0x24] sm:$0xf]  ;;  %v108_v43 = vld [vmem:[%s736_s3 + $0x2c] sm:$0xf] }
  0x21   :  { %v94_v42 = vmax.bf16 %v81_v32, %v68_v31  ;;  %v247_v44 = vmax.bf16 %v234_v17, %v221_v34  ;;  %v171_v45 = vmax.bf16 %v158_v21, %v145_v35  ;;  %v209_v46 = vld [vmem:[%s740_s7 + $0x20] sm:$0xf]  ;;  %v210_v47 = vld [vmem:[%s740_s7 + $0x24] sm:$0xf]  ;;  %v95_v48 = vmax.bf16 %v82_v33, %v69_v37  ;;  %v133_v49 = vld [vmem:[%s737_s4 + $0x28] sm:$0xf] }
  0x22   :  { %v196_v50 = vmax.bf16 %v183_v36, %v170_v40  ;;  %v235_v51 = vld [vmem:[%s741_s8 + $0x20] sm:$0xf]  ;;  %v134_v53 = vld [vmem:[%s737_s4 + $0x2c] sm:$0xf]  ;;  %v159_v54 = vld [vmem:[%s738_s5 + $0x28] sm:$0xf] }
  0x23   :  { %v120_v52 = vmax.bf16 %v107_v38, %v94_v42  ;;  %v305_v55 = vcombine.low %v246_v39, %v247_v44  ;;  %v197_v56 = vmax.bf16 %v184_v41, %v171_v45  ;;  %v121_v57 = vmax.bf16 %v108_v43, %v95_v48  ;;  %v44_v58 = vld [vmem:[%s733_s0 + $0x30] sm:$0xf]  ;;  %v236_v62 = vld [vmem:[%s741_s8 + $0x24] sm:$0xf]  ;;  %v160_v0 = vld [vmem:[%s738_s5 + $0x2c] sm:$0xf] }
  0x24   :  { %v57_v59 = vld [vmem:[%s734_s1 + $0x30] sm:$0xf]  ;;  %v222_v61 = vmax.bf16 %v209_v46, %v196_v50  ;;  %v185_v4 = vld [vmem:[%s739_s6 + $0x28] sm:$0xf]  ;;  %v186_v8 = vld [vmem:[%s739_s6 + $0x2c] sm:$0xf] }
  0x25   :  { %v83_v60 = vld [vmem:[%s735_s2 + $0x30] sm:$0xf]  ;;  %v146_v63 = vmax.bf16 %v133_v49, %v120_v52  ;;  %v70_v1 = vmax.bf16 %v57_v59, %v44_v58  ;;  %306 = vst [vmem:[%s742_s9 + $0x18] sm:$0xff] %v305_v55   ;;  %v223_v2 = vmax.bf16 %v210_v47, %v197_v56  ;;  %v147_v3 = vmax.bf16 %v134_v53, %v121_v57  ;;  %v211_v12 = vld [vmem:[%s740_s7 + $0x28] sm:$0xf] }
  0x26   :  { %v109_v5 = vld [vmem:[%s736_s3 + $0x30] sm:$0xf]  ;;  %v248_v6 = vmax.bf16 %v235_v51, %v222_v61  ;;  %v212_v15 = vld [vmem:[%s740_s7 + $0x2c] sm:$0xf]  ;;  %v237_v19 = vld [vmem:[%s741_s8 + $0x28] sm:$0xf] }
  0x27   :  { %v172_v7 = vmax.bf16 %v159_v54, %v146_v63  ;;  %v96_v9 = vmax.bf16 %v83_v60, %v70_v1  ;;  %v249_v10 = vmax.bf16 %v236_v62, %v223_v2  ;;  %v173_v11 = vmax.bf16 %v160_v0, %v147_v3  ;;  %v135_v13 = vld [vmem:[%s737_s4 + $0x30] sm:$0xf]  ;;  %v238_v22 = vld [vmem:[%s741_s8 + $0x2c] sm:$0xf] }
  0x28   :  { %v161_v20 = vld [vmem:[%s738_s5 + $0x30] sm:$0xf] }
  0x29   :  { %v198_v14 = vmax.bf16 %v185_v4, %v172_v7  ;;  %v122_v16 = vmax.bf16 %v109_v5, %v96_v9  ;;  %v307_v17 = vcombine.low %v248_v6, %v249_v10  ;;  %v199_v18 = vmax.bf16 %v186_v8, %v173_v11  ;;  %v187_v25 = vld [vmem:[%s739_s6 + $0x30] sm:$0xf] }
  0x2a   :  { %v213_v29 = vld [vmem:[%s740_s7 + $0x30] sm:$0xf] }
  0x2b   :  { %v224_v21 = vmax.bf16 %v211_v12, %v198_v14  ;;  %v148_v23 = vmax.bf16 %v135_v13, %v122_v16  ;;  %308 = vst [vmem:[%s742_s9 + $0x20] sm:$0xff] %v307_v17   ;;  %v225_v24 = vmax.bf16 %v212_v15, %v199_v18  ;;  %v239_v32 = vld [vmem:[%s741_s8 + $0x30] sm:$0xf] }
  0x2d   :  { %v250_v26 = vmax.bf16 %v237_v19, %v224_v21  ;;  %v174_v27 = vmax.bf16 %v161_v20, %v148_v23  ;;  %v251_v28 = vmax.bf16 %v238_v22, %v225_v24 }
  0x2f   :  { %v200_v30 = vmax.bf16 %v187_v25, %v174_v27  ;;  %v309_v31 = vcombine.low %v250_v26, %v251_v28 }
  0x31   :  { %v226_v33 = vmax.bf16 %v213_v29, %v200_v30  ;;  %310 = vst [vmem:[%s742_s9 + $0x28] sm:$0xff] %v309_v31  }
  0x33   :  { %v252_v34 = vmax.bf16 %v239_v32, %v226_v33 }
  0x35   :  { %265 = vst [vmem:[%s742_s9 + $0x30] sm:$0xf] %v252_v34 }

// kernel: incept_init_block.11
= control target key start
LH: loop header
LB: loop body
LE: loop exit
PB: predicated region body
PF: predicated region fallthrough
CT: control target
= control target key end

     0   :  { %v479_v0 = vmov 0.0   ;;  %vm480_vm0 = vmmov 0   ;;  %s592_s1 = inlined_call_operand.vmem [shape: bf16[128,128], index: 1, kind: input, shape index: {}]   ;;  %s593_s0 = inlined_call_operand.vmem [shape: bf16[104,128], index: 0, kind: input, shape index: {}]   ;;  %s594_s2 = inlined_call_operand.vmem [shape: f32[1,128], index: 2, kind: input, shape index: {}]   ;;  %s595_s3 = inlined_call_operand.vmem [shape: bf16[104,128], index: 3, kind: output, shape index: {}]  }
   0x1   :  { %402 = vmatprep.subr.bf16.mxu0 %v479_v0  ;;  %v464_v1 = vld [vmem:[%s592_s1] sm:$0xff]   ;;  %446 = vmatprep.subr.bf16.mxu1 %v479_v0  ;;  %v465_v2 = vld [vmem:[%s592_s1 + $0x8] sm:$0xff]   ;;  %v466_v3 = vld [vmem:[%s592_s1 + $0x10] sm:$0xff]  }
   0x2   :  { %418 = vmatprep.mubr.msk.bf16.mxu0 %vm480_vm0, %v479_v0  ;;  %434 = vmatprep.mubr.msk.bf16.mxu1 %vm480_vm0, %v479_v0  ;;  %v467_v4 = vld [vmem:[%s592_s1 + $0x18] sm:$0xff]   ;;  %v468_v5 = vld [vmem:[%s592_s1 + $0x20] sm:$0xff]   ;;  %v469_v6 = vld [vmem:[%s592_s1 + $0x28] sm:$0xff]  }
   0x3   :  { %403 = vmatpush3.bf16.msra.mxu0 %v464_v1  ;;  %454 = vmatpush3.bf16.msra.mxu1 %v464_v1  ;;  %v470_v7 = vld [vmem:[%s592_s1 + $0x30] sm:$0xff]   ;;  %v471_v8 = vld [vmem:[%s592_s1 + $0x38] sm:$0xff]   ;;  %v472_v9 = vld [vmem:[%s593_s0] sm:$0xff]  }
   0x4   :  { %404 = vmatprep.subr.bf16.mxu0 %v479_v0  ;;  %447 = vmatprep.subr.bf16.mxu1 %v479_v0  ;;  %v473_v10 = vld [vmem:[%s593_s0 + $0x20] sm:$0xff]   ;;  %v474_v11 = vld [vmem:[%s593_s0 + $0x8] sm:$0xff]   ;;  %v476_v13 = vld [vmem:[%s593_s0 + $0x10] sm:$0xff]  }
   0x5   :  { %v475_v12 = vld [vmem:[%s593_s0 + $0x28] sm:$0xff]   ;;  %v477_v14 = vld [vmem:[%s593_s0 + $0x30] ss:$0 sps:$4 sm:$0xff]   ;;  %v478_v15 = vld [vmem:[%s593_s0 + $0x18] sm:$0xff]  }
   0x6   :  { %v556_v16 = vld [vmem:[%s594_s2] ss:$0 sm:$0xff] }
   0x7   :  { %405 = vmatpush3.bf16.msra.mxu0 %v465_v2  ;;  %455 = vmatpush3.bf16.msra.mxu1 %v465_v2 }
   0x8   :  { %406 = vmatprep.subr.bf16.mxu0 %v479_v0  ;;  %448 = vmatprep.subr.bf16.mxu1 %v479_v0 }
   0xb   :  { %407 = vmatpush3.bf16.msra.mxu0 %v466_v3  ;;  %456 = vmatpush3.bf16.msra.mxu1 %v466_v3 }
   0xc   :  { %408 = vmatprep.subr.bf16.mxu0 %v479_v0  ;;  %449 = vmatprep.subr.bf16.mxu1 %v479_v0 }
   0xf   :  { %409 = vmatpush3.bf16.msra.mxu0 %v467_v4  ;;  %457 = vmatpush3.bf16.msra.mxu1 %v467_v4 }
  0x10   :  { %410 = vmatprep.subr.bf16.mxu0 %v479_v0  ;;  %450 = vmatprep.subr.bf16.mxu1 %v479_v0 }
  0x13   :  { %411 = vmatpush3.bf16.msra.mxu0 %v468_v5  ;;  %458 = vmatpush3.bf16.msra.mxu1 %v468_v5 }
  0x14   :  { %412 = vmatprep.subr.bf16.mxu0 %v479_v0  ;;  %451 = vmatprep.subr.bf16.mxu1 %v479_v0 }
  0x17   :  { %413 = vmatpush3.bf16.msra.mxu0 %v469_v6  ;;  %459 = vmatpush3.bf16.msra.mxu1 %v469_v6 }
  0x18   :  { %414 = vmatprep.subr.bf16.mxu0 %v479_v0  ;;  %452 = vmatprep.subr.bf16.mxu1 %v479_v0 }
  0x1b   :  { %415 = vmatpush3.bf16.msra.mxu0 %v470_v7  ;;  %460 = vmatpush3.bf16.msra.mxu1 %v470_v7 }
  0x1c   :  { %416 = vmatprep.subr.bf16.mxu0 %v479_v0  ;;  %453 = vmatprep.subr.bf16.mxu1 %v479_v0 }
  0x1f   :  { %417 = vmatpush3.bf16.msra.mxu0 %v471_v8  ;;  %461 = vmatpush3.bf16.msra.mxu1 %v471_v8 }
  0x22   :  { %419 = vmatmul.mubr.bf16.vlgmr.msra.gmra.mrb[0].mxu0 %v472_v9  ;;  %435 = vmatmul.mubr.bf16.vlgmr.msra.gmra.mrb[0].mxu1 %v473_v10 }
  0x23   :  { %422 = vmatprep.mubr.msk.bf16.mxu0 %vm480_vm0, %v479_v0  ;;  %438 = vmatprep.mubr.msk.bf16.mxu1 %vm480_vm0, %v479_v0 }
  0x2a   :  { %423 = vmatmul.mubr.bf16.gmra.mrb[4].mxu0 %v474_v11  ;;  %439 = vmatmul.mubr.bf16.gmra.mrb[4].mxu1 %v475_v12 }
  0x2b   :  { %426 = vmatprep.mubr.msk.bf16.mxu0 %vm480_vm0, %v479_v0  ;;  %442 = vmatprep.mubr.msk.bf16.mxu1 %vm480_vm0, %v479_v0 }
  0x32   :  { %427 = vmatmul.mubr.bf16.gmra.mrb[8].mxu0 %v476_v13  ;;  %443 = vmatmul.mubr.bf16.gmra.mrb[8].mxu1 %v477_v14 }
  0x33   :  { %430 = vmatprep.mubr.msk.bf16.mxu0 %vm480_vm0, %v479_v0 }
  0x3a   :  { %431 = vmatmul.mubr.bf16.gmra.mrb[12].mxu0 %v478_v15 }
  0xf5   :  { %v173_v17 = vpop.f32.mrb[0].mxu0  ;;  %v205_v18 = vpop.f32.mrb[0].mxu1 }
  0xf6   :  { %v174_v19 = vadd.f32 %v556_v16, %v173_v17  ;;  %v420_v20 = vpop.f32.mrb[1].mxu0  ;;  %v206_v21 = vadd.f32 %v556_v16, %v205_v18  ;;  %v436_v22 = vpop.f32.mrb[1].mxu1 }
  0xf7   :  { %v176_v23 = vpop.f32.mrb[2].mxu0  ;;  %v208_v24 = vpop.f32.mrb[2].mxu1 }
  0xf8   :  { %v177_v25 = vadd.f32 %v556_v16, %v176_v23  ;;  %v421_v26 = vpop.f32.mrb[3].mxu0  ;;  %v235_v27 = vmax.f32 %v206_v21, 0.0  ;;  %v209_v28 = vadd.f32 %v556_v16, %v208_v24  ;;  %v437_v29 = vpop.f32.mrb[3].mxu1  ;;  %v227_v30 = vmax.f32 %v174_v19, 0.0 }
  0xfa   :  { %v228_v31 = vmax.f32 %v177_v25, 0.0  ;;  %v236_v32 = vmax.f32 %v209_v28, 0.0 }
  0xfc   :  { %v355_v33 = vpack.c.bf16 %v228_v31, %v227_v30  ;;  %v375_v34 = vpack.c.bf16 %v236_v32, %v235_v27 }
  0xfd   :  { %v181_v35 = vpop.f32.mrb[4].mxu0  ;;  %v213_v36 = vpop.f32.mrb[4].mxu1 }
  0xfe   :  { %356 = vst [vmem:[%s595_s3] sm:$0xff] %v355_v33   ;;  %v182_v37 = vadd.f32 %v556_v16, %v181_v35  ;;  %v424_v38 = vpop.f32.mrb[5].mxu0  ;;  %385 = vst [vmem:[%s595_s3 + $0x20] sm:$0xff] %v375_v34   ;;  %v214_v39 = vadd.f32 %v556_v16, %v213_v36  ;;  %v440_v40 = vpop.f32.mrb[5].mxu1 }
  0xff   :  { %v184_v41 = vpop.f32.mrb[6].mxu0  ;;  %v216_v42 = vpop.f32.mrb[6].mxu1 }
 0x100   :  { %v185_v43 = vadd.f32 %v556_v16, %v184_v41  ;;  %v425_v44 = vpop.f32.mrb[7].mxu0  ;;  %v237_v45 = vmax.f32 %v214_v39, 0.0  ;;  %v217_v46 = vadd.f32 %v556_v16, %v216_v42  ;;  %v441_v47 = vpop.f32.mrb[7].mxu1  ;;  %v229_v48 = vmax.f32 %v182_v37, 0.0 }
 0x102   :  { %v230_v49 = vmax.f32 %v185_v43, 0.0  ;;  %v238_v50 = vmax.f32 %v217_v46, 0.0 }
 0x104   :  { %v360_v51 = vpack.c.bf16 %v230_v49, %v229_v48  ;;  %v380_v52 = vpack.c.bf16 %v238_v50, %v237_v45 }
 0x105   :  { %v189_v53 = vpop.f32.mrb[8].mxu0  ;;  %v221_v54 = vpop.f32.mrb[8].mxu1 }
 0x106   :  { %382 = vst [vmem:[%s595_s3 + $0x8] sm:$0xff] %v360_v51   ;;  %v190_v55 = vadd.f32 %v556_v16, %v189_v53  ;;  %v428_v56 = vpop.f32.mrb[9].mxu0  ;;  %386 = vst [vmem:[%s595_s3 + $0x28] sm:$0xff] %v380_v52   ;;  %v222_v57 = vadd.f32 %v556_v16, %v221_v54  ;;  %v444_v58 = vpop.f32.mrb[9].mxu1 }
 0x107   :  { %v192_v59 = vpop.f32.mrb[10].mxu0  ;;  %v224_v60 = vpop.f32.mrb[10].mxu1 }
 0x108   :  { %v193_v61 = vadd.f32 %v556_v16, %v192_v59  ;;  %v429_v62 = vpop.f32.mrb[11].mxu0  ;;  %v239_v63 = vmax.f32 %v222_v57, 0.0  ;;  %v445_v0 = vpop.f32.mrb[11].mxu1  ;;  %v231_v1 = vmax.f32 %v190_v55, 0.0 }
 0x10a   :  { %v232_v2 = vmax.f32 %v193_v61, 0.0  ;;  %v351_v3 = vpack.c.bf16 %v239_v63, %v239_v63 }
 0x10c   :  { %v365_v4 = vpack.c.bf16 %v232_v2, %v231_v1  ;;  %305 = vst [vmem:[%s595_s3 + $0x30] sm:$0xf] %v351_v3 }
 0x10d   :  { %v197_v5 = vpop.f32.mrb[12].mxu0 }
 0x10e   :  { %383 = vst [vmem:[%s595_s3 + $0x10] sm:$0xff] %v365_v4   ;;  %v198_v6 = vadd.f32 %v556_v16, %v197_v5  ;;  %v432_v7 = vpop.f32.mrb[13].mxu0 }
 0x10f   :  { %v200_v8 = vpop.f32.mrb[14].mxu0 }
 0x110   :  { %v201_v9 = vadd.f32 %v556_v16, %v200_v8  ;;  %v433_v10 = vpop.f32.mrb[15].mxu0  ;;  %v233_v11 = vmax.f32 %v198_v6, 0.0 }
 0x112   :  { %v234_v12 = vmax.f32 %v201_v9, 0.0 }
 0x114   :  { %v370_v13 = vpack.c.bf16 %v234_v12, %v233_v11 }
 0x116   :  { %384 = vst [vmem:[%s595_s3 + $0x18] sm:$0xff] %v370_v13  }

// kernel: incept_init_block.12
= control target key start
LH: loop header
LB: loop body
LE: loop exit
PB: predicated region body
PF: predicated region fallthrough
CT: control target
= control target key end

     0   :  { %s1826_s1 = inlined_call_operand.vmem [shape: bf16[768,256], index: 1, kind: input, shape index: {}]   ;;  %s1827_s0 = inlined_call_operand.vmem [shape: bf16[56,768], index: 0, kind: input, shape index: {}]   ;;  %s1828_s2 = inlined_call_operand.vmem [shape: f32[1,256], index: 2, kind: input, shape index: {}]   ;;  %s1829_s3 = inlined_call_operand.vmem [shape: bf16[56,256], index: 3, kind: output, shape index: {}]  }
   0x1   :  { %v1224_v0 = vld [vmem:[%s1826_s1 + $0x4] ss:$8 sps:$4 sm:$0xff]   ;;  %v1228_v2 = vld [vmem:[%s1826_s1] ss:$8 sps:$4 sm:$0xff]   ;;  %v1230_v4 = vld [vmem:[%s1826_s1 + $0x14] ss:$8 sps:$4 sm:$0xff]  }
   0x2   :  { %v1226_v1 = vld [vmem:[%s1826_s1 + $0x104] ss:$8 sps:$4 sm:$0xff]   ;;  %734 = vmatprep.subr.bf16.mxu1 %v1224_v0  ;;  %v1229_v3 = vld [vmem:[%s1826_s1 + $0x100] ss:$8 sps:$4 sm:$0xff]   ;;  %v1232_v5 = vld [vmem:[%s1826_s1 + $0x114] ss:$8 sps:$4 sm:$0xff]  }
   0x3   :  { %805 = vmatprep.subr.bf16.mxu0 %v1226_v1  ;;  %735 = vmatpush1.bf16.msra.mxu1 %v1228_v2  ;;  %v1234_v6 = vld [vmem:[%s1826_s1 + $0x10] ss:$8 sps:$4 sm:$0xff]   ;;  %v1236_v8 = vld [vmem:[%s1826_s1 + $0x24] ss:$8 sps:$4 sm:$0xff]   ;;  %v1240_v10 = vld [vmem:[%s1826_s1 + $0x20] ss:$8 sps:$4 sm:$0xff]  }
   0x4   :  { %806 = vmatpush1.bf16.msra.mxu0 %v1229_v3  ;;  %736 = vmatprep.subr.bf16.mxu1 %v1230_v4  ;;  %v1235_v7 = vld [vmem:[%s1826_s1 + $0x110] ss:$8 sps:$4 sm:$0xff]   ;;  %v1238_v9 = vld [vmem:[%s1826_s1 + $0x124] ss:$8 sps:$4 sm:$0xff]   ;;  %v1241_v11 = vld [vmem:[%s1826_s1 + $0x120] ss:$8 sps:$4 sm:$0xff]  }
   0x5   :  { %807 = vmatprep.subr.bf16.mxu0 %v1232_v5  ;;  %v1242_v12 = vld [vmem:[%s1826_s1 + $0x34] ss:$8 sps:$4 sm:$0xff]   ;;  %v1246_v14 = vld [vmem:[%s1826_s1 + $0x30] ss:$8 sps:$4 sm:$0xff]   ;;  %v1248_v16 = vld [vmem:[%s1826_s1 + $0x44] ss:$8 sps:$4 sm:$0xff]  }
   0x6   :  { %v1244_v13 = vld [vmem:[%s1826_s1 + $0x134] ss:$8 sps:$4 sm:$0xff]   ;;  %v1247_v15 = vld [vmem:[%s1826_s1 + $0x130] ss:$8 sps:$4 sm:$0xff]   ;;  %v1250_v17 = vld [vmem:[%s1826_s1 + $0x144] ss:$8 sps:$4 sm:$0xff]  }
   0x7   :  { %737 = vmatpush1.bf16.msra.mxu1 %v1234_v6  ;;  %v1252_v18 = vld [vmem:[%s1826_s1 + $0x40] ss:$8 sps:$4 sm:$0xff]   ;;  %v1254_v20 = vld [vmem:[%s1826_s1 + $0x54] ss:$8 sps:$4 sm:$0xff]   ;;  %v1258_v22 = vld [vmem:[%s1826_s1 + $0x50] ss:$8 sps:$4 sm:$0xff]  }
   0x8   :  { %808 = vmatpush1.bf16.msra.mxu0 %v1235_v7  ;;  %738 = vmatprep.subr.bf16.mxu1 %v1236_v8  ;;  %v1253_v19 = vld [vmem:[%s1826_s1 + $0x140] ss:$8 sps:$4 sm:$0xff]   ;;  %v1256_v21 = vld [vmem:[%s1826_s1 + $0x154] ss:$8 sps:$4 sm:$0xff]   ;;  %v1259_v23 = vld [vmem:[%s1826_s1 + $0x150] ss:$8 sps:$4 sm:$0xff]  }
   0x9   :  { %809 = vmatprep.subr.bf16.mxu0 %v1238_v9  ;;  %v1260_v24 = vld [vmem:[%s1826_s1 + $0x64] ss:$8 sps:$4 sm:$0xff]   ;;  %v1264_v26 = vld [vmem:[%s1826_s1 + $0x60] ss:$8 sps:$4 sm:$0xff]   ;;  %v1266_v28 = vld [vmem:[%s1826_s1 + $0x74] ss:$8 sps:$4 sm:$0xff]  }
   0xa   :  { %v1262_v25 = vld [vmem:[%s1826_s1 + $0x164] ss:$8 sps:$4 sm:$0xff]   ;;  %v1265_v27 = vld [vmem:[%s1826_s1 + $0x160] ss:$8 sps:$4 sm:$0xff]   ;;  %v1268_v29 = vld [vmem:[%s1826_s1 + $0x174] ss:$8 sps:$4 sm:$0xff]  }
   0xb   :  { %739 = vmatpush1.bf16.msra.mxu1 %v1240_v10  ;;  %v1270_v30 = vld [vmem:[%s1826_s1 + $0x70] ss:$8 sps:$4 sm:$0xff]   ;;  %v1272_v32 = vld [vmem:[%s1826_s1 + $0x84] ss:$8 sps:$4 sm:$0xff]   ;;  %v1276_v34 = vld [vmem:[%s1826_s1 + $0x80] ss:$8 sps:$4 sm:$0xff]  }
   0xc   :  { %810 = vmatpush1.bf16.msra.mxu0 %v1241_v11  ;;  %740 = vmatprep.subr.bf16.mxu1 %v1242_v12  ;;  %v1271_v31 = vld [vmem:[%s1826_s1 + $0x170] ss:$8 sps:$4 sm:$0xff]   ;;  %v1274_v33 = vld [vmem:[%s1826_s1 + $0x184] ss:$8 sps:$4 sm:$0xff]   ;;  %v1277_v35 = vld [vmem:[%s1826_s1 + $0x180] ss:$8 sps:$4 sm:$0xff]  }
   0xd   :  { %811 = vmatprep.subr.bf16.mxu0 %v1244_v13  ;;  %v1278_v36 = vld [vmem:[%s1826_s1 + $0x94] ss:$8 sps:$4 sm:$0xff]   ;;  %v1282_v38 = vld [vmem:[%s1826_s1 + $0x90] ss:$8 sps:$4 sm:$0xff]   ;;  %v1284_v40 = vld [vmem:[%s1826_s1 + $0xa4] ss:$8 sps:$4 sm:$0xff]  }
   0xe   :  { %v1280_v37 = vld [vmem:[%s1826_s1 + $0x194] ss:$8 sps:$4 sm:$0xff]   ;;  %v1283_v39 = vld [vmem:[%s1826_s1 + $0x190] ss:$8 sps:$4 sm:$0xff]   ;;  %v1286_v41 = vld [vmem:[%s1826_s1 + $0x1a4] ss:$8 sps:$4 sm:$0xff]  }
   0xf   :  { %741 = vmatpush1.bf16.msra.mxu1 %v1246_v14  ;;  %v1288_v42 = vld [vmem:[%s1826_s1 + $0xa0] ss:$8 sps:$4 sm:$0xff]   ;;  %v1290_v44 = vld [vmem:[%s1826_s1 + $0xb4] ss:$8 sps:$4 sm:$0xff]   ;;  %v1294_v46 = vld [vmem:[%s1826_s1 + $0xb0] ss:$8 sps:$4 sm:$0xff]  }
  0x10   :  { %812 = vmatpush1.bf16.msra.mxu0 %v1247_v15  ;;  %742 = vmatprep.subr.bf16.mxu1 %v1248_v16  ;;  %v1289_v43 = vld [vmem:[%s1826_s1 + $0x1a0] ss:$8 sps:$4 sm:$0xff]   ;;  %v1292_v45 = vld [vmem:[%s1826_s1 + $0x1b4] ss:$8 sps:$4 sm:$0xff]   ;;  %v1295_v47 = vld [vmem:[%s1826_s1 + $0x1b0] ss:$8 sps:$4 sm:$0xff]  }
  0x11   :  { %813 = vmatprep.subr.bf16.mxu0 %v1250_v17  ;;  %v1296_v48 = vld [vmem:[%s1826_s1 + $0xc4] ss:$8 sps:$4 sm:$0xff]   ;;  %v1300_v52 = vld [vmem:[%s1826_s1 + $0xc0] ss:$8 sps:$4 sm:$0xff]   ;;  %v1302_v54 = vld [vmem:[%s1826_s1 + $0xd4] ss:$8 sps:$4 sm:$0xff]  }
  0x12   :  { %v1322_v49 = vld [vmem:[%s1827_s0 + $0x4] ss:$24 sps:$4 sm:$0xff]   ;;  %v1301_v53 = vld [vmem:[%s1826_s1 + $0x1c0] ss:$8 sps:$4 sm:$0xff]   ;;  %v1306_v56 = vld [vmem:[%s1826_s1 + $0xd0] ss:$8 sps:$4 sm:$0xff]  }
  0x13   :  { %743 = vmatpush1.bf16.msra.mxu1 %v1252_v18  ;;  %v1298_v50 = vld [vmem:[%s1826_s1 + $0x1c4] ss:$8 sps:$4 sm:$0xff]   ;;  %766 = vmatprep.mubr.bf16.mxu1 %v1322_v49  ;;  %v1304_v55 = vld [vmem:[%s1826_s1 + $0x1d4] ss:$8 sps:$4 sm:$0xff]   ;;  %v1307_v57 = vld [vmem:[%s1826_s1 + $0x1d0] ss:$8 sps:$4 sm:$0xff]  }
  0x14   :  { %814 = vmatpush1.bf16.msra.mxu0 %v1253_v19  ;;  %744 = vmatprep.subr.bf16.mxu1 %v1254_v20  ;;  %v1325_v51 = vld [vmem:[%s1827_s0 + $0xc] ss:$24 sps:$4 sm:$0xff]   ;;  %v1312_v60 = vld [vmem:[%s1826_s1 + $0xe0] ss:$8 sps:$4 sm:$0xff]   ;;  %v1314_v62 = vld [vmem:[%s1826_s1 + $0xf4] ss:$8 sps:$4 sm:$0xff]  }
  0x15   :  { %815 = vmatprep.subr.bf16.mxu0 %v1256_v21  ;;  %837 = vmatprep.mubr.bf16.mxu0 %v1325_v51  ;;  %v1308_v58 = vld [vmem:[%s1826_s1 + $0xe4] ss:$8 sps:$4 sm:$0xff]   ;;  %v1313_v61 = vld [vmem:[%s1826_s1 + $0x1e0] ss:$8 sps:$4 sm:$0xff]   ;;  %v1316_v63 = vld [vmem:[%s1826_s1 + $0x1f4] ss:$8 sps:$4 sm:$0xff]  }
  0x16   :  { %v1310_v59 = vld [vmem:[%s1826_s1 + $0x1e4] ss:$8 sps:$4 sm:$0xff]   ;;  %v1318_v0 = vld [vmem:[%s1826_s1 + $0xf0] ss:$8 sps:$4 sm:$0xff]   ;;  %v1323_v4 = vld [vmem:[%s1827_s0 + $0x8] ss:$24 sps:$4 sm:$0xff]  }
  0x17   :  { %745 = vmatpush1.bf16.msra.mxu1 %v1258_v22  ;;  %v1319_v1 = vld [vmem:[%s1826_s1 + $0x1f0] ss:$8 sps:$4 sm:$0xff]   ;;  %v1328_v2 = vld [vmem:[%s1826_s1 + $0x204] ss:$8 sps:$4 sm:$0xff]   ;;  %v1326_v5 = vld [vmem:[%s1826_s1 + $0x200] ss:$8 sps:$4 sm:$0xff]  }
  0x18   :  { %816 = vmatpush1.bf16.msra.mxu0 %v1259_v23  ;;  %746 = vmatprep.subr.bf16.mxu1 %v1260_v24  ;;  %v1320_v3 = vld [vmem:[%s1827_s0] ss:$24 sps:$4 sm:$0xff]   ;;  %v1331_v6 = vld [vmem:[%s1826_s1 + $0x214] ss:$8 sps:$4 sm:$0xff]   ;;  %v1334_v10 = vld [vmem:[%s1826_s1 + $0x224] ss:$8 sps:$4 sm:$0xff]  }
  0x19   :  { %817 = vmatprep.subr.bf16.mxu0 %v1262_v25  ;;  %v1353_v7 = vld [vmem:[%s1827_s0 + $0x34] ss:$24 sps:$4 sm:$0xff]   ;;  %v1329_v9 = vld [vmem:[%s1826_s1 + $0x210] ss:$8 sps:$4 sm:$0xff]   ;;  %v1332_v13 = vld [vmem:[%s1826_s1 + $0x220] ss:$8 sps:$4 sm:$0xff]  }
  0x1a   :  { %v1356_v8 = vld [vmem:[%s1827_s0 + $0x3c] ss:$24 sps:$4 sm:$0xff]   ;;  %v1355_v11 = vld [vmem:[%s1827_s0 + $0x30] ss:$24 sps:$4 sm:$0xff]   ;;  %v1368_v16 = vld [vmem:[%s1827_s0 + $0x6c] ss:$24 sps:$4 sm:$0xff]  }
  0x1b   :  { %747 = vmatpush1.bf16.msra.mxu1 %v1264_v26  ;;  %v1361_v12 = vld [vmem:[%s1827_s0 + $0x38] ss:$24 sps:$4 sm:$0xff]   ;;  %v1337_v14 = vld [vmem:[%s1826_s1 + $0x234] ss:$8 sps:$4 sm:$0xff]   ;;  %v1340_v18 = vld [vmem:[%s1826_s1 + $0x244] ss:$8 sps:$4 sm:$0xff]  }
  0x1c   :  { %818 = vmatpush1.bf16.msra.mxu0 %v1265_v27  ;;  %748 = vmatprep.subr.bf16.mxu1 %v1266_v28  ;;  %v1365_v15 = vld [vmem:[%s1827_s0 + $0x64] ss:$24 sps:$4 sm:$0xff]   ;;  %v1335_v17 = vld [vmem:[%s1826_s1 + $0x230] ss:$8 sps:$4 sm:$0xff]   ;;  %v1373_v20 = vld [vmem:[%s1827_s0 + $0x68] ss:$24 sps:$4 sm:$0xff]  }
  0x1d   :  { %819 = vmatprep.subr.bf16.mxu0 %v1268_v29  ;;  %v1367_v19 = vld [vmem:[%s1827_s0 + $0x60] ss:$24 sps:$4 sm:$0xff]   ;;  %v32_v21 = vld [vmem:[%s1827_s0 + $0x90] sm:$0xff]  ;;  %v1346_v28 = vld [vmem:[%s1826_s1 + $0x264] ss:$8 sps:$4 sm:$0xff]  }
  0x1e   :  { %v33_v22 = vld [vmem:[%s1827_s0 + $0x98] sm:$0xff]  ;;  %v1338_v23 = vld [vmem:[%s1826_s1 + $0x240] ss:$8 sps:$4 sm:$0xff]   ;;  %v1035_v25 = vcombine.high %v32_v21, %v32_v21  ;;  %v1034_v29 = vcombine.low %v32_v21, %v32_v21 }
  0x1f   :  { %749 = vmatpush1.bf16.msra.mxu1 %v1270_v30  ;;  %v1343_v24 = vld [vmem:[%s1826_s1 + $0x254] ss:$8 sps:$4 sm:$0xff]   ;;  %v1037_v26 = vcombine.high %v33_v22, %v33_v22  ;;  %v1341_v27 = vld [vmem:[%s1826_s1 + $0x250] ss:$8 sps:$4 sm:$0xff]   ;;  %v1036_v30 = vcombine.low %v33_v22, %v33_v22  ;;  %v1384_v49 = vld [vmem:[%s1826_s1 + $0x2e0] ss:$8 sps:$4 sm:$0xff]  }
  0x20   :  { %820 = vmatpush1.bf16.msra.mxu0 %v1271_v31  ;;  %750 = vmatprep.subr.bf16.mxu1 %v1272_v32  ;;  %v1344_v31 = vld [vmem:[%s1826_s1 + $0x260] ss:$8 sps:$4 sm:$0xff]   ;;  %v1349_v32 = vld [vmem:[%s1826_s1 + $0x274] ss:$8 sps:$4 sm:$0xff]   ;;  %v1387_v51 = vld [vmem:[%s1826_s1 + $0x2f0] ss:$8 sps:$4 sm:$0xff]  }
  0x21   :  { %821 = vmatprep.subr.bf16.mxu0 %v1274_v33  ;;  %v1392_v33 = vld [vmem:[%s1827_s0 + $0x14] ss:$24 sps:$4 sm:$0xff]  }
  0x23   :  { %751 = vmatpush1.bf16.msra.mxu1 %v1276_v34  ;;  %v1395_v34 = vld [vmem:[%s1827_s0 + $0x74] ss:$24 sps:$4 sm:$0xff]  }
  0x24   :  { %822 = vmatpush1.bf16.msra.mxu0 %v1277_v35  ;;  %752 = vmatprep.subr.bf16.mxu1 %v1278_v36  ;;  %v1347_v35 = vld [vmem:[%s1826_s1 + $0x270] ss:$8 sps:$4 sm:$0xff]   ;;  %v1352_v36 = vld [vmem:[%s1826_s1 + $0x284] ss:$8 sps:$4 sm:$0xff]  }
  0x25   :  { %823 = vmatprep.subr.bf16.mxu0 %v1280_v37  ;;  %v1350_v37 = vld [vmem:[%s1826_s1 + $0x280] ss:$8 sps:$4 sm:$0xff]  }
  0x27   :  { %753 = vmatpush1.bf16.msra.mxu1 %v1282_v38  ;;  %v1360_v38 = vld [vmem:[%s1826_s1 + $0x294] ss:$8 sps:$4 sm:$0xff]  }
  0x28   :  { %824 = vmatpush1.bf16.msra.mxu0 %v1283_v39  ;;  %754 = vmatprep.subr.bf16.mxu1 %v1284_v40  ;;  %v1358_v39 = vld [vmem:[%s1826_s1 + $0x290] ss:$8 sps:$4 sm:$0xff]   ;;  %v1364_v40 = vld [vmem:[%s1826_s1 + $0x2a4] ss:$8 sps:$4 sm:$0xff]  }
  0x29   :  { %825 = vmatprep.subr.bf16.mxu0 %v1286_v41  ;;  %v1362_v41 = vld [vmem:[%s1826_s1 + $0x2a0] ss:$8 sps:$4 sm:$0xff]  }
  0x2b   :  { %755 = vmatpush1.bf16.msra.mxu1 %v1288_v42  ;;  %v1372_v42 = vld [vmem:[%s1826_s1 + $0x2b4] ss:$8 sps:$4 sm:$0xff]  }
  0x2c   :  { %826 = vmatpush1.bf16.msra.mxu0 %v1289_v43  ;;  %756 = vmatprep.subr.bf16.mxu1 %v1290_v44  ;;  %v1370_v43 = vld [vmem:[%s1826_s1 + $0x2b0] ss:$8 sps:$4 sm:$0xff]   ;;  %v1376_v44 = vld [vmem:[%s1826_s1 + $0x2c4] ss:$8 sps:$4 sm:$0xff]  }
  0x2d   :  { %827 = vmatprep.subr.bf16.mxu0 %v1292_v45  ;;  %v1374_v45 = vld [vmem:[%s1826_s1 + $0x2c0] ss:$8 sps:$4 sm:$0xff]  }
  0x2f   :  { %757 = vmatpush1.bf16.msra.mxu1 %v1294_v46  ;;  %v1381_v46 = vld [vmem:[%s1826_s1 + $0x2d4] ss:$8 sps:$4 sm:$0xff]  }
  0x30   :  { %828 = vmatpush1.bf16.msra.mxu0 %v1295_v47  ;;  %758 = vmatprep.subr.bf16.mxu1 %v1296_v48  ;;  %v1379_v47 = vld [vmem:[%s1826_s1 + $0x2d0] ss:$8 sps:$4 sm:$0xff]   ;;  %v1386_v48 = vld [vmem:[%s1826_s1 + $0x2e4] ss:$8 sps:$4 sm:$0xff]  }
  0x31   :  { %829 = vmatprep.subr.bf16.mxu0 %v1298_v50  ;;  %v1389_v50 = vld [vmem:[%s1826_s1 + $0x2f4] ss:$8 sps:$4 sm:$0xff]  }
  0x33   :  { %759 = vmatpush1.bf16.msra.mxu1 %v1300_v52  ;;  %v34_v52 = vld [vmem:[%s1827_s0 + $0xa0] sm:$0xff] }
  0x34   :  { %830 = vmatpush1.bf16.msra.mxu0 %v1301_v53  ;;  %760 = vmatprep.subr.bf16.mxu1 %v1302_v54  ;;  %v1390_v53 = vld [vmem:[%s1827_s0 + $0x10] ss:$24 sps:$4 sm:$0xff]  }
  0x35   :  { %831 = vmatprep.subr.bf16.mxu0 %v1304_v55  ;;  %v1393_v54 = vld [vmem:[%s1827_s0 + $0x70] ss:$24 sps:$4 sm:$0xff]   ;;  %v1396_v55 = vld [vmem:[%s1827_s0 + $0x44] ss:$24 sps:$4 sm:$0xff]  }
  0x37   :  { %761 = vmatpush1.bf16.msra.mxu1 %v1306_v56  ;;  %v1039_v56 = vcombine.high %v34_v52, %v34_v52 }
  0x38   :  { %832 = vmatpush1.bf16.msra.mxu0 %v1307_v57  ;;  %762 = vmatprep.subr.bf16.mxu1 %v1308_v58  ;;  %v1399_v57 = vld [vmem:[%s1827_s0 + $0x40] ss:$24 sps:$4 sm:$0xff]   ;;  %v1038_v58 = vcombine.low %v34_v52, %v34_v52 }
  0x39   :  { %833 = vmatprep.subr.bf16.mxu0 %v1310_v59 }
  0x3b   :  { %763 = vmatpush1.bf16.msra.mxu1 %v1312_v60 }
  0x3c   :  { %834 = vmatpush1.bf16.msra.mxu0 %v1313_v61  ;;  %764 = vmatprep.subr.bf16.mxu1 %v1314_v62  ;;  %v133_v62 = vlaneseq }
  0x3d   :  { %835 = vmatprep.subr.bf16.mxu0 %v1316_v63 }
  0x3f   :  { %765 = vmatpush1.bf16.msra.mxu1 %v1318_v0  ;;  %v134_v0 = vshrl.u32 %v133_v62, 7 }
  0x40   :  { %836 = vmatpush1.bf16.msra.mxu0 %v1319_v1  ;;  %1150 = vmatprep.subr.bf16.mxu1 %v1328_v2 }
  0x41   :  { %876 = vmatprep.subr.bf16.mxu0 %v1328_v2 }
  0x42   :  { %767 = vmatmul.mubr.bf16.vlgmr.msra.gmra.mrb[0].mxu1 %v1320_v3 }
  0x43   :  { %838 = vmatmul.mubr.bf16.vlgmr.msra.gmra.mrb[0].mxu0 %v1323_v4  ;;  %1166 = vmatpush1.bf16.msra.mxu1 %v1326_v5  ;;  %v135_v4 = vsub.s32 0, %v134_v0 }
  0x44   :  { %877 = vmatpush1.bf16.msra.mxu0 %v1326_v5  ;;  %1151 = vmatprep.subr.bf16.mxu1 %v1331_v6 }
  0x45   :  { %878 = vmatprep.subr.bf16.mxu0 %v1331_v6  ;;  %776 = vmatprep.mubr.bf16.mxu1 %v1353_v7  ;;  %v131_v6 = vld [vmem:[%s1828_s2] sm:$0x3]  ;;  %v139_v7 = vsub.s32 1, %v134_v0 }
  0x46   :  { %847 = vmatprep.mubr.bf16.mxu0 %v1356_v8  ;;  %v1783_v8 = vrot.slane %v131_v6, %v135_v4 }
  0x47   :  { %1167 = vmatpush1.bf16.msra.mxu1 %v1329_v9 }
  0x48   :  { %879 = vmatpush1.bf16.msra.mxu0 %v1329_v9  ;;  %1152 = vmatprep.subr.bf16.mxu1 %v1334_v10  ;;  %v1785_v9 = vrot.slane %v131_v6, %v139_v7 }
  0x49   :  { %880 = vmatprep.subr.bf16.mxu0 %v1334_v10 }
  0x4a   :  { %777 = vmatmul.mubr.bf16.gmra.mrb[4].mxu1 %v1355_v11 }
  0x4b   :  { %848 = vmatmul.mubr.bf16.gmra.mrb[4].mxu0 %v1361_v12  ;;  %1168 = vmatpush1.bf16.msra.mxu1 %v1332_v13 }
  0x4c   :  { %881 = vmatpush1.bf16.msra.mxu0 %v1332_v13  ;;  %1153 = vmatprep.subr.bf16.mxu1 %v1337_v14 }
  0x4d   :  { %882 = vmatprep.subr.bf16.mxu0 %v1337_v14  ;;  %786 = vmatprep.mubr.bf16.mxu1 %v1365_v15 }
  0x4e   :  { %857 = vmatprep.mubr.bf16.mxu0 %v1368_v16 }
  0x4f   :  { %1169 = vmatpush1.bf16.msra.mxu1 %v1335_v17 }
  0x50   :  { %883 = vmatpush1.bf16.msra.mxu0 %v1335_v17  ;;  %1154 = vmatprep.subr.bf16.mxu1 %v1340_v18 }
  0x51   :  { %884 = vmatprep.subr.bf16.mxu0 %v1340_v18 }
  0x52   :  { %787 = vmatmul.mubr.bf16.gmra.mrb[8].mxu1 %v1367_v19 }
  0x53   :  { %858 = vmatmul.mubr.bf16.gmra.mrb[8].mxu0 %v1373_v20  ;;  %1170 = vmatpush1.bf16.msra.mxu1 %v1338_v23 }
  0x54   :  { %885 = vmatpush1.bf16.msra.mxu0 %v1338_v23  ;;  %1155 = vmatprep.subr.bf16.mxu1 %v1343_v24 }
  0x55   :  { %886 = vmatprep.subr.bf16.mxu0 %v1343_v24  ;;  %796 = vmatprep.mubr.bf16.mxu1 %v1035_v25 }
  0x56   :  { %867 = vmatprep.mubr.bf16.mxu0 %v1037_v26 }
  0x57   :  { %1171 = vmatpush1.bf16.msra.mxu1 %v1341_v27 }
  0x58   :  { %887 = vmatpush1.bf16.msra.mxu0 %v1341_v27  ;;  %1156 = vmatprep.subr.bf16.mxu1 %v1346_v28 }
  0x59   :  { %888 = vmatprep.subr.bf16.mxu0 %v1346_v28 }
  0x5a   :  { %797 = vmatmul.mubr.bf16.gmra.mrb[12].mxu1 %v1034_v29 }
  0x5b   :  { %868 = vmatmul.mubr.bf16.gmra.mrb[12].mxu0 %v1036_v30  ;;  %1172 = vmatpush1.bf16.msra.mxu1 %v1344_v31 }
  0x5c   :  { %889 = vmatpush1.bf16.msra.mxu0 %v1344_v31  ;;  %1157 = vmatprep.subr.bf16.mxu1 %v1349_v32 }
  0x5d   :  { %890 = vmatprep.subr.bf16.mxu0 %v1349_v32  ;;  %908 = vmatprep.mubr.bf16.mxu0 %v1392_v33 }
  0x5e   :  { %928 = vmatprep.mubr.bf16.mxu1 %v1395_v34 }
  0x5f   :  { %1173 = vmatpush1.bf16.msra.mxu1 %v1347_v35 }
  0x60   :  { %891 = vmatpush1.bf16.msra.mxu0 %v1347_v35  ;;  %1158 = vmatprep.subr.bf16.mxu1 %v1352_v36 }
  0x61   :  { %892 = vmatprep.subr.bf16.mxu0 %v1352_v36 }
  0x63   :  { %1174 = vmatpush1.bf16.msra.mxu1 %v1350_v37 }
  0x64   :  { %893 = vmatpush1.bf16.msra.mxu0 %v1350_v37  ;;  %1159 = vmatprep.subr.bf16.mxu1 %v1360_v38 }
  0x65   :  { %894 = vmatprep.subr.bf16.mxu0 %v1360_v38 }
  0x67   :  { %1175 = vmatpush1.bf16.msra.mxu1 %v1358_v39 }
  0x68   :  { %895 = vmatpush1.bf16.msra.mxu0 %v1358_v39  ;;  %1160 = vmatprep.subr.bf16.mxu1 %v1364_v40 }
  0x69   :  { %896 = vmatprep.subr.bf16.mxu0 %v1364_v40 }
  0x6b   :  { %1176 = vmatpush1.bf16.msra.mxu1 %v1362_v41 }
  0x6c   :  { %897 = vmatpush1.bf16.msra.mxu0 %v1362_v41  ;;  %1161 = vmatprep.subr.bf16.mxu1 %v1372_v42 }
  0x6d   :  { %898 = vmatprep.subr.bf16.mxu0 %v1372_v42 }
  0x6f   :  { %1177 = vmatpush1.bf16.msra.mxu1 %v1370_v43 }
  0x70   :  { %899 = vmatpush1.bf16.msra.mxu0 %v1370_v43  ;;  %1162 = vmatprep.subr.bf16.mxu1 %v1376_v44 }
  0x71   :  { %900 = vmatprep.subr.bf16.mxu0 %v1376_v44 }
  0x73   :  { %1178 = vmatpush1.bf16.msra.mxu1 %v1374_v45 }
  0x74   :  { %901 = vmatpush1.bf16.msra.mxu0 %v1374_v45  ;;  %1163 = vmatprep.subr.bf16.mxu1 %v1381_v46 }
  0x75   :  { %902 = vmatprep.subr.bf16.mxu0 %v1381_v46 }
  0x77   :  { %1179 = vmatpush1.bf16.msra.mxu1 %v1379_v47 }
  0x78   :  { %903 = vmatpush1.bf16.msra.mxu0 %v1379_v47  ;;  %1164 = vmatprep.subr.bf16.mxu1 %v1386_v48 }
  0x79   :  { %904 = vmatprep.subr.bf16.mxu0 %v1386_v48 }
  0x7b   :  { %1180 = vmatpush1.bf16.msra.mxu1 %v1384_v49 }
  0x7c   :  { %905 = vmatpush1.bf16.msra.mxu0 %v1384_v49  ;;  %1165 = vmatprep.subr.bf16.mxu1 %v1389_v50 }
  0x7d   :  { %906 = vmatprep.subr.bf16.mxu0 %v1389_v50 }
  0x7f   :  { %1181 = vmatpush1.bf16.msra.mxu1 %v1387_v51 }
  0x80   :  { %907 = vmatpush1.bf16.msra.mxu0 %v1387_v51 }
  0x82   :  { %929 = vmatmul.mubr.bf16.vlgmr.msra.gmra.mrb[16].mxu1 %v1393_v54 }
  0x83   :  { %909 = vmatmul.mubr.bf16.vlgmr.msra.gmra.mrb[0].mxu0 %v1390_v53  ;;  %938 = vmatprep.mubr.bf16.mxu1 %v1039_v56 }
  0x84   :  { %918 = vmatprep.mubr.bf16.mxu0 %v1396_v55 }
  0x8a   :  { %939 = vmatmul.mubr.bf16.gmra.mrb[20].mxu1 %v1038_v58 }
  0x8b   :  { %919 = vmatmul.mubr.bf16.gmra.mrb[4].mxu0 %v1399_v57 }
 0x115   :  { %v768_v59 = vpop.f32.mrb[0].mxu1 }
 0x116   :  { %v770_v60 = vpop.f32.mrb[1].mxu1  ;;  %v769_v38 = vadd.f32 %v768_v59, %v1783_v8 }
 0x117   :  { %v772_v61 = vpop.f32.mrb[2].mxu1  ;;  %v771_v39 = vadd.f32 %v770_v60, %v1785_v9 }
 0x118   :  { %v774_v63 = vpop.f32.mrb[3].mxu1  ;;  %v773_v42 = vadd.f32 %v772_v61, %v1783_v8 }
 0x119   :  { %v775_v47 = vadd.f32 %v774_v63, %v1785_v9 }
 0x11d   :  { %v1772_v1 = vpop.f32.mrb[4].mxu1 }
 0x11e   :  { %v1774_v2 = vpop.f32.mrb[5].mxu1 }
 0x11f   :  { %v1776_v3 = vpop.f32.mrb[6].mxu1 }
 0x120   :  { %v1778_v5 = vpop.f32.mrb[7].mxu1 }
 0x125   :  { %v788_v10 = vpop.f32.mrb[8].mxu1 }
 0x126   :  { %v859_v11 = vpop.f32.mrb[8].mxu0  ;;  %v789_v12 = vadd.f32 %v788_v10, %v1783_v8  ;;  %v790_v13 = vpop.f32.mrb[9].mxu1  ;;  %v779_v10 = vadd.f32 %v1772_v1, %v1783_v8 }
 0x127   :  { %v861_v14 = vpop.f32.mrb[9].mxu0  ;;  %v791_v15 = vadd.f32 %v790_v13, %v1785_v9  ;;  %v792_v16 = vpop.f32.mrb[10].mxu1 }
 0x128   :  { %v863_v17 = vpop.f32.mrb[10].mxu0  ;;  %v793_v18 = vadd.f32 %v792_v16, %v1783_v8  ;;  %v860_v19 = vadd.f32 %v859_v11, %v789_v12  ;;  %v794_v20 = vpop.f32.mrb[11].mxu1  ;;  %v781_v11 = vadd.f32 %v1774_v2, %v1785_v9  ;;  %v783_v16 = vadd.f32 %v1776_v3, %v1783_v8 }
 0x129   :  { %v865_v21 = vpop.f32.mrb[11].mxu0  ;;  %v795_v22 = vadd.f32 %v794_v20, %v1785_v9  ;;  %v862_v23 = vadd.f32 %v861_v14, %v791_v15  ;;  %v785_v2 = vadd.f32 %v1778_v5, %v1785_v9 }
 0x12a   :  { %v864_v24 = vadd.f32 %v863_v17, %v793_v18 }
 0x12b   :  { %v866_v25 = vadd.f32 %v865_v21, %v795_v22 }
 0x12d   :  { %v798_v26 = vpop.f32.mrb[12].mxu1 }
 0x12e   :  { %v869_v27 = vpop.f32.mrb[12].mxu0  ;;  %v799_v28 = vadd.f32 %v798_v26, %v1783_v8  ;;  %v800_v29 = vpop.f32.mrb[13].mxu1 }
 0x12f   :  { %v871_v30 = vpop.f32.mrb[13].mxu0  ;;  %v801_v31 = vadd.f32 %v800_v29, %v1785_v9  ;;  %v802_v33 = vpop.f32.mrb[14].mxu1 }
 0x130   :  { %v873_v32 = vpop.f32.mrb[14].mxu0  ;;  %v870_v34 = vadd.f32 %v869_v27, %v799_v28  ;;  %v803_v36 = vpop.f32.mrb[15].mxu1 }
 0x131   :  { %v874_v35 = vpop.f32.mrb[15].mxu0  ;;  %v872_v37 = vadd.f32 %v871_v30, %v801_v31 }
 0x155   :  { %v930_v41 = vpop.f32.mrb[16].mxu1 }
 0x156   :  { %v910_v40 = vpop.f32.mrb[0].mxu0  ;;  %v931_v44 = vadd.f32 %v930_v41, %v860_v19  ;;  %v932_v46 = vpop.f32.mrb[17].mxu1 }
 0x157   :  { %v1183_v43 = vadd.f32 %v910_v40, %v769_v38  ;;  %v912_v45 = vpop.f32.mrb[1].mxu0  ;;  %v933_v49 = vadd.f32 %v932_v46, %v862_v23  ;;  %v934_v51 = vpop.f32.mrb[18].mxu1 }
 0x158   :  { %v1185_v48 = vadd.f32 %v912_v45, %v771_v39  ;;  %v914_v50 = vpop.f32.mrb[2].mxu0  ;;  %v955_v53 = vmax.f32 %v931_v44, 0.0  ;;  %v935_v55 = vadd.f32 %v934_v51, %v864_v24  ;;  %v936_v57 = vpop.f32.mrb[19].mxu1 }
 0x159   :  { %v947_v52 = vmax.f32 %v1183_v43, 0.0  ;;  %v1187_v54 = vadd.f32 %v914_v50, %v773_v42  ;;  %v916_v56 = vpop.f32.mrb[3].mxu0  ;;  %v956_v59 = vmax.f32 %v933_v49, 0.0  ;;  %v937_v61 = vadd.f32 %v936_v57, %v866_v25 }
 0x15a   :  { %v948_v58 = vmax.f32 %v1185_v48, 0.0  ;;  %v1189_v60 = vadd.f32 %v916_v56, %v775_v47  ;;  %v957_v0 = vmax.f32 %v935_v55, 0.0 }
 0x15b   :  { %v949_v62 = vmax.f32 %v1187_v54, 0.0  ;;  %v1147_v6 = vpack.c.bf16 %v956_v59, %v955_v53  ;;  %v958_v63 = vmax.f32 %v937_v61, 0.0 }
 0x15c   :  { %v1143_v4 = vpack.c.bf16 %v948_v58, %v947_v52  ;;  %v950_v7 = vmax.f32 %v1189_v60, 0.0 }
 0x15d   :  { %1009 = vst [vmem:[%s1829_s3 + $0x20] sm:$0xff] %v1147_v6  ;;  %v1148_v13 = vpack.c.bf16 %v958_v63, %v957_v0  ;;  %v940_v15 = vpop.f32.mrb[20].mxu1 }
 0x15e   :  { %1005 = vst [vmem:[%s1829_s3] sm:$0xff] %v1143_v4  ;;  %v1144_v12 = vpack.c.bf16 %v950_v7, %v949_v62  ;;  %v920_v14 = vpop.f32.mrb[4].mxu0  ;;  %v941_v1 = vadd.f32 %v940_v15, %v870_v34  ;;  %v942_v19 = vpop.f32.mrb[21].mxu1 }
 0x15f   :  { %v1191_v17 = vadd.f32 %v920_v14, %v779_v10  ;;  %v922_v18 = vpop.f32.mrb[5].mxu0  ;;  %1010 = vst [vmem:[%s1829_s3 + $0x28] sm:$0xff] %v1148_v13  ;;  %v943_v21 = vadd.f32 %v942_v19, %v872_v37  ;;  %v944_v23 = vpop.f32.mrb[22].mxu1 }
 0x160   :  { %1006 = vst [vmem:[%s1829_s3 + $0x8] sm:$0xff] %v1144_v12  ;;  %v1193_v20 = vadd.f32 %v922_v18, %v781_v11  ;;  %v924_v22 = vpop.f32.mrb[6].mxu0  ;;  %v959_v8 = vmax.f32 %v941_v1, 0.0  ;;  %v945_v26 = vpop.f32.mrb[23].mxu1 }
 0x161   :  { %v951_v3 = vmax.f32 %v1191_v17, 0.0  ;;  %v1195_v24 = vadd.f32 %v924_v22, %v783_v16  ;;  %v926_v25 = vpop.f32.mrb[7].mxu0  ;;  %v960_v28 = vmax.f32 %v943_v21, 0.0 }
 0x162   :  { %v952_v27 = vmax.f32 %v1193_v20, 0.0  ;;  %v1197_v5 = vadd.f32 %v926_v25, %v785_v2 }
 0x163   :  { %v953_v9 = vmax.f32 %v1195_v24, 0.0  ;;  %v1149_v30 = vpack.c.bf16 %v960_v28, %v959_v8 }
 0x164   :  { %v1145_v29 = vpack.c.bf16 %v952_v27, %v951_v3  ;;  %v954_v31 = vmax.f32 %v1197_v5, 0.0 }
 0x165   :  { %1011 = vst [vmem:[%s1829_s3 + $0x30] sm:$0xff] %v1149_v30 }
 0x166   :  { %1007 = vst [vmem:[%s1829_s3 + $0x10] sm:$0xff] %v1145_v29  ;;  %v1146_v32 = vpack.c.bf16 %v954_v31, %v953_v9 }
 0x168   :  { %1008 = vst [vmem:[%s1829_s3 + $0x18] sm:$0xff] %v1146_v32 }

// kernel: incept_init_block.13
= control target key start
LH: loop header
LB: loop body
LE: loop exit
PB: predicated region body
PF: predicated region fallthrough
CT: control target
= control target key end

     0   :  { %s134_s0 = inlined_call_operand.vmem [shape: bf16[8,256], index: 0, kind: input, shape index: {}]   ;;  %s135_s1 = inlined_call_operand.vmem [shape: bf16[8,256], index: 1, kind: input, shape index: {}]   ;;  %s136_s2 = inlined_call_operand.vmem [shape: bf16[8,256], index: 2, kind: input, shape index: {}]   ;;  %s137_s3 = inlined_call_operand.vmem [shape: bf16[8,256], index: 3, kind: input, shape index: {}]   ;;  %s138_s4 = inlined_call_operand.vmem [shape: bf16[8,256], index: 4, kind: input, shape index: {}]   ;;  %s139_s5 = inlined_call_operand.vmem [shape: bf16[8,256], index: 5, kind: input, shape index: {}]   ;;  %s140_s6 = inlined_call_operand.vmem [shape: bf16[8,256], index: 6, kind: input, shape index: {}]   ;;  %s141_s7 = inlined_call_operand.vmem [shape: bf16[8,256], index: 7, kind: input, shape index: {}]   ;;  %s142_s8 = inlined_call_operand.vmem [shape: bf16[8,256], index: 8, kind: input, shape index: {}]   ;;  %s143_s9 = inlined_call_operand.vmem [shape: bf16[8,256], index: 9, kind: output, shape index: {}]  }
   0x1   :  { %v32_v0 = vld [vmem:[%s134_s0] sm:$0xff] }
   0x2   :  { %v33_v1 = vld [vmem:[%s135_s1] sm:$0xff] }
   0x3   :  { %v35_v2 = vld [vmem:[%s136_s2] sm:$0xff]  ;;  %v34_v3 = vmax.bf16 %v33_v1, %v32_v0 }
   0x4   :  { %v37_v4 = vld [vmem:[%s137_s3] sm:$0xff] }
   0x5   :  { %v36_v5 = vmax.bf16 %v35_v2, %v34_v3  ;;  %v39_v6 = vld [vmem:[%s138_s4] sm:$0xff] }
   0x6   :  { %v41_v8 = vld [vmem:[%s139_s5] sm:$0xff] }
   0x7   :  { %v38_v7 = vmax.bf16 %v37_v4, %v36_v5  ;;  %v43_v10 = vld [vmem:[%s140_s6] sm:$0xff] }
   0x8   :  { %v45_v12 = vld [vmem:[%s141_s7] sm:$0xff] }
   0x9   :  { %v40_v9 = vmax.bf16 %v39_v6, %v38_v7  ;;  %v47_v14 = vld [vmem:[%s142_s8] sm:$0xff] }
   0xb   :  { %v42_v11 = vmax.bf16 %v41_v8, %v40_v9 }
   0xd   :  { %v44_v13 = vmax.bf16 %v43_v10, %v42_v11 }
   0xf   :  { %v46_v15 = vmax.bf16 %v45_v12, %v44_v13 }
  0x11   :  { %v48_v16 = vmax.bf16 %v47_v14, %v46_v15 }
  0x13   :  { %49 = vst [vmem:[%s143_s9] sm:$0xff] %v48_v16 }

</bundles_post_ra>
